<compile_context>
chip_gen: v7x
topology: tpu7x:2x2x1
jax: 0.10.0
libtpu: 0.0.40
codegen_flags: <defaults>
</compile_context>

<pallas_src>
import functools

import jax
import jax.numpy as jnp
from jax import lax
from jax.experimental import pallas as pl
from jax.experimental.pallas import tpu as pltpu

BN_EPS = 1e-5
LANE = 128
ACC_BYTES = 128 * 1024          # keep the live f32 accumulator under ~half the vreg file


def _ceil_to(v, m):
    return ((v + m - 1) // m) * m


def _pick_row_tile(ho, wmm, cout_p, acc_bytes=ACC_BYTES):
    """Largest divisor th of ho whose f32 accumulator (th*wmm, cout_p) fits the budget."""
    best = 1
    for th in range(1, ho + 1):
        if ho % th == 0 and th * wmm * cout_p * 4 <= acc_bytes:
            best = th
    return best


def _compiler_params():
    try:
        cap = pltpu.get_tpu_info().vmem_capacity_bytes
        limit = int(cap) * 3 // 4
    except Exception:  # no TPU info available (e.g. interpret mode) -> conservative default
        limit = 32 * 1024 * 1024
    return pltpu.CompilerParams(
        dimension_semantics=("parallel", "parallel"),
        vmem_limit_bytes=limit)


# --------------------------- kernel 1: BN+ReLU -> conv3x3(s) -> BN+ReLU (+1x1 proj) -----------

def _make_conv1_kernel(*, stride, th, h, w, wo, W8, W2, cin_p, cout_p,
                       rows_in, raw_rows, xa_rows, plane_stride, with_proj):
    wph = W8 // 2
    wmm = W8 if stride == 1 else wph          # matmul "width" per output row
    mdim = th * wmm                           # MXU M dimension

    def window_start(kh, kw):
        if stride == 1:
            return kh * W8 + kw
        pidx = (kh % 2) * 2 + (kw % 2)        # parity plane
        return pidx * plane_stride + (kh // 2) * wph + (kw // 2)

    def kernel(*refs):
        if with_proj:
            (x_hbm, w_ref, si_ref, sh_ref, so_ref, sb_ref, pw_ref,
             y_ref, po_ref, raw_scr, xa_scr, sem) = refs
        else:
            (x_hbm, w_ref, si_ref, sh_ref, so_ref, sb_ref,
             y_ref, raw_scr, xa_scr, sem) = refs
            pw_ref = po_ref = None

        i = pl.program_id(0)
        t = pl.program_id(1)
        row0 = t * (th * stride)              # first padded input row needed by this tile

        # ---- DMA only the halo'd row window (input stays in HBM, no whole-image staging) ----
        cp = pltpu.make_async_copy(
            x_hbm.at[i, pl.ds(row0, rows_in)],
            raw_scr.at[pl.ds(0, rows_in)],
            sem.at[0])
        cp.start()
        if raw_rows > rows_in:                # spare row used by the odd-row parity plane
            raw_scr[pl.ds(rows_in, raw_rows - rows_in), :, :] = jnp.zeros(
                (raw_rows - rows_in, W8, cin_p), jnp.float32)
        cp.wait()

        scale = si_ref[0]
        shift = sh_ref[0]

        # ---- fused pre-act BN+ReLU; zero the spatial halo / width padding (mask);
        #      stage as bf16 flat plane(s) so every tap read is contiguous ----
        if stride == 1:
            raw = raw_scr[pl.ds(0, rows_in), :, :]
            act = jnp.maximum(raw * scale + shift, 0.0)
            rr = lax.broadcasted_iota(jnp.int32, (rows_in, W8, 1), 0) + row0
            cc = lax.broadcasted_iota(jnp.int32, (rows_in, W8, 1), 1)
            ok = (rr >= 1) & (rr <= h) & (cc >= 1) & (cc <= w)
            act = jnp.where(ok, act, 0.0)
            xa_scr[pl.ds(0, rows_in * W8), :] = act.reshape(
                rows_in * W8, cin_p).astype(jnp.bfloat16)
            xa_scr[pl.ds(rows_in * W8, xa_rows - rows_in * W8), :] = jnp.zeros(
                (xa_rows - rows_in * W8, cin_p), jnp.bfloat16)
        else:
            nrp = th + 1
            for pr in range(2):
                for pc in range(2):
                    part = raw_scr[pl.ds(pr, nrp, 2), pl.ds(pc, wph, 2), :]
                    act = jnp.maximum(part * scale + shift, 0.0)
                    rr = lax.broadcasted_iota(jnp.int32, (nrp, wph, 1), 0) * 2 + (row0 + pr)
                    cc = lax.broadcasted_iota(jnp.int32, (nrp, wph, 1), 1) * 2 + pc
                    ok = (rr >= 1) & (rr <= h) & (cc >= 1) & (cc <= w)
                    act = jnp.where(ok, act, 0.0)
                    base = (pr * 2 + pc) * plane_stride
                    xa_scr[pl.ds(base, nrp * wph), :] = act.reshape(
                        nrp * wph, cin_p).astype(jnp.bfloat16)
                    xa_scr[pl.ds(base + nrp * wph, plane_stride - nrp * wph), :] = jnp.zeros(
                        (plane_stride - nrp * wph, cin_p), jnp.bfloat16)

        # ---- direct 3x3 conv: 9 contiguous flat-window MXU matmuls, one f32 accumulator ----
        acc = jnp.zeros((mdim, cout_p), jnp.float32)
        for kh in range(3):
            for kw in range(3):
                lhs = xa_scr[pl.ds(window_start(kh, kw), mdim), :]
                acc = acc + jnp.dot(lhs, w_ref[kh * 3 + kw],
                                    preferred_element_type=jnp.float32)

        # ---- fused post-conv BN + ReLU; crop once; write the W-padded lane-dense layout
        #      consumed by kernel 2 (left halo col + valid cols + zero alignment cols) ----
        y = jnp.maximum(acc * so_ref[0] + sb_ref[0], 0.0)
        y = y.reshape(th, wmm, cout_p)[:, :wo, :]
        y_padded = jnp.concatenate(
            [jnp.zeros((th, 1, cout_p), jnp.float32), y,
             jnp.zeros((th, W2 - wo - 1, cout_p), jnp.float32)], axis=1)
        y_ref[0] = y_padded.reshape(th * W2, cout_p).astype(y_ref.dtype)

        if with_proj:
            # fused 1x1 stride-s projection: tap (1, 1) of the padded grid == unpadded pixels
            plhs = xa_scr[pl.ds(window_start(1, 1), mdim), :]
            pacc = jnp.dot(plhs, pw_ref[...], preferred_element_type=jnp.float32)
            po_ref[0] = pacc.reshape(th, wmm, cout_p)[:, :wo, :].astype(po_ref.dtype)

    return kernel


def _conv1(x_pad, w1, s0, b0, s1, b1, proj_w, *, stride, h, w):
    n, hp, W8, cin_p = x_pad.shape
    cout_p = w1.shape[2]
    ho = (h - 1) // stride + 1
    wo = (w - 1) // stride + 1
    W2 = _ceil_to(wo + 2, 8)                              # width of the y1 layout for kernel 2
    wmm = W8 if stride == 1 else W8 // 2
    th = _pick_row_tile(ho, wmm, cout_p)
    rows_in = (th - 1) * stride + 3
    raw_rows = rows_in + (1 if stride == 2 else 0)
    if stride == 1:
        plane_stride = 0
        xa_rows = rows_in * W8 + 8
    else:
        plane_stride = (th + 1) * (W8 // 2) + 8
        xa_rows = 4 * plane_stride
    with_proj = proj_w is not None

    kernel = _make_conv1_kernel(
        stride=stride, th=th, h=h, w=w, wo=wo, W8=W8, W2=W2,
        cin_p=cin_p, cout_p=cout_p, rows_in=rows_in, raw_rows=raw_rows,
        xa_rows=xa_rows, plane_stride=plane_stride, with_proj=with_proj)

    inputs = [x_pad, w1, s0, b0, s1, b1]
    in_specs = [
        pl.BlockSpec(memory_space=pl.ANY),                              # x stays in HBM
        pl.BlockSpec((9, cin_p, cout_p), lambda i, t: (0, 0, 0)),
        pl.BlockSpec((1, cin_p), lambda i, t: (0, 0)),
        pl.BlockSpec((1, cin_p), lambda i, t: (0, 0)),
        pl.BlockSpec((1, cout_p), lambda i, t: (0, 0)),
        pl.BlockSpec((1, cout_p), lambda i, t: (0, 0)),
    ]
    if with_proj:
        inputs.append(proj_w)
        in_specs.append(pl.BlockSpec((cin_p, cout_p), lambda i, t: (0, 0)))

    y_shape = jax.ShapeDtypeStruct((n, ho * W2, cout_p), jnp.bfloat16)
    y_spec = pl.BlockSpec((1, th * W2, cout_p), lambda i, t: (i, t, 0))
    if with_proj:
        out_shape = (y_shape, jax.ShapeDtypeStruct((n, ho, wo, cout_p), jnp.float32))
        out_specs = (y_spec, pl.BlockSpec((1, th, wo, cout_p), lambda i, t: (i, t, 0, 0)))
    else:
        out_shape = y_shape
        out_specs = y_spec

    return pl.pallas_call(
        kernel,
        out_shape=out_shape,
        grid=(n, ho // th),
        in_specs=in_specs,
        out_specs=out_specs,
        scratch_shapes=[
            pltpu.VMEM((raw_rows, W8, cin_p), jnp.float32),
            pltpu.VMEM((xa_rows, cin_p), jnp.bfloat16),
            pltpu.SemaphoreType.DMA((1,)),
        ],
        compiler_params=_compiler_params(),
    )(*inputs)


# --------------------------- kernel 2: conv3x3(s=1) + residual add ----------------------------

def _make_conv2_kernel(*, th, ho, wo, W2, cout_p, xa_rows):
    mdim = th * W2

    def kernel(y_hbm, r_ref, w_ref, o_ref, xa_scr, sem):
        i = pl.program_id(0)
        t = pl.program_id(1)
        last = pl.num_programs(1) - 1
        base = t * th                                    # first y1 row of this tile

        # core rows -> scratch rows [1, th+1); halo rows with clamped sources (overwritten
        # with zeros below when they fall outside the image).  All copy shapes are static.
        core = pltpu.make_async_copy(
            y_hbm.at[i, pl.ds(base * W2, th * W2)],
            xa_scr.at[pl.ds(W2, th * W2)], sem.at[0])
        core.start()
        top_src = jnp.maximum(base - 1, 0) * W2
        top = pltpu.make_async_copy(
            y_hbm.at[i, pl.ds(top_src, W2)],
            xa_scr.at[pl.ds(0, W2)], sem.at[1])
        top.start()
        bot_src = jnp.minimum(base + th, ho - 1) * W2
        bot = pltpu.make_async_copy(
            y_hbm.at[i, pl.ds(bot_src, W2)],
            xa_scr.at[pl.ds((th + 1) * W2, W2)], sem.at[2])
        bot.start()

        # zero the alignment slack (disjoint from the DMA targets)
        xa_scr[pl.ds((th + 2) * W2, xa_rows - (th + 2) * W2), :] = jnp.zeros(
            (xa_rows - (th + 2) * W2, cout_p), jnp.bfloat16)

        core.wait()
        top.wait()
        bot.wait()

        @pl.when(t == 0)
        def _():
            xa_scr[pl.ds(0, W2), :] = jnp.zeros((W2, cout_p), jnp.bfloat16)

        @pl.when(t == last)
        def _():
            xa_scr[pl.ds((th + 1) * W2, W2), :] = jnp.zeros((W2, cout_p), jnp.bfloat16)

        acc = jnp.zeros((mdim, cout_p), jnp.float32)
        for kh in range(3):
            for kw in range(3):
                lhs = xa_scr[pl.ds(kh * W2 + kw, mdim), :]
                acc = acc + jnp.dot(lhs, w_ref[kh * 3 + kw],
                                    preferred_element_type=jnp.float32)

        y = acc.reshape(th, W2, cout_p)[:, :wo, :] + r_ref[0].astype(jnp.float32)
        o_ref[0] = y.astype(o_ref.dtype)

    return kernel


def _conv2(y1, res, w2, *, ho, wo):
    n, flat, cout_p = y1.shape
    W2 = flat // ho
    th = _pick_row_tile(ho, W2, cout_p)
    xa_rows = (th + 2) * W2 + 8

    kernel = _make_conv2_kernel(th=th, ho=ho, wo=wo, W2=W2, cout_p=cout_p, xa_rows=xa_rows)

    return pl.pallas_call(
        kernel,
        out_shape=jax.ShapeDtypeStruct((n, ho, wo, cout_p), jnp.float32),
        grid=(n, ho // th),
        in_specs=[
            pl.BlockSpec(memory_space=pl.ANY),                           # y1 stays in HBM
            pl.BlockSpec((1, th, wo, cout_p), lambda i, t: (i, t, 0, 0)),
            pl.BlockSpec((9, cout_p, cout_p), lambda i, t: (0, 0, 0)),
        ],
        out_specs=pl.BlockSpec((1, th, wo, cout_p), lambda i, t: (i, t, 0, 0)),
        scratch_shapes=[
            pltpu.VMEM((xa_rows, cout_p), jnp.bfloat16),
            pltpu.SemaphoreType.DMA((3,)),
        ],
        compiler_params=_compiler_params(),
    )(y1, res, w2)


# ------------------------------- JAX glue ---------------------------------

def _w_to_taps(w_oihw, cin_p, cout_p):
    """(Cout, Cin, KH, KW) -> (KH*KW, Cin_p, Cout_p) bf16; tap index = kh*KW + kw."""
    cout, cin, kh, kw = w_oihw.shape
    wt = jnp.transpose(w_oihw, (2, 3, 1, 0)).reshape(kh * kw, cin, cout)
    wt = jnp.pad(wt, ((0, 0), (0, cin_p - cin), (0, cout_p - cout)))
    return wt.astype(jnp.bfloat16)


def _bn_fold_pad(gamma, beta, mean, var, c_pad):
    scale = gamma / jnp.sqrt(var + BN_EPS)
    shift = beta - mean * scale
    c = scale.shape[0]
    scale = jnp.pad(scale, (0, c_pad - c)).reshape(1, c_pad).astype(jnp.float32)
    shift = jnp.pad(shift, (0, c_pad - c)).reshape(1, c_pad).astype(jnp.float32)
    return scale, shift


def init_preact_unit_params(key, in_channels, out_channels, stride):
    use_projection = (in_channels != out_channels) or (stride != 1)
    ks = jax.random.split(key, 11)
    p = {
        "bn_gamma": 1.0 + 0.1 * jax.random.normal(ks[0], (in_channels,), jnp.float32),
        "bn_beta": 0.1 * jax.random.normal(ks[1], (in_channels,), jnp.float32),
        "bn_mean": 0.1 * jax.random.normal(ks[2], (in_channels,), jnp.float32),
        "bn_var": jax.random.uniform(ks[3], (in_channels,), jnp.float32, 0.5, 1.5),
        "conv1_w": 0.2 * jax.random.normal(ks[4], (out_channels, in_channels, 3, 3), jnp.float32),
        "bn1_gamma": 1.0 + 0.1 * jax.random.normal(ks[5], (out_channels,), jnp.float32),
        "bn1_beta": 0.1 * jax.random.normal(ks[6], (out_channels,), jnp.float32),
        "bn1_mean": 0.1 * jax.random.normal(ks[7], (out_channels,), jnp.float32),
        "bn1_var": jax.random.uniform(ks[8], (out_channels,), jnp.float32, 0.5, 1.5),
        "conv2_w": 0.2 * jax.random.normal(ks[9], (out_channels, out_channels, 3, 3), jnp.float32),
    }
    if use_projection:
        p["proj_w"] = 0.2 * jax.random.normal(ks[10], (out_channels, in_channels, 1, 1), jnp.float32)
    return p


def preact_unit_forward(x_nchw, p, stride):
    n, cin, h, w = x_nchw.shape
    cout = p["conv1_w"].shape[0]
    use_projection = (cin != cout) or (stride != 1)
    cin_p = _ceil_to(cin, LANE)
    cout_p = _ceil_to(cout, LANE)

    x = jnp.transpose(x_nchw, (0, 2, 3, 1)).astype(jnp.float32)        # NCHW -> NHWC
    # Spatial halo (pad=1) + width alignment (8, or 16 for stride 2 so parity planes stay
    # 8-aligned) + channel zero-pad to a lane-dense multiple of 128.
    W8 = _ceil_to(w + 2, 8 * stride)
    x_pad = jnp.pad(x, ((0, 0), (1, 1), (1, W8 - w - 1), (0, cin_p - cin)))

    s0, b0 = _bn_fold_pad(p["bn_gamma"], p["bn_beta"], p["bn_mean"], p["bn_var"], cin_p)
    s1, b1 = _bn_fold_pad(p["bn1_gamma"], p["bn1_beta"], p["bn1_mean"], p["bn1_var"], cout_p)
    w1 = _w_to_taps(p["conv1_w"], cin_p, cout_p)
    w2 = _w_to_taps(p["conv2_w"], cout_p, cout_p)

    ho = (h - 1) // stride + 1
    wo = (w - 1) // stride + 1

    if use_projection:
        pw = _w_to_taps(p["proj_w"], cin_p, cout_p)[0]                 # (cin_p, cout_p)
        y1, res = _conv1(x_pad, w1, s0, b0, s1, b1, pw, stride=stride, h=h, w=w)
    else:
        y1 = _conv1(x_pad, w1, s0, b0, s1, b1, None, stride=stride, h=h, w=w)
        res = jnp.pad(x, ((0, 0), (0, 0), (0, 0), (0, cout_p - cin)))  # identity residual, f32

    out = _conv2(y1, res, w2, ho=ho, wo=wo)                            # (n, ho, wo, cout_p) f32
    out = out[..., :cout]
    return jnp.transpose(out, (0, 3, 1, 2))                            # NHWC -> NCHW


# --------------------------- pure-JAX reference ----------------------------

def preact_unit_reference(x_nchw, p, stride):
    """Pure-JAX reference mirroring the kernel's mixed precision (bf16 MXU operands,
    float32 accumulation / elementwise), eval-mode folded BN."""
    cin = x_nchw.shape[1]
    cout = p["conv1_w"].shape[0]
    use_projection = (cin != cout) or (stride != 1)
    x = jnp.transpose(x_nchw, (0, 2, 3, 1)).astype(jnp.float32)

    def conv(v, w_oihw, s, pad):
        return lax.conv_general_dilated(
            v.astype(jnp.bfloat16),
            jnp.transpose(w_oihw, (2, 3, 1, 0)).astype(jnp.bfloat16),
            (s, s), [(pad, pad), (pad, pad)],
            dimension_numbers=("NHWC", "HWIO", "NHWC"),
            preferred_element_type=jnp.float32)

    def bn(v, g, b, m, var):
        scale = g / jnp.sqrt(var + BN_EPS)
        return v * scale + (b - m * scale)

    xa = jnp.maximum(bn(x, p["bn_gamma"], p["bn_beta"], p["bn_mean"], p["bn_var"]), 0.0)
    residual = conv(xa, p["proj_w"], stride, 0) if use_projection else x
    y = conv(xa, p["conv1_w"], stride, 1)
    y = jnp.maximum(bn(y, p["bn1_gamma"], p["bn1_beta"], p["bn1_mean"], p["bn1_var"]), 0.0)
    out = conv(y, p["conv2_w"], 1, 1) + residual
    return jnp.transpose(out, (0, 3, 1, 2))


# --------------------------------- main ------------------------------------

if __name__ == "__main__":
    key = jax.random.PRNGKey(0)
    k1, k2, k3, k4 = jax.random.split(key, 4)

    # Config A: projection path (channel change + stride 2).
    n, cin, cout, h, w, stride = 2, 4, 8, 16, 16, 2
    x = jax.random.normal(k1, (n, cin, h, w), jnp.float32)
    params = init_preact_unit_params(k2, cin, cout, stride)
    fwd = jax.jit(functools.partial(preact_unit_forward, stride=stride))
    out = jax.block_until_ready(fwd(x, params))
    assert out.shape == (n, cout, h // stride, w // stride), out.shape
    ref = preact_unit_reference(x, params, stride)
    err = float(jnp.max(jnp.abs(out - ref)))
    if err > 2e-2:
        raise AssertionError(f"projection path mismatch vs reference: max abs err {err}")

    # Config B: identity-residual path (same channels, stride 1).
    n, cin, cout, h, w, stride = 2, 8, 8, 16, 16, 1
    x = jax.random.normal(k3, (n, cin, h, w), jnp.float32)
    params = init_preact_unit_params(k4, cin, cout, stride)
    fwd = jax.jit(functools.partial(preact_unit_forward, stride=stride))
    out = jax.block_until_ready(fwd(x, params))
    assert out.shape == (n, cout, h, w), out.shape
    ref = preact_unit_reference(x, params, stride)
    err = float(jnp.max(jnp.abs(out - ref)))
    if err > 2e-2:
        raise AssertionError(f"identity path mismatch vs reference: max abs err {err}")

    print("KERNEL_OK")
</pallas_src>

<mosaic_0001>
module attributes {stable_mosaic.version = 11 : i64} {
  func.func @kernel(%arg0: i32, %arg1: i32, %arg2: memref<2x18x32x128xf32, #tpu.memory_space<any>>, %arg3: memref<9x128x128xbf16, #tpu.memory_space<vmem>>, %arg4: memref<1x128xf32, #tpu.memory_space<vmem>>, %arg5: memref<1x128xf32, #tpu.memory_space<vmem>>, %arg6: memref<1x128xf32, #tpu.memory_space<vmem>>, %arg7: memref<1x128xf32, #tpu.memory_space<vmem>>, %arg8: memref<128x128xbf16, #tpu.memory_space<vmem>>, %arg9: memref<1x128x128xbf16, #tpu.memory_space<vmem>>, %arg10: memref<1x8x8x128xf32, #tpu.memory_space<vmem>>, %arg11: memref<18x32x128xf32, #tpu.memory_space<vmem>>, %arg12: memref<608x128xbf16, #tpu.memory_space<vmem>>, %arg13: memref<1x!tpu.dma_semaphore, #tpu.memory_space<semaphore_mem>>) attributes {dimension_semantics = [#tpu.dimension_semantics<parallel>, #tpu.dimension_semantics<parallel>], iteration_bounds = array<i64: 2, 1>, scalar_prefetch = 0 : i64, scratch_operands = 3 : i64, tpu.core_type = #tpu.core_type<tc>, window_params = [{}, {pipeline_mode = #tpu.pipeline_mode<synchronous>, transform_indices = @transform_1, window_bounds = array<i64: 9, 128, 128>}, {pipeline_mode = #tpu.pipeline_mode<synchronous>, transform_indices = @transform_2, window_bounds = array<i64: 1, 128>}, {pipeline_mode = #tpu.pipeline_mode<synchronous>, transform_indices = @transform_3, window_bounds = array<i64: 1, 128>}, {pipeline_mode = #tpu.pipeline_mode<synchronous>, transform_indices = @transform_4, window_bounds = array<i64: 1, 128>}, {pipeline_mode = #tpu.pipeline_mode<synchronous>, transform_indices = @transform_5, window_bounds = array<i64: 1, 128>}, {pipeline_mode = #tpu.pipeline_mode<synchronous>, transform_indices = @transform_6, window_bounds = array<i64: 128, 128>}, {transform_indices = @transform_7, window_bounds = array<i64: 1, 128, 128>}, {transform_indices = @transform_8, window_bounds = array<i64: 1, 8, 8, 128>}]} {
    %c16_i32 = arith.constant 16 : i32
    %0 = arith.muli %arg1, %c16_i32 : i32
    %c0_i32 = arith.constant 0 : i32
    %c0_i32_0 = arith.constant 0 : i32
    %c0_i32_1 = arith.constant 0 : i32
    %1 = tpu.memref_slice %arg2[%arg0, %0, %c0_i32_0, %c0_i32_1] : memref<2x18x32x128xf32, #tpu.memory_space<any>> -> memref<1x17x32x128xf32, #tpu.memory_space<any>>
    %2 = tpu.memref_squeeze %1 : memref<1x17x32x128xf32, #tpu.memory_space<any>> -> memref<17x32x128xf32, #tpu.memory_space<any>>
    %c0_i32_2 = arith.constant 0 : i32
    %c0_i32_3 = arith.constant 0 : i32
    %c0_i32_4 = arith.constant 0 : i32
    %3 = tpu.memref_slice %arg11[%c0_i32_2, %c0_i32_3, %c0_i32_4] : memref<18x32x128xf32, #tpu.memory_space<vmem>> -> memref<17x32x128xf32, #tpu.memory_space<vmem>>
    %4 = tpu.memref_slice %arg13[%c0_i32] : memref<1x!tpu.dma_semaphore, #tpu.memory_space<semaphore_mem>> -> memref<1x!tpu.dma_semaphore, #tpu.memory_space<semaphore_mem>>
    %5 = tpu.memref_squeeze %4 : memref<1x!tpu.dma_semaphore, #tpu.memory_space<semaphore_mem>> -> memref<!tpu.dma_semaphore, #tpu.memory_space<semaphore_mem>>
    tpu.enqueue_dma source(%2 : memref<17x32x128xf32, #tpu.memory_space<any>>) target(%3 : memref<17x32x128xf32, #tpu.memory_space<vmem>>) target_semaphore(%5 : memref<!tpu.dma_semaphore, #tpu.memory_space<semaphore_mem>>)
    %cst = arith.constant 0.000000e+00 : f32
    %6 = vector.broadcast %cst : f32 to vector<1x32x128xf32>
    %c17 = arith.constant 17 : index
    %c0 = arith.constant 0 : index
    %c0_5 = arith.constant 0 : index
    %7 = vector.load %arg11[%c17, %c0, %c0_5] : memref<18x32x128xf32, #tpu.memory_space<vmem>>, vector<1x32x128xf32>
    tpu.vector_store %arg11[%c17, %c0, %c0_5], %6 {strides = array<i32>} : memref<18x32x128xf32, #tpu.memory_space<vmem>>, vector<1x32x128xf32>,
    %c0_i32_6 = arith.constant 0 : i32
    %c0_i32_7 = arith.constant 0 : i32
    %c0_i32_8 = arith.constant 0 : i32
    %8 = tpu.memref_slice %arg2[%arg0, %0, %c0_i32_7, %c0_i32_8] : memref<2x18x32x128xf32, #tpu.memory_space<any>> -> memref<1x17x32x128xf32, #tpu.memory_space<any>>
    %9 = tpu.memref_squeeze %8 : memref<1x17x32x128xf32, #tpu.memory_space<any>> -> memref<17x32x128xf32, #tpu.memory_space<any>>
    %c0_i32_9 = arith.constant 0 : i32
    %c0_i32_10 = arith.constant 0 : i32
    %c0_i32_11 = arith.constant 0 : i32
    %10 = tpu.memref_slice %arg11[%c0_i32_9, %c0_i32_10, %c0_i32_11] : memref<18x32x128xf32, #tpu.memory_space<vmem>> -> memref<17x32x128xf32, #tpu.memory_space<vmem>>
    %11 = tpu.memref_slice %arg13[%c0_i32_6] : memref<1x!tpu.dma_semaphore, #tpu.memory_space<semaphore_mem>> -> memref<1x!tpu.dma_semaphore, #tpu.memory_space<semaphore_mem>>
    %12 = tpu.memref_squeeze %11 : memref<1x!tpu.dma_semaphore, #tpu.memory_space<semaphore_mem>> -> memref<!tpu.dma_semaphore, #tpu.memory_space<semaphore_mem>>
    tpu.wait_dma2 semaphore(%12 : memref<!tpu.dma_semaphore, #tpu.memory_space<semaphore_mem>>) src(%9 : memref<17x32x128xf32, #tpu.memory_space<any>>) dst(%10 : memref<17x32x128xf32, #tpu.memory_space<vmem>>)
    %c0_12 = arith.constant 0 : index
    %c0_13 = arith.constant 0 : index
    %13 = vector.load %arg4[%c0_12, %c0_13] : memref<1x128xf32, #tpu.memory_space<vmem>>, vector<1x128xf32>
    %14 = vector.shape_cast %13 : vector<1x128xf32> to vector<128xf32>
    %c0_14 = arith.constant 0 : index
    %c0_15 = arith.constant 0 : index
    %15 = vector.load %arg5[%c0_14, %c0_15] : memref<1x128xf32, #tpu.memory_space<vmem>>, vector<1x128xf32>
    %16 = vector.shape_cast %15 : vector<1x128xf32> to vector<128xf32>
    %c0_16 = arith.constant 0 : index
    %c0_17 = arith.constant 0 : index
    %c0_18 = arith.constant 0 : index
    %17 = tpu.strided_load %arg11[%c0_16, %c0_17, %c0_18] {strides = array<i32: 2, 2, 1>} : memref<18x32x128xf32, #tpu.memory_space<vmem>>, vector<9x16x128xf32>
    %18 = vector.shape_cast %14 : vector<128xf32> to vector<1x1x128xf32>
    %19 = vector.broadcast %18 : vector<1x1x128xf32> to vector<9x16x128xf32>
    %20 = arith.mulf %17, %19 : vector<9x16x128xf32>
    %21 = vector.shape_cast %16 : vector<128xf32> to vector<1x1x128xf32>
    %22 = vector.broadcast %21 : vector<1x1x128xf32> to vector<9x16x128xf32>
    %23 = arith.addf %20, %22 : vector<9x16x128xf32>
    %cst_19 = arith.constant 0.000000e+00 : f32
    %24 = vector.broadcast %cst_19 : f32 to vector<9x16x128xf32>
    %25 = arith.maximumf %23, %24 : vector<9x16x128xf32>
    %26 = tpu.iota {dimensions = array<i32: 0>} : vector<9x16x1xi32>
    %c2_i32 = arith.constant 2 : i32
    %27 = vector.broadcast %c2_i32 : i32 to vector<9x16x1xi32>
    %28 = arith.muli %26, %27 : vector<9x16x1xi32>
    %c0_i32_20 = arith.constant 0 : i32
    %29 = arith.addi %0, %c0_i32_20 : i32
    %30 = vector.broadcast %29 : i32 to vector<9x16x1xi32>
    %31 = arith.addi %28, %30 : vector<9x16x1xi32>
    %32 = tpu.iota {dimensions = array<i32: 1>} : vector<9x16x1xi32>
    %c2_i32_21 = arith.constant 2 : i32
    %33 = vector.broadcast %c2_i32_21 : i32 to vector<9x16x1xi32>
    %34 = arith.muli %32, %33 : vector<9x16x1xi32>
    %c0_i32_22 = arith.constant 0 : i32
    %35 = vector.broadcast %c0_i32_22 : i32 to vector<9x16x1xi32>
    %36 = arith.addi %34, %35 : vector<9x16x1xi32>
    %c1_i32 = arith.constant 1 : i32
    %37 = vector.broadcast %c1_i32 : i32 to vector<9x16x1xi32>
    %38 = arith.cmpi sge, %31, %37 : vector<9x16x1xi32>
    %c16_i32_23 = arith.constant 16 : i32
    %39 = vector.broadcast %c16_i32_23 : i32 to vector<9x16x1xi32>
    %40 = arith.cmpi sle, %31, %39 : vector<9x16x1xi32>
    %41 = arith.andi %38, %40 : vector<9x16x1xi1>
    %c1_i32_24 = arith.constant 1 : i32
    %42 = vector.broadcast %c1_i32_24 : i32 to vector<9x16x1xi32>
    %43 = arith.cmpi sge, %36, %42 : vector<9x16x1xi32>
    %44 = arith.andi %41, %43 : vector<9x16x1xi1>
    %c16_i32_25 = arith.constant 16 : i32
    %45 = vector.broadcast %c16_i32_25 : i32 to vector<9x16x1xi32>
    %46 = arith.cmpi sle, %36, %45 : vector<9x16x1xi32>
    %47 = arith.andi %44, %46 : vector<9x16x1xi1>
    %cst_26 = arith.constant 0.000000e+00 : f32
    %48 = vector.shape_cast %47 : vector<9x16x1xi1> to vector<9x16x1xi1>
    %49 = vector.broadcast %48 : vector<9x16x1xi1> to vector<9x16x128xi1>
    %50 = vector.broadcast %cst_26 : f32 to vector<9x16x128xf32>
    %51 = arith.select %49, %25, %50 : vector<9x16x128xi1>, vector<9x16x128xf32>
    %52 = vector.shape_cast %51 : vector<9x16x128xf32> to vector<144x128xf32>
    %53 = arith.truncf %52 : vector<144x128xf32> to vector<144x128xbf16>
    %c0_27 = arith.constant 0 : index
    %c0_28 = arith.constant 0 : index
    %54 = vector.load %arg12[%c0_27, %c0_28] : memref<608x128xbf16, #tpu.memory_space<vmem>>, vector<144x128xbf16>
    tpu.vector_store %arg12[%c0_27, %c0_28], %53 {strides = array<i32>} : memref<608x128xbf16, #tpu.memory_space<vmem>>, vector<144x128xbf16>,
    %cst_29 = arith.constant 0.000000e+00 : bf16
    %55 = vector.broadcast %cst_29 : bf16 to vector<8x128xbf16>
    %c144 = arith.constant 144 : index
    %c0_30 = arith.constant 0 : index
    %56 = vector.load %arg12[%c144, %c0_30] : memref<608x128xbf16, #tpu.memory_space<vmem>>, vector<8x128xbf16>
    tpu.vector_store %arg12[%c144, %c0_30], %55 {strides = array<i32>} : memref<608x128xbf16, #tpu.memory_space<vmem>>, vector<8x128xbf16>,
    %c0_31 = arith.constant 0 : index
    %c1 = arith.constant 1 : index
    %c0_32 = arith.constant 0 : index
    %57 = tpu.strided_load %arg11[%c0_31, %c1, %c0_32] {strides = array<i32: 2, 2, 1>} : memref<18x32x128xf32, #tpu.memory_space<vmem>>, vector<9x16x128xf32>
    %58 = vector.shape_cast %14 : vector<128xf32> to vector<1x1x128xf32>
    %59 = vector.broadcast %58 : vector<1x1x128xf32> to vector<9x16x128xf32>
    %60 = arith.mulf %57, %59 : vector<9x16x128xf32>
    %61 = vector.shape_cast %16 : vector<128xf32> to vector<1x1x128xf32>
    %62 = vector.broadcast %61 : vector<1x1x128xf32> to vector<9x16x128xf32>
    %63 = arith.addf %60, %62 : vector<9x16x128xf32>
    %cst_33 = arith.constant 0.000000e+00 : f32
    %64 = vector.broadcast %cst_33 : f32 to vector<9x16x128xf32>
    %65 = arith.maximumf %63, %64 : vector<9x16x128xf32>
    %66 = tpu.iota {dimensions = array<i32: 0>} : vector<9x16x1xi32>
    %c2_i32_34 = arith.constant 2 : i32
    %67 = vector.broadcast %c2_i32_34 : i32 to vector<9x16x1xi32>
    %68 = arith.muli %66, %67 : vector<9x16x1xi32>
    %c0_i32_35 = arith.constant 0 : i32
    %69 = arith.addi %0, %c0_i32_35 : i32
    %70 = vector.broadcast %69 : i32 to vector<9x16x1xi32>
    %71 = arith.addi %68, %70 : vector<9x16x1xi32>
    %72 = tpu.iota {dimensions = array<i32: 1>} : vector<9x16x1xi32>
    %c2_i32_36 = arith.constant 2 : i32
    %73 = vector.broadcast %c2_i32_36 : i32 to vector<9x16x1xi32>
    %74 = arith.muli %72, %73 : vector<9x16x1xi32>
    %c1_i32_37 = arith.constant 1 : i32
    %75 = vector.broadcast %c1_i32_37 : i32 to vector<9x16x1xi32>
    %76 = arith.addi %74, %75 : vector<9x16x1xi32>
    %c1_i32_38 = arith.constant 1 : i32
    %77 = vector.broadcast %c1_i32_38 : i32 to vector<9x16x1xi32>
    %78 = arith.cmpi sge, %71, %77 : vector<9x16x1xi32>
    %c16_i32_39 = arith.constant 16 : i32
    %79 = vector.broadcast %c16_i32_39 : i32 to vector<9x16x1xi32>
    %80 = arith.cmpi sle, %71, %79 : vector<9x16x1xi32>
    %81 = arith.andi %78, %80 : vector<9x16x1xi1>
    %c1_i32_40 = arith.constant 1 : i32
    %82 = vector.broadcast %c1_i32_40 : i32 to vector<9x16x1xi32>
    %83 = arith.cmpi sge, %76, %82 : vector<9x16x1xi32>
    %84 = arith.andi %81, %83 : vector<9x16x1xi1>
    %c16_i32_41 = arith.constant 16 : i32
    %85 = vector.broadcast %c16_i32_41 : i32 to vector<9x16x1xi32>
    %86 = arith.cmpi sle, %76, %85 : vector<9x16x1xi32>
    %87 = arith.andi %84, %86 : vector<9x16x1xi1>
    %cst_42 = arith.constant 0.000000e+00 : f32
    %88 = vector.shape_cast %87 : vector<9x16x1xi1> to vector<9x16x1xi1>
    %89 = vector.broadcast %88 : vector<9x16x1xi1> to vector<9x16x128xi1>
    %90 = vector.broadcast %cst_42 : f32 to vector<9x16x128xf32>
    %91 = arith.select %89, %65, %90 : vector<9x16x128xi1>, vector<9x16x128xf32>
    %92 = vector.shape_cast %91 : vector<9x16x128xf32> to vector<144x128xf32>
    %93 = arith.truncf %92 : vector<144x128xf32> to vector<144x128xbf16>
    %c152 = arith.constant 152 : index
    %c0_43 = arith.constant 0 : index
    %94 = vector.load %arg12[%c152, %c0_43] : memref<608x128xbf16, #tpu.memory_space<vmem>>, vector<144x128xbf16>
    tpu.vector_store %arg12[%c152, %c0_43], %93 {strides = array<i32>} : memref<608x128xbf16, #tpu.memory_space<vmem>>, vector<144x128xbf16>,
    %cst_44 = arith.constant 0.000000e+00 : bf16
    %95 = vector.broadcast %cst_44 : bf16 to vector<8x128xbf16>
    %c296 = arith.constant 296 : index
    %c0_45 = arith.constant 0 : index
    %96 = vector.load %arg12[%c296, %c0_45] : memref<608x128xbf16, #tpu.memory_space<vmem>>, vector<8x128xbf16>
    tpu.vector_store %arg12[%c296, %c0_45], %95 {strides = array<i32>} : memref<608x128xbf16, #tpu.memory_space<vmem>>, vector<8x128xbf16>,
    %c1_46 = arith.constant 1 : index
    %c0_47 = arith.constant 0 : index
    %c0_48 = arith.constant 0 : index
    %97 = tpu.strided_load %arg11[%c1_46, %c0_47, %c0_48] {strides = array<i32: 2, 2, 1>} : memref<18x32x128xf32, #tpu.memory_space<vmem>>, vector<9x16x128xf32>
    %98 = vector.shape_cast %14 : vector<128xf32> to vector<1x1x128xf32>
    %99 = vector.broadcast %98 : vector<1x1x128xf32> to vector<9x16x128xf32>
    %100 = arith.mulf %97, %99 : vector<9x16x128xf32>
    %101 = vector.shape_cast %16 : vector<128xf32> to vector<1x1x128xf32>
    %102 = vector.broadcast %101 : vector<1x1x128xf32> to vector<9x16x128xf32>
    %103 = arith.addf %100, %102 : vector<9x16x128xf32>
    %cst_49 = arith.constant 0.000000e+00 : f32
    %104 = vector.broadcast %cst_49 : f32 to vector<9x16x128xf32>
    %105 = arith.maximumf %103, %104 : vector<9x16x128xf32>
    %106 = tpu.iota {dimensions = array<i32: 0>} : vector<9x16x1xi32>
    %c2_i32_50 = arith.constant 2 : i32
    %107 = vector.broadcast %c2_i32_50 : i32 to vector<9x16x1xi32>
    %108 = arith.muli %106, %107 : vector<9x16x1xi32>
    %c1_i32_51 = arith.constant 1 : i32
    %109 = arith.addi %0, %c1_i32_51 : i32
    %110 = vector.broadcast %109 : i32 to vector<9x16x1xi32>
    %111 = arith.addi %108, %110 : vector<9x16x1xi32>
    %112 = tpu.iota {dimensions = array<i32: 1>} : vector<9x16x1xi32>
    %c2_i32_52 = arith.constant 2 : i32
    %113 = vector.broadcast %c2_i32_52 : i32 to vector<9x16x1xi32>
    %114 = arith.muli %112, %113 : vector<9x16x1xi32>
    %c0_i32_53 = arith.constant 0 : i32
    %115 = vector.broadcast %c0_i32_53 : i32 to vector<9x16x1xi32>
    %116 = arith.addi %114, %115 : vector<9x16x1xi32>
    %c1_i32_54 = arith.constant 1 : i32
    %117 = vector.broadcast %c1_i32_54 : i32 to vector<9x16x1xi32>
    %118 = arith.cmpi sge, %111, %117 : vector<9x16x1xi32>
    %c16_i32_55 = arith.constant 16 : i32
    %119 = vector.broadcast %c16_i32_55 : i32 to vector<9x16x1xi32>
    %120 = arith.cmpi sle, %111, %119 : vector<9x16x1xi32>
    %121 = arith.andi %118, %120 : vector<9x16x1xi1>
    %c1_i32_56 = arith.constant 1 : i32
    %122 = vector.broadcast %c1_i32_56 : i32 to vector<9x16x1xi32>
    %123 = arith.cmpi sge, %116, %122 : vector<9x16x1xi32>
    %124 = arith.andi %121, %123 : vector<9x16x1xi1>
    %c16_i32_57 = arith.constant 16 : i32
    %125 = vector.broadcast %c16_i32_57 : i32 to vector<9x16x1xi32>
    %126 = arith.cmpi sle, %116, %125 : vector<9x16x1xi32>
    %127 = arith.andi %124, %126 : vector<9x16x1xi1>
    %cst_58 = arith.constant 0.000000e+00 : f32
    %128 = vector.shape_cast %127 : vector<9x16x1xi1> to vector<9x16x1xi1>
    %129 = vector.broadcast %128 : vector<9x16x1xi1> to vector<9x16x128xi1>
    %130 = vector.broadcast %cst_58 : f32 to vector<9x16x128xf32>
    %131 = arith.select %129, %105, %130 : vector<9x16x128xi1>, vector<9x16x128xf32>
    %132 = vector.shape_cast %131 : vector<9x16x128xf32> to vector<144x128xf32>
    %133 = arith.truncf %132 : vector<144x128xf32> to vector<144x128xbf16>
    %c304 = arith.constant 304 : index
    %c0_59 = arith.constant 0 : index
    %134 = vector.load %arg12[%c304, %c0_59] : memref<608x128xbf16, #tpu.memory_space<vmem>>, vector<144x128xbf16>
    tpu.vector_store %arg12[%c304, %c0_59], %133 {strides = array<i32>} : memref<608x128xbf16, #tpu.memory_space<vmem>>, vector<144x128xbf16>,
    %cst_60 = arith.constant 0.000000e+00 : bf16
    %135 = vector.broadcast %cst_60 : bf16 to vector<8x128xbf16>
    %c448 = arith.constant 448 : index
    %c0_61 = arith.constant 0 : index
    %136 = vector.load %arg12[%c448, %c0_61] : memref<608x128xbf16, #tpu.memory_space<vmem>>, vector<8x128xbf16>
    tpu.vector_store %arg12[%c448, %c0_61], %135 {strides = array<i32>} : memref<608x128xbf16, #tpu.memory_space<vmem>>, vector<8x128xbf16>,
    %c1_62 = arith.constant 1 : index
    %c1_63 = arith.constant 1 : index
    %c0_64 = arith.constant 0 : index
    %137 = tpu.strided_load %arg11[%c1_62, %c1_63, %c0_64] {strides = array<i32: 2, 2, 1>} : memref<18x32x128xf32, #tpu.memory_space<vmem>>, vector<9x16x128xf32>
    %138 = vector.shape_cast %14 : vector<128xf32> to vector<1x1x128xf32>
    %139 = vector.broadcast %138 : vector<1x1x128xf32> to vector<9x16x128xf32>
    %140 = arith.mulf %137, %139 : vector<9x16x128xf32>
    %141 = vector.shape_cast %16 : vector<128xf32> to vector<1x1x128xf32>
    %142 = vector.broadcast %141 : vector<1x1x128xf32> to vector<9x16x128xf32>
    %143 = arith.addf %140, %142 : vector<9x16x128xf32>
    %cst_65 = arith.constant 0.000000e+00 : f32
    %144 = vector.broadcast %cst_65 : f32 to vector<9x16x128xf32>
    %145 = arith.maximumf %143, %144 : vector<9x16x128xf32>
    %146 = tpu.iota {dimensions = array<i32: 0>} : vector<9x16x1xi32>
    %c2_i32_66 = arith.constant 2 : i32
    %147 = vector.broadcast %c2_i32_66 : i32 to vector<9x16x1xi32>
    %148 = arith.muli %146, %147 : vector<9x16x1xi32>
    %c1_i32_67 = arith.constant 1 : i32
    %149 = arith.addi %0, %c1_i32_67 : i32
    %150 = vector.broadcast %149 : i32 to vector<9x16x1xi32>
    %151 = arith.addi %148, %150 : vector<9x16x1xi32>
    %152 = tpu.iota {dimensions = array<i32: 1>} : vector<9x16x1xi32>
    %c2_i32_68 = arith.constant 2 : i32
    %153 = vector.broadcast %c2_i32_68 : i32 to vector<9x16x1xi32>
    %154 = arith.muli %152, %153 : vector<9x16x1xi32>
    %c1_i32_69 = arith.constant 1 : i32
    %155 = vector.broadcast %c1_i32_69 : i32 to vector<9x16x1xi32>
    %156 = arith.addi %154, %155 : vector<9x16x1xi32>
    %c1_i32_70 = arith.constant 1 : i32
    %157 = vector.broadcast %c1_i32_70 : i32 to vector<9x16x1xi32>
    %158 = arith.cmpi sge, %151, %157 : vector<9x16x1xi32>
    %c16_i32_71 = arith.constant 16 : i32
    %159 = vector.broadcast %c16_i32_71 : i32 to vector<9x16x1xi32>
    %160 = arith.cmpi sle, %151, %159 : vector<9x16x1xi32>
    %161 = arith.andi %158, %160 : vector<9x16x1xi1>
    %c1_i32_72 = arith.constant 1 : i32
    %162 = vector.broadcast %c1_i32_72 : i32 to vector<9x16x1xi32>
    %163 = arith.cmpi sge, %156, %162 : vector<9x16x1xi32>
    %164 = arith.andi %161, %163 : vector<9x16x1xi1>
    %c16_i32_73 = arith.constant 16 : i32
    %165 = vector.broadcast %c16_i32_73 : i32 to vector<9x16x1xi32>
    %166 = arith.cmpi sle, %156, %165 : vector<9x16x1xi32>
    %167 = arith.andi %164, %166 : vector<9x16x1xi1>
    %cst_74 = arith.constant 0.000000e+00 : f32
    %168 = vector.shape_cast %167 : vector<9x16x1xi1> to vector<9x16x1xi1>
    %169 = vector.broadcast %168 : vector<9x16x1xi1> to vector<9x16x128xi1>
    %170 = vector.broadcast %cst_74 : f32 to vector<9x16x128xf32>
    %171 = arith.select %169, %145, %170 : vector<9x16x128xi1>, vector<9x16x128xf32>
    %172 = vector.shape_cast %171 : vector<9x16x128xf32> to vector<144x128xf32>
    %173 = arith.truncf %172 : vector<144x128xf32> to vector<144x128xbf16>
    %c456 = arith.constant 456 : index
    %c0_75 = arith.constant 0 : index
    %174 = vector.load %arg12[%c456, %c0_75] : memref<608x128xbf16, #tpu.memory_space<vmem>>, vector<144x128xbf16>
    tpu.vector_store %arg12[%c456, %c0_75], %173 {strides = array<i32>} : memref<608x128xbf16, #tpu.memory_space<vmem>>, vector<144x128xbf16>,
    %cst_76 = arith.constant 0.000000e+00 : bf16
    %175 = vector.broadcast %cst_76 : bf16 to vector<8x128xbf16>
    %c600 = arith.constant 600 : index
    %c0_77 = arith.constant 0 : index
    %176 = vector.load %arg12[%c600, %c0_77] : memref<608x128xbf16, #tpu.memory_space<vmem>>, vector<8x128xbf16>
    tpu.vector_store %arg12[%c600, %c0_77], %175 {strides = array<i32>} : memref<608x128xbf16, #tpu.memory_space<vmem>>, vector<8x128xbf16>,
    %cst_78 = arith.constant 0.000000e+00 : f32
    %177 = vector.broadcast %cst_78 : f32 to vector<128x128xf32>
    %c0_79 = arith.constant 0 : index
    %c0_80 = arith.constant 0 : index
    %178 = vector.load %arg12[%c0_79, %c0_80] : memref<608x128xbf16, #tpu.memory_space<vmem>>, vector<128x128xbf16>
    %c0_81 = arith.constant 0 : index
    %c0_82 = arith.constant 0 : index
    %c0_83 = arith.constant 0 : index
    %179 = vector.load %arg3[%c0_81, %c0_82, %c0_83] : memref<9x128x128xbf16, #tpu.memory_space<vmem>>, vector<1x128x128xbf16>
    %180 = vector.shape_cast %179 : vector<1x128x128xbf16> to vector<128x128xbf16>
    %cst_84 = arith.constant dense<0.000000e+00> : vector<128x128xf32>
    %181 = tpu.matmul %178, %180, %cst_84 {dimension_numbers = #tpu.dot_dimension_numbers<[1], [0], [0], [1], [0, 0, 1, 1], [], []>} : vector<128x128xbf16>, vector<128x128xbf16>, vector<128x128xf32> -> vector<128x128xf32>
    %182 = arith.addf %177, %181 : vector<128x128xf32>
    %c152_85 = arith.constant 152 : index
    %c0_86 = arith.constant 0 : index
    %183 = vector.load %arg12[%c152_85, %c0_86] : memref<608x128xbf16, #tpu.memory_space<vmem>>, vector<128x128xbf16>
    %c1_87 = arith.constant 1 : index
    %c0_88 = arith.constant 0 : index
    %c0_89 = arith.constant 0 : index
    %184 = vector.load %arg3[%c1_87, %c0_88, %c0_89] : memref<9x128x128xbf16, #tpu.memory_space<vmem>>, vector<1x128x128xbf16>
    %185 = vector.shape_cast %184 : vector<1x128x128xbf16> to vector<128x128xbf16>
    %cst_90 = arith.constant dense<0.000000e+00> : vector<128x128xf32>
    %186 = tpu.matmul %183, %185, %cst_90 {dimension_numbers = #tpu.dot_dimension_numbers<[1], [0], [0], [1], [0, 0, 1, 1], [], []>} : vector<128x128xbf16>, vector<128x128xbf16>, vector<128x128xf32> -> vector<128x128xf32>
    %187 = arith.addf %182, %186 : vector<128x128xf32>
    %c1_91 = arith.constant 1 : index
    %c0_92 = arith.constant 0 : index
    %188 = vector.load %arg12[%c1_91, %c0_92] : memref<608x128xbf16, #tpu.memory_space<vmem>>, vector<128x128xbf16>
    %c2 = arith.constant 2 : index
    %c0_93 = arith.constant 0 : index
    %c0_94 = arith.constant 0 : index
    %189 = vector.load %arg3[%c2, %c0_93, %c0_94] : memref<9x128x128xbf16, #tpu.memory_space<vmem>>, vector<1x128x128xbf16>
    %190 = vector.shape_cast %189 : vector<1x128x128xbf16> to vector<128x128xbf16>
    %cst_95 = arith.constant dense<0.000000e+00> : vector<128x128xf32>
    %191 = tpu.matmul %188, %190, %cst_95 {dimension_numbers = #tpu.dot_dimension_numbers<[1], [0], [0], [1], [0, 0, 1, 1], [], []>} : vector<128x128xbf16>, vector<128x128xbf16>, vector<128x128xf32> -> vector<128x128xf32>
    %192 = arith.addf %187, %191 : vector<128x128xf32>
    %c304_96 = arith.constant 304 : index
    %c0_97 = arith.constant 0 : index
    %193 = vector.load %arg12[%c304_96, %c0_97] : memref<608x128xbf16, #tpu.memory_space<vmem>>, vector<128x128xbf16>
    %c3 = arith.constant 3 : index
    %c0_98 = arith.constant 0 : index
    %c0_99 = arith.constant 0 : index
    %194 = vector.load %arg3[%c3, %c0_98, %c0_99] : memref<9x128x128xbf16, #tpu.memory_space<vmem>>, vector<1x128x128xbf16>
    %195 = vector.shape_cast %194 : vector<1x128x128xbf16> to vector<128x128xbf16>
    %cst_100 = arith.constant dense<0.000000e+00> : vector<128x128xf32>
    %196 = tpu.matmul %193, %195, %cst_100 {dimension_numbers = #tpu.dot_dimension_numbers<[1], [0], [0], [1], [0, 0, 1, 1], [], []>} : vector<128x128xbf16>, vector<128x128xbf16>, vector<128x128xf32> -> vector<128x128xf32>
    %197 = arith.addf %192, %196 : vector<128x128xf32>
    %c456_101 = arith.constant 456 : index
    %c0_102 = arith.constant 0 : index
    %198 = vector.load %arg12[%c456_101, %c0_102] : memref<608x128xbf16, #tpu.memory_space<vmem>>, vector<128x128xbf16>
    %c4 = arith.constant 4 : index
    %c0_103 = arith.constant 0 : index
    %c0_104 = arith.constant 0 : index
    %199 = vector.load %arg3[%c4, %c0_103, %c0_104] : memref<9x128x128xbf16, #tpu.memory_space<vmem>>, vector<1x128x128xbf16>
    %200 = vector.shape_cast %199 : vector<1x128x128xbf16> to vector<128x128xbf16>
    %cst_105 = arith.constant dense<0.000000e+00> : vector<128x128xf32>
    %201 = tpu.matmul %198, %200, %cst_105 {dimension_numbers = #tpu.dot_dimension_numbers<[1], [0], [0], [1], [0, 0, 1, 1], [], []>} : vector<128x128xbf16>, vector<128x128xbf16>, vector<128x128xf32> -> vector<128x128xf32>
    %202 = arith.addf %197, %201 : vector<128x128xf32>
    %c305 = arith.constant 305 : index
    %c0_106 = arith.constant 0 : index
    %203 = vector.load %arg12[%c305, %c0_106] : memref<608x128xbf16, #tpu.memory_space<vmem>>, vector<128x128xbf16>
    %c5 = arith.constant 5 : index
    %c0_107 = arith.constant 0 : index
    %c0_108 = arith.constant 0 : index
    %204 = vector.load %arg3[%c5, %c0_107, %c0_108] : memref<9x128x128xbf16, #tpu.memory_space<vmem>>, vector<1x128x128xbf16>
    %205 = vector.shape_cast %204 : vector<1x128x128xbf16> to vector<128x128xbf16>
    %cst_109 = arith.constant dense<0.000000e+00> : vector<128x128xf32>
    %206 = tpu.matmul %203, %205, %cst_109 {dimension_numbers = #tpu.dot_dimension_numbers<[1], [0], [0], [1], [0, 0, 1, 1], [], []>} : vector<128x128xbf16>, vector<128x128xbf16>, vector<128x128xf32> -> vector<128x128xf32>
    %207 = arith.addf %202, %206 : vector<128x128xf32>
    %c16 = arith.constant 16 : index
    %c0_110 = arith.constant 0 : index
    %208 = vector.load %arg12[%c16, %c0_110] : memref<608x128xbf16, #tpu.memory_space<vmem>>, vector<128x128xbf16>
    %c6 = arith.constant 6 : index
    %c0_111 = arith.constant 0 : index
    %c0_112 = arith.constant 0 : index
    %209 = vector.load %arg3[%c6, %c0_111, %c0_112] : memref<9x128x128xbf16, #tpu.memory_space<vmem>>, vector<1x128x128xbf16>
    %210 = vector.shape_cast %209 : vector<1x128x128xbf16> to vector<128x128xbf16>
    %cst_113 = arith.constant dense<0.000000e+00> : vector<128x128xf32>
    %211 = tpu.matmul %208, %210, %cst_113 {dimension_numbers = #tpu.dot_dimension_numbers<[1], [0], [0], [1], [0, 0, 1, 1], [], []>} : vector<128x128xbf16>, vector<128x128xbf16>, vector<128x128xf32> -> vector<128x128xf32>
    %212 = arith.addf %207, %211 : vector<128x128xf32>
    %c168 = arith.constant 168 : index
    %c0_114 = arith.constant 0 : index
    %213 = vector.load %arg12[%c168, %c0_114] : memref<608x128xbf16, #tpu.memory_space<vmem>>, vector<128x128xbf16>
    %c7 = arith.constant 7 : index
    %c0_115 = arith.constant 0 : index
    %c0_116 = arith.constant 0 : index
    %214 = vector.load %arg3[%c7, %c0_115, %c0_116] : memref<9x128x128xbf16, #tpu.memory_space<vmem>>, vector<1x128x128xbf16>
    %215 = vector.shape_cast %214 : vector<1x128x128xbf16> to vector<128x128xbf16>
    %cst_117 = arith.constant dense<0.000000e+00> : vector<128x128xf32>
    %216 = tpu.matmul %213, %215, %cst_117 {dimension_numbers = #tpu.dot_dimension_numbers<[1], [0], [0], [1], [0, 0, 1, 1], [], []>} : vector<128x128xbf16>, vector<128x128xbf16>, vector<128x128xf32> -> vector<128x128xf32>
    %217 = arith.addf %212, %216 : vector<128x128xf32>
    %c17_118 = arith.constant 17 : index
    %c0_119 = arith.constant 0 : index
    %218 = vector.load %arg12[%c17_118, %c0_119] : memref<608x128xbf16, #tpu.memory_space<vmem>>, vector<128x128xbf16>
    %c8 = arith.constant 8 : index
    %c0_120 = arith.constant 0 : index
    %c0_121 = arith.constant 0 : index
    %219 = vector.load %arg3[%c8, %c0_120, %c0_121] : memref<9x128x128xbf16, #tpu.memory_space<vmem>>, vector<1x128x128xbf16>
    %220 = vector.shape_cast %219 : vector<1x128x128xbf16> to vector<128x128xbf16>
    %cst_122 = arith.constant dense<0.000000e+00> : vector<128x128xf32>
    %221 = tpu.matmul %218, %220, %cst_122 {dimension_numbers = #tpu.dot_dimension_numbers<[1], [0], [0], [1], [0, 0, 1, 1], [], []>} : vector<128x128xbf16>, vector<128x128xbf16>, vector<128x128xf32> -> vector<128x128xf32>
    %222 = arith.addf %217, %221 : vector<128x128xf32>
    %c0_123 = arith.constant 0 : index
    %c0_124 = arith.constant 0 : index
    %223 = vector.load %arg6[%c0_123, %c0_124] : memref<1x128xf32, #tpu.memory_space<vmem>>, vector<1x128xf32>
    %224 = vector.shape_cast %223 : vector<1x128xf32> to vector<128xf32>
    %225 = vector.shape_cast %224 : vector<128xf32> to vector<1x128xf32>
    %226 = vector.broadcast %225 : vector<1x128xf32> to vector<128x128xf32>
    %227 = arith.mulf %222, %226 : vector<128x128xf32>
    %c0_125 = arith.constant 0 : index
    %c0_126 = arith.constant 0 : index
    %228 = vector.load %arg7[%c0_125, %c0_126] : memref<1x128xf32, #tpu.memory_space<vmem>>, vector<1x128xf32>
    %229 = vector.shape_cast %228 : vector<1x128xf32> to vector<128xf32>
    %230 = vector.shape_cast %229 : vector<128xf32> to vector<1x128xf32>
    %231 = vector.broadcast %230 : vector<1x128xf32> to vector<128x128xf32>
    %232 = arith.addf %227, %231 : vector<128x128xf32>
    %cst_127 = arith.constant 0.000000e+00 : f32
    %233 = vector.broadcast %cst_127 : f32 to vector<128x128xf32>
    %234 = arith.maximumf %232, %233 : vector<128x128xf32>
    %235 = vector.shape_cast %234 : vector<128x128xf32> to vector<8x16x128xf32>
    %236 = vector.extract_strided_slice %235 {offsets = [0, 0, 0], sizes = [8, 8, 128], strides = [1, 1, 1]} : vector<8x16x128xf32> to vector<8x8x128xf32>
    %cst_128 = arith.constant 0.000000e+00 : f32
    %237 = vector.broadcast %cst_128 : f32 to vector<8x1x128xf32>
    %cst_129 = arith.constant 0.000000e+00 : f32
    %238 = vector.broadcast %cst_129 : f32 to vector<8x7x128xf32>
    %239 = tpu.concatenate %237, %236, %238 in 1 : vector<8x1x128xf32>, vector<8x8x128xf32>, vector<8x7x128xf32> -> vector<8x16x128xf32>
    %240 = vector.shape_cast %239 : vector<8x16x128xf32> to vector<128x128xf32>
    %241 = arith.truncf %240 : vector<128x128xf32> to vector<128x128xbf16>
    %c0_130 = arith.constant 0 : index
    %c0_131 = arith.constant 0 : index
    %c0_132 = arith.constant 0 : index
    %242 = vector.load %arg9[%c0_130, %c0_131, %c0_132] : memref<1x128x128xbf16, #tpu.memory_space<vmem>>, vector<1x128x128xbf16>
    %243 = vector.shape_cast %242 : vector<1x128x128xbf16> to vector<128x128xbf16>
    %244 = vector.shape_cast %241 : vector<128x128xbf16> to vector<1x128x128xbf16>
    tpu.vector_store %arg9[%c0_130, %c0_131, %c0_132], %244 {strides = array<i32>} : memref<1x128x128xbf16, #tpu.memory_space<vmem>>, vector<1x128x128xbf16>,
    %c456_133 = arith.constant 456 : index
    %c0_134 = arith.constant 0 : index
    %245 = vector.load %arg12[%c456_133, %c0_134] : memref<608x128xbf16, #tpu.memory_space<vmem>>, vector<128x128xbf16>
    %c0_135 = arith.constant 0 : index
    %c0_136 = arith.constant 0 : index
    %246 = vector.load %arg8[%c0_135, %c0_136] : memref<128x128xbf16, #tpu.memory_space<vmem>>, vector<128x128xbf16>
    %cst_137 = arith.constant dense<0.000000e+00> : vector<128x128xf32>
    %247 = tpu.matmul %245, %246, %cst_137 {dimension_numbers = #tpu.dot_dimension_numbers<[1], [0], [0], [1], [0, 0, 1, 1], [], []>} : vector<128x128xbf16>, vector<128x128xbf16>, vector<128x128xf32> -> vector<128x128xf32>
    %248 = vector.shape_cast %247 : vector<128x128xf32> to vector<8x16x128xf32>
    %249 = vector.extract_strided_slice %248 {offsets = [0, 0, 0], sizes = [8, 8, 128], strides = [1, 1, 1]} : vector<8x16x128xf32> to vector<8x8x128xf32>
    %c0_138 = arith.constant 0 : index
    %c0_139 = arith.constant 0 : index
    %c0_140 = arith.constant 0 : index
    %c0_141 = arith.constant 0 : index
    %250 = vector.load %arg10[%c0_138, %c0_139, %c0_140, %c0_141] : memref<1x8x8x128xf32, #tpu.memory_space<vmem>>, vector<1x8x8x128xf32>
    %251 = vector.shape_cast %250 : vector<1x8x8x128xf32> to vector<8x8x128xf32>
    %252 = vector.shape_cast %249 : vector<8x8x128xf32> to vector<1x8x8x128xf32>
    tpu.vector_store %arg10[%c0_138, %c0_139, %c0_140, %c0_141], %252 {strides = array<i32>} : memref<1x8x8x128xf32, #tpu.memory_space<vmem>>, vector<1x8x8x128xf32>,
    return
  }
  func.func @transform_1(%arg0: i32, %arg1: i32) -> (i32, i32, i32) {
    %c0_i32 = arith.constant 0 : i32
    %c0_i32_0 = arith.constant 0 : i32
    %c0_i32_1 = arith.constant 0 : i32
    %c0_i32_2 = arith.constant 0 : i32
    return %c0_i32, %c0_i32_0, %c0_i32_1 : i32, i32, i32
  }
  func.func @transform_2(%arg0: i32, %arg1: i32) -> (i32, i32) {
    %c0_i32 = arith.constant 0 : i32
    %c0_i32_0 = arith.constant 0 : i32
    %c0_i32_1 = arith.constant 0 : i32
    return %c0_i32, %c0_i32_0 : i32, i32
  }
  func.func @transform_3(%arg0: i32, %arg1: i32) -> (i32, i32) {
    %c0_i32 = arith.constant 0 : i32
    %c0_i32_0 = arith.constant 0 : i32
    %c0_i32_1 = arith.constant 0 : i32
    return %c0_i32, %c0_i32_0 : i32, i32
  }
  func.func @transform_4(%arg0: i32, %arg1: i32) -> (i32, i32) {
    %c0_i32 = arith.constant 0 : i32
    %c0_i32_0 = arith.constant 0 : i32
    %c0_i32_1 = arith.constant 0 : i32
    return %c0_i32, %c0_i32_0 : i32, i32
  }
  func.func @transform_5(%arg0: i32, %arg1: i32) -> (i32, i32) {
    %c0_i32 = arith.constant 0 : i32
    %c0_i32_0 = arith.constant 0 : i32
    %c0_i32_1 = arith.constant 0 : i32
    return %c0_i32, %c0_i32_0 : i32, i32
  }
  func.func @transform_6(%arg0: i32, %arg1: i32) -> (i32, i32) {
    %c0_i32 = arith.constant 0 : i32
    %c0_i32_0 = arith.constant 0 : i32
    %c0_i32_1 = arith.constant 0 : i32
    return %c0_i32, %c0_i32_0 : i32, i32
  }
  func.func @transform_7(%arg0: i32, %arg1: i32) -> (i32, i32, i32) {
    %c0_i32 = arith.constant 0 : i32
    %c0_i32_0 = arith.constant 0 : i32
    return %arg0, %arg1, %c0_i32 : i32, i32, i32
  }
  func.func @transform_8(%arg0: i32, %arg1: i32) -> (i32, i32, i32, i32) {
    %c0_i32 = arith.constant 0 : i32
    %c0_i32_0 = arith.constant 0 : i32
    %c0_i32_1 = arith.constant 0 : i32
    return %arg0, %arg1, %c0_i32, %c0_i32_0 : i32, i32, i32, i32
  }
}

module attributes {stable_mosaic.version = 11 : i64} {
  func.func @kernel(%arg0: i32, %arg1: i32, %arg2: memref<2x128x128xbf16, #tpu.memory_space<any>>, %arg3: memref<1x8x8x128xf32, #tpu.memory_space<vmem>>, %arg4: memref<9x128x128xbf16, #tpu.memory_space<vmem>>, %arg5: memref<1x8x8x128xf32, #tpu.memory_space<vmem>>, %arg6: memref<168x128xbf16, #tpu.memory_space<vmem>>, %arg7: memref<3x!tpu.dma_semaphore, #tpu.memory_space<semaphore_mem>>) attributes {dimension_semantics = [#tpu.dimension_semantics<parallel>, #tpu.dimension_semantics<parallel>], iteration_bounds = array<i64: 2, 1>, scalar_prefetch = 0 : i64, scratch_operands = 2 : i64, tpu.core_type = #tpu.core_type<tc>, window_params = [{}, {transform_indices = @transform_1, window_bounds = array<i64: 1, 8, 8, 128>}, {pipeline_mode = #tpu.pipeline_mode<synchronous>, transform_indices = @transform_2, window_bounds = array<i64: 9, 128, 128>}, {transform_indices = @transform_3, window_bounds = array<i64: 1, 8, 8, 128>}]} {
    %c8_i32 = arith.constant 8 : i32
    %0 = arith.muli %arg1, %c8_i32 : i32
    %c16_i32 = arith.constant 16 : i32
    %1 = arith.muli %0, %c16_i32 : i32
    %c0_i32 = arith.constant 0 : i32
    %c0_i32_0 = arith.constant 0 : i32
    %2 = tpu.memref_slice %arg2[%arg0, %1, %c0_i32_0] : memref<2x128x128xbf16, #tpu.memory_space<any>> -> memref<1x128x128xbf16, #tpu.memory_space<any>>
    %3 = tpu.memref_squeeze %2 : memref<1x128x128xbf16, #tpu.memory_space<any>> -> memref<128x128xbf16, #tpu.memory_space<any>>
    %c16_i32_1 = arith.constant 16 : i32
    %c0_i32_2 = arith.constant 0 : i32
    %4 = tpu.memref_slice %arg6[%c16_i32_1, %c0_i32_2] : memref<168x128xbf16, #tpu.memory_space<vmem>> -> memref<128x128xbf16, #tpu.memory_space<vmem>>
    %5 = tpu.memref_slice %arg7[%c0_i32] : memref<3x!tpu.dma_semaphore, #tpu.memory_space<semaphore_mem>> -> memref<1x!tpu.dma_semaphore, #tpu.memory_space<semaphore_mem>>
    %6 = tpu.memref_squeeze %5 : memref<1x!tpu.dma_semaphore, #tpu.memory_space<semaphore_mem>> -> memref<!tpu.dma_semaphore, #tpu.memory_space<semaphore_mem>>
    tpu.enqueue_dma source(%3 : memref<128x128xbf16, #tpu.memory_space<any>>) target(%4 : memref<128x128xbf16, #tpu.memory_space<vmem>>) target_semaphore(%6 : memref<!tpu.dma_semaphore, #tpu.memory_space<semaphore_mem>>)
    %c1_i32 = arith.constant 1 : i32
    %7 = arith.subi %0, %c1_i32 : i32
    %c0_i32_3 = arith.constant 0 : i32
    %8 = arith.maxsi %7, %c0_i32_3 : i32
    %c16_i32_4 = arith.constant 16 : i32
    %9 = arith.muli %8, %c16_i32_4 : i32
    %c1_i32_5 = arith.constant 1 : i32
    %c0_i32_6 = arith.constant 0 : i32
    %10 = tpu.memref_slice %arg2[%arg0, %9, %c0_i32_6] : memref<2x128x128xbf16, #tpu.memory_space<any>> -> memref<1x16x128xbf16, #tpu.memory_space<any>>
    %11 = tpu.memref_squeeze %10 : memref<1x16x128xbf16, #tpu.memory_space<any>> -> memref<16x128xbf16, #tpu.memory_space<any>>
    %c0_i32_7 = arith.constant 0 : i32
    %c0_i32_8 = arith.constant 0 : i32
    %12 = tpu.memref_slice %arg6[%c0_i32_7, %c0_i32_8] : memref<168x128xbf16, #tpu.memory_space<vmem>> -> memref<16x128xbf16, #tpu.memory_space<vmem>>
    %13 = tpu.memref_slice %arg7[%c1_i32_5] : memref<3x!tpu.dma_semaphore, #tpu.memory_space<semaphore_mem>> -> memref<1x!tpu.dma_semaphore, #tpu.memory_space<semaphore_mem>>
    %14 = tpu.memref_squeeze %13 : memref<1x!tpu.dma_semaphore, #tpu.memory_space<semaphore_mem>> -> memref<!tpu.dma_semaphore, #tpu.memory_space<semaphore_mem>>
    tpu.enqueue_dma source(%11 : memref<16x128xbf16, #tpu.memory_space<any>>) target(%12 : memref<16x128xbf16, #tpu.memory_space<vmem>>) target_semaphore(%14 : memref<!tpu.dma_semaphore, #tpu.memory_space<semaphore_mem>>)
    %c8_i32_9 = arith.constant 8 : i32
    %15 = arith.addi %0, %c8_i32_9 : i32
    %c7_i32 = arith.constant 7 : i32
    %16 = arith.minsi %15, %c7_i32 : i32
    %c16_i32_10 = arith.constant 16 : i32
    %17 = arith.muli %16, %c16_i32_10 : i32
    %c2_i32 = arith.constant 2 : i32
    %c0_i32_11 = arith.constant 0 : i32
    %18 = tpu.memref_slice %arg2[%arg0, %17, %c0_i32_11] : memref<2x128x128xbf16, #tpu.memory_space<any>> -> memref<1x16x128xbf16, #tpu.memory_space<any>>
    %19 = tpu.memref_squeeze %18 : memref<1x16x128xbf16, #tpu.memory_space<any>> -> memref<16x128xbf16, #tpu.memory_space<any>>
    %c144_i32 = arith.constant 144 : i32
    %c0_i32_12 = arith.constant 0 : i32
    %20 = tpu.memref_slice %arg6[%c144_i32, %c0_i32_12] : memref<168x128xbf16, #tpu.memory_space<vmem>> -> memref<16x128xbf16, #tpu.memory_space<vmem>>
    %21 = tpu.memref_slice %arg7[%c2_i32] : memref<3x!tpu.dma_semaphore, #tpu.memory_space<semaphore_mem>> -> memref<1x!tpu.dma_semaphore, #tpu.memory_space<semaphore_mem>>
    %22 = tpu.memref_squeeze %21 : memref<1x!tpu.dma_semaphore, #tpu.memory_space<semaphore_mem>> -> memref<!tpu.dma_semaphore, #tpu.memory_space<semaphore_mem>>
    tpu.enqueue_dma source(%19 : memref<16x128xbf16, #tpu.memory_space<any>>) target(%20 : memref<16x128xbf16, #tpu.memory_space<vmem>>) target_semaphore(%22 : memref<!tpu.dma_semaphore, #tpu.memory_space<semaphore_mem>>)
    %cst = arith.constant 0.000000e+00 : bf16
    %23 = vector.broadcast %cst : bf16 to vector<8x128xbf16>
    %c160 = arith.constant 160 : index
    %c0 = arith.constant 0 : index
    %24 = vector.load %arg6[%c160, %c0] : memref<168x128xbf16, #tpu.memory_space<vmem>>, vector<8x128xbf16>
    tpu.vector_store %arg6[%c160, %c0], %23 {strides = array<i32>} : memref<168x128xbf16, #tpu.memory_space<vmem>>, vector<8x128xbf16>,
    %c0_i32_13 = arith.constant 0 : i32
    %c0_i32_14 = arith.constant 0 : i32
    %25 = tpu.memref_slice %arg2[%arg0, %1, %c0_i32_14] : memref<2x128x128xbf16, #tpu.memory_space<any>> -> memref<1x128x128xbf16, #tpu.memory_space<any>>
    %26 = tpu.memref_squeeze %25 : memref<1x128x128xbf16, #tpu.memory_space<any>> -> memref<128x128xbf16, #tpu.memory_space<any>>
    %c16_i32_15 = arith.constant 16 : i32
    %c0_i32_16 = arith.constant 0 : i32
    %27 = tpu.memref_slice %arg6[%c16_i32_15, %c0_i32_16] : memref<168x128xbf16, #tpu.memory_space<vmem>> -> memref<128x128xbf16, #tpu.memory_space<vmem>>
    %28 = tpu.memref_slice %arg7[%c0_i32_13] : memref<3x!tpu.dma_semaphore, #tpu.memory_space<semaphore_mem>> -> memref<1x!tpu.dma_semaphore, #tpu.memory_space<semaphore_mem>>
    %29 = tpu.memref_squeeze %28 : memref<1x!tpu.dma_semaphore, #tpu.memory_space<semaphore_mem>> -> memref<!tpu.dma_semaphore, #tpu.memory_space<semaphore_mem>>
    tpu.wait_dma2 semaphore(%29 : memref<!tpu.dma_semaphore, #tpu.memory_space<semaphore_mem>>) src(%26 : memref<128x128xbf16, #tpu.memory_space<any>>) dst(%27 : memref<128x128xbf16, #tpu.memory_space<vmem>>)
    %c1_i32_17 = arith.constant 1 : i32
    %c0_i32_18 = arith.constant 0 : i32
    %30 = tpu.memref_slice %arg2[%arg0, %9, %c0_i32_18] : memref<2x128x128xbf16, #tpu.memory_space<any>> -> memref<1x16x128xbf16, #tpu.memory_space<any>>
    %31 = tpu.memref_squeeze %30 : memref<1x16x128xbf16, #tpu.memory_space<any>> -> memref<16x128xbf16, #tpu.memory_space<any>>
    %c0_i32_19 = arith.constant 0 : i32
    %c0_i32_20 = arith.constant 0 : i32
    %32 = tpu.memref_slice %arg6[%c0_i32_19, %c0_i32_20] : memref<168x128xbf16, #tpu.memory_space<vmem>> -> memref<16x128xbf16, #tpu.memory_space<vmem>>
    %33 = tpu.memref_slice %arg7[%c1_i32_17] : memref<3x!tpu.dma_semaphore, #tpu.memory_space<semaphore_mem>> -> memref<1x!tpu.dma_semaphore, #tpu.memory_space<semaphore_mem>>
    %34 = tpu.memref_squeeze %33 : memref<1x!tpu.dma_semaphore, #tpu.memory_space<semaphore_mem>> -> memref<!tpu.dma_semaphore, #tpu.memory_space<semaphore_mem>>
    tpu.wait_dma2 semaphore(%34 : memref<!tpu.dma_semaphore, #tpu.memory_space<semaphore_mem>>) src(%31 : memref<16x128xbf16, #tpu.memory_space<any>>) dst(%32 : memref<16x128xbf16, #tpu.memory_space<vmem>>)
    %c2_i32_21 = arith.constant 2 : i32
    %c0_i32_22 = arith.constant 0 : i32
    %35 = tpu.memref_slice %arg2[%arg0, %17, %c0_i32_22] : memref<2x128x128xbf16, #tpu.memory_space<any>> -> memref<1x16x128xbf16, #tpu.memory_space<any>>
    %36 = tpu.memref_squeeze %35 : memref<1x16x128xbf16, #tpu.memory_space<any>> -> memref<16x128xbf16, #tpu.memory_space<any>>
    %c144_i32_23 = arith.constant 144 : i32
    %c0_i32_24 = arith.constant 0 : i32
    %37 = tpu.memref_slice %arg6[%c144_i32_23, %c0_i32_24] : memref<168x128xbf16, #tpu.memory_space<vmem>> -> memref<16x128xbf16, #tpu.memory_space<vmem>>
    %38 = tpu.memref_slice %arg7[%c2_i32_21] : memref<3x!tpu.dma_semaphore, #tpu.memory_space<semaphore_mem>> -> memref<1x!tpu.dma_semaphore, #tpu.memory_space<semaphore_mem>>
    %39 = tpu.memref_squeeze %38 : memref<1x!tpu.dma_semaphore, #tpu.memory_space<semaphore_mem>> -> memref<!tpu.dma_semaphore, #tpu.memory_space<semaphore_mem>>
    tpu.wait_dma2 semaphore(%39 : memref<!tpu.dma_semaphore, #tpu.memory_space<semaphore_mem>>) src(%36 : memref<16x128xbf16, #tpu.memory_space<any>>) dst(%37 : memref<16x128xbf16, #tpu.memory_space<vmem>>)
    %c0_i32_25 = arith.constant 0 : i32
    %40 = arith.cmpi eq, %arg1, %c0_i32_25 : i32
    %41 = arith.extui %40 : i1 to i32
    %c0_i32_26 = arith.constant 0 : i32
    %42 = arith.cmpi ne, %41, %c0_i32_26 : i32
    scf.if %42 {
      %cst_78 = arith.constant 0.000000e+00 : bf16
      %100 = vector.broadcast %cst_78 : bf16 to vector<16x128xbf16>
      %c0_79 = arith.constant 0 : index
      %c0_80 = arith.constant 0 : index
      %101 = vector.load %arg6[%c0_79, %c0_80] : memref<168x128xbf16, #tpu.memory_space<vmem>>, vector<16x128xbf16>
      tpu.vector_store %arg6[%c0_79, %c0_80], %100 {strides = array<i32>} : memref<168x128xbf16, #tpu.memory_space<vmem>>, vector<16x128xbf16>,
    } else {
    }
    %c0_i32_27 = arith.constant 0 : i32
    %43 = arith.cmpi eq, %arg1, %c0_i32_27 : i32
    %44 = arith.extui %43 : i1 to i32
    %c0_i32_28 = arith.constant 0 : i32
    %45 = arith.cmpi ne, %44, %c0_i32_28 : i32
    scf.if %45 {
      %cst_78 = arith.constant 0.000000e+00 : bf16
      %100 = vector.broadcast %cst_78 : bf16 to vector<16x128xbf16>
      %c144 = arith.constant 144 : index
      %c0_79 = arith.constant 0 : index
      %101 = vector.load %arg6[%c144, %c0_79] : memref<168x128xbf16, #tpu.memory_space<vmem>>, vector<16x128xbf16>
      tpu.vector_store %arg6[%c144, %c0_79], %100 {strides = array<i32>} : memref<168x128xbf16, #tpu.memory_space<vmem>>, vector<16x128xbf16>,
    } else {
    }
    %cst_29 = arith.constant 0.000000e+00 : f32
    %46 = vector.broadcast %cst_29 : f32 to vector<128x128xf32>
    %c0_30 = arith.constant 0 : index
    %c0_31 = arith.constant 0 : index
    %47 = vector.load %arg6[%c0_30, %c0_31] : memref<168x128xbf16, #tpu.memory_space<vmem>>, vector<128x128xbf16>
    %c0_32 = arith.constant 0 : index
    %c0_33 = arith.constant 0 : index
    %c0_34 = arith.constant 0 : index
    %48 = vector.load %arg4[%c0_32, %c0_33, %c0_34] : memref<9x128x128xbf16, #tpu.memory_space<vmem>>, vector<1x128x128xbf16>
    %49 = vector.shape_cast %48 : vector<1x128x128xbf16> to vector<128x128xbf16>
    %cst_35 = arith.constant dense<0.000000e+00> : vector<128x128xf32>
    %50 = tpu.matmul %47, %49, %cst_35 {dimension_numbers = #tpu.dot_dimension_numbers<[1], [0], [0], [1], [0, 0, 1, 1], [], []>} : vector<128x128xbf16>, vector<128x128xbf16>, vector<128x128xf32> -> vector<128x128xf32>
    %51 = arith.addf %46, %50 : vector<128x128xf32>
    %c1 = arith.constant 1 : index
    %c0_36 = arith.constant 0 : index
    %52 = vector.load %arg6[%c1, %c0_36] : memref<168x128xbf16, #tpu.memory_space<vmem>>, vector<128x128xbf16>
    %c1_37 = arith.constant 1 : index
    %c0_38 = arith.constant 0 : index
    %c0_39 = arith.constant 0 : index
    %53 = vector.load %arg4[%c1_37, %c0_38, %c0_39] : memref<9x128x128xbf16, #tpu.memory_space<vmem>>, vector<1x128x128xbf16>
    %54 = vector.shape_cast %53 : vector<1x128x128xbf16> to vector<128x128xbf16>
    %cst_40 = arith.constant dense<0.000000e+00> : vector<128x128xf32>
    %55 = tpu.matmul %52, %54, %cst_40 {dimension_numbers = #tpu.dot_dimension_numbers<[1], [0], [0], [1], [0, 0, 1, 1], [], []>} : vector<128x128xbf16>, vector<128x128xbf16>, vector<128x128xf32> -> vector<128x128xf32>
    %56 = arith.addf %51, %55 : vector<128x128xf32>
    %c2 = arith.constant 2 : index
    %c0_41 = arith.constant 0 : index
    %57 = vector.load %arg6[%c2, %c0_41] : memref<168x128xbf16, #tpu.memory_space<vmem>>, vector<128x128xbf16>
    %c2_42 = arith.constant 2 : index
    %c0_43 = arith.constant 0 : index
    %c0_44 = arith.constant 0 : index
    %58 = vector.load %arg4[%c2_42, %c0_43, %c0_44] : memref<9x128x128xbf16, #tpu.memory_space<vmem>>, vector<1x128x128xbf16>
    %59 = vector.shape_cast %58 : vector<1x128x128xbf16> to vector<128x128xbf16>
    %cst_45 = arith.constant dense<0.000000e+00> : vector<128x128xf32>
    %60 = tpu.matmul %57, %59, %cst_45 {dimension_numbers = #tpu.dot_dimension_numbers<[1], [0], [0], [1], [0, 0, 1, 1], [], []>} : vector<128x128xbf16>, vector<128x128xbf16>, vector<128x128xf32> -> vector<128x128xf32>
    %61 = arith.addf %56, %60 : vector<128x128xf32>
    %c16 = arith.constant 16 : index
    %c0_46 = arith.constant 0 : index
    %62 = vector.load %arg6[%c16, %c0_46] : memref<168x128xbf16, #tpu.memory_space<vmem>>, vector<128x128xbf16>
    %c3 = arith.constant 3 : index
    %c0_47 = arith.constant 0 : index
    %c0_48 = arith.constant 0 : index
    %63 = vector.load %arg4[%c3, %c0_47, %c0_48] : memref<9x128x128xbf16, #tpu.memory_space<vmem>>, vector<1x128x128xbf16>
    %64 = vector.shape_cast %63 : vector<1x128x128xbf16> to vector<128x128xbf16>
    %cst_49 = arith.constant dense<0.000000e+00> : vector<128x128xf32>
    %65 = tpu.matmul %62, %64, %cst_49 {dimension_numbers = #tpu.dot_dimension_numbers<[1], [0], [0], [1], [0, 0, 1, 1], [], []>} : vector<128x128xbf16>, vector<128x128xbf16>, vector<128x128xf32> -> vector<128x128xf32>
    %66 = arith.addf %61, %65 : vector<128x128xf32>
    %c17 = arith.constant 17 : index
    %c0_50 = arith.constant 0 : index
    %67 = vector.load %arg6[%c17, %c0_50] : memref<168x128xbf16, #tpu.memory_space<vmem>>, vector<128x128xbf16>
    %c4 = arith.constant 4 : index
    %c0_51 = arith.constant 0 : index
    %c0_52 = arith.constant 0 : index
    %68 = vector.load %arg4[%c4, %c0_51, %c0_52] : memref<9x128x128xbf16, #tpu.memory_space<vmem>>, vector<1x128x128xbf16>
    %69 = vector.shape_cast %68 : vector<1x128x128xbf16> to vector<128x128xbf16>
    %cst_53 = arith.constant dense<0.000000e+00> : vector<128x128xf32>
    %70 = tpu.matmul %67, %69, %cst_53 {dimension_numbers = #tpu.dot_dimension_numbers<[1], [0], [0], [1], [0, 0, 1, 1], [], []>} : vector<128x128xbf16>, vector<128x128xbf16>, vector<128x128xf32> -> vector<128x128xf32>
    %71 = arith.addf %66, %70 : vector<128x128xf32>
    %c18 = arith.constant 18 : index
    %c0_54 = arith.constant 0 : index
    %72 = vector.load %arg6[%c18, %c0_54] : memref<168x128xbf16, #tpu.memory_space<vmem>>, vector<128x128xbf16>
    %c5 = arith.constant 5 : index
    %c0_55 = arith.constant 0 : index
    %c0_56 = arith.constant 0 : index
    %73 = vector.load %arg4[%c5, %c0_55, %c0_56] : memref<9x128x128xbf16, #tpu.memory_space<vmem>>, vector<1x128x128xbf16>
    %74 = vector.shape_cast %73 : vector<1x128x128xbf16> to vector<128x128xbf16>
    %cst_57 = arith.constant dense<0.000000e+00> : vector<128x128xf32>
    %75 = tpu.matmul %72, %74, %cst_57 {dimension_numbers = #tpu.dot_dimension_numbers<[1], [0], [0], [1], [0, 0, 1, 1], [], []>} : vector<128x128xbf16>, vector<128x128xbf16>, vector<128x128xf32> -> vector<128x128xf32>
    %76 = arith.addf %71, %75 : vector<128x128xf32>
    %c32 = arith.constant 32 : index
    %c0_58 = arith.constant 0 : index
    %77 = vector.load %arg6[%c32, %c0_58] : memref<168x128xbf16, #tpu.memory_space<vmem>>, vector<128x128xbf16>
    %c6 = arith.constant 6 : index
    %c0_59 = arith.constant 0 : index
    %c0_60 = arith.constant 0 : index
    %78 = vector.load %arg4[%c6, %c0_59, %c0_60] : memref<9x128x128xbf16, #tpu.memory_space<vmem>>, vector<1x128x128xbf16>
    %79 = vector.shape_cast %78 : vector<1x128x128xbf16> to vector<128x128xbf16>
    %cst_61 = arith.constant dense<0.000000e+00> : vector<128x128xf32>
    %80 = tpu.matmul %77, %79, %cst_61 {dimension_numbers = #tpu.dot_dimension_numbers<[1], [0], [0], [1], [0, 0, 1, 1], [], []>} : vector<128x128xbf16>, vector<128x128xbf16>, vector<128x128xf32> -> vector<128x128xf32>
    %81 = arith.addf %76, %80 : vector<128x128xf32>
    %c33 = arith.constant 33 : index
    %c0_62 = arith.constant 0 : index
    %82 = vector.load %arg6[%c33, %c0_62] : memref<168x128xbf16, #tpu.memory_space<vmem>>, vector<128x128xbf16>
    %c7 = arith.constant 7 : index
    %c0_63 = arith.constant 0 : index
    %c0_64 = arith.constant 0 : index
    %83 = vector.load %arg4[%c7, %c0_63, %c0_64] : memref<9x128x128xbf16, #tpu.memory_space<vmem>>, vector<1x128x128xbf16>
    %84 = vector.shape_cast %83 : vector<1x128x128xbf16> to vector<128x128xbf16>
    %cst_65 = arith.constant dense<0.000000e+00> : vector<128x128xf32>
    %85 = tpu.matmul %82, %84, %cst_65 {dimension_numbers = #tpu.dot_dimension_numbers<[1], [0], [0], [1], [0, 0, 1, 1], [], []>} : vector<128x128xbf16>, vector<128x128xbf16>, vector<128x128xf32> -> vector<128x128xf32>
    %86 = arith.addf %81, %85 : vector<128x128xf32>
    %c34 = arith.constant 34 : index
    %c0_66 = arith.constant 0 : index
    %87 = vector.load %arg6[%c34, %c0_66] : memref<168x128xbf16, #tpu.memory_space<vmem>>, vector<128x128xbf16>
    %c8 = arith.constant 8 : index
    %c0_67 = arith.constant 0 : index
    %c0_68 = arith.constant 0 : index
    %88 = vector.load %arg4[%c8, %c0_67, %c0_68] : memref<9x128x128xbf16, #tpu.memory_space<vmem>>, vector<1x128x128xbf16>
    %89 = vector.shape_cast %88 : vector<1x128x128xbf16> to vector<128x128xbf16>
    %cst_69 = arith.constant dense<0.000000e+00> : vector<128x128xf32>
    %90 = tpu.matmul %87, %89, %cst_69 {dimension_numbers = #tpu.dot_dimension_numbers<[1], [0], [0], [1], [0, 0, 1, 1], [], []>} : vector<128x128xbf16>, vector<128x128xbf16>, vector<128x128xf32> -> vector<128x128xf32>
    %91 = arith.addf %86, %90 : vector<128x128xf32>
    %92 = vector.shape_cast %91 : vector<128x128xf32> to vector<8x16x128xf32>
    %93 = vector.extract_strided_slice %92 {offsets = [0, 0, 0], sizes = [8, 8, 128], strides = [1, 1, 1]} : vector<8x16x128xf32> to vector<8x8x128xf32>
    %c0_70 = arith.constant 0 : index
    %c0_71 = arith.constant 0 : index
    %c0_72 = arith.constant 0 : index
    %c0_73 = arith.constant 0 : index
    %94 = vector.load %arg3[%c0_70, %c0_71, %c0_72, %c0_73] : memref<1x8x8x128xf32, #tpu.memory_space<vmem>>, vector<1x8x8x128xf32>
    %95 = vector.shape_cast %94 : vector<1x8x8x128xf32> to vector<8x8x128xf32>
    %96 = arith.addf %93, %95 : vector<8x8x128xf32>
    %c0_74 = arith.constant 0 : index
    %c0_75 = arith.constant 0 : index
    %c0_76 = arith.constant 0 : index
    %c0_77 = arith.constant 0 : index
    %97 = vector.load %arg5[%c0_74, %c0_75, %c0_76, %c0_77] : memref<1x8x8x128xf32, #tpu.memory_space<vmem>>, vector<1x8x8x128xf32>
    %98 = vector.shape_cast %97 : vector<1x8x8x128xf32> to vector<8x8x128xf32>
    %99 = vector.shape_cast %96 : vector<8x8x128xf32> to vector<1x8x8x128xf32>
    tpu.vector_store %arg5[%c0_74, %c0_75, %c0_76, %c0_77], %99 {strides = array<i32>} : memref<1x8x8x128xf32, #tpu.memory_space<vmem>>, vector<1x8x8x128xf32>,
    return
  }
  func.func @transform_1(%arg0: i32, %arg1: i32) -> (i32, i32, i32, i32) {
    %c0_i32 = arith.constant 0 : i32
    %c0_i32_0 = arith.constant 0 : i32
    %c0_i32_1 = arith.constant 0 : i32
    return %arg0, %arg1, %c0_i32, %c0_i32_0 : i32, i32, i32, i32
  }
  func.func @transform_2(%arg0: i32, %arg1: i32) -> (i32, i32, i32) {
    %c0_i32 = arith.constant 0 : i32
    %c0_i32_0 = arith.constant 0 : i32
    %c0_i32_1 = arith.constant 0 : i32
    %c0_i32_2 = arith.constant 0 : i32
    return %c0_i32, %c0_i32_0, %c0_i32_1 : i32, i32, i32
  }
  func.func @transform_3(%arg0: i32, %arg1: i32) -> (i32, i32, i32, i32) {
    %c0_i32 = arith.constant 0 : i32
    %c0_i32_0 = arith.constant 0 : i32
    %c0_i32_1 = arith.constant 0 : i32
    return %arg0, %arg1, %c0_i32, %c0_i32_0 : i32, i32, i32, i32
  }
}

</mosaic_0001>

<bundles_post_ra>
// kernel: preact_unit_forward.3
= control target key start
LH: loop header
LB: loop body
LE: loop exit
PB: predicated region body
PF: predicated region fallthrough
CT: control target
= control target key end

     0   :  { %s3528_s12 = smov 0   ;;  %s3530_s13 = smov 0   ;;  %s3988_s0 = inlined_call_operand.vmem [shape: bf16[2,128,128], index: 0, kind: input, shape index: {}]   ;;  %s3989_s1 = inlined_call_operand.vmem [shape: f32[2,8,8,128], index: 1, kind: input, shape index: {}]   ;;  %s3990_s2 = inlined_call_operand.vmem [shape: bf16[9,128,128], index: 2, kind: input, shape index: {}]   ;;  %s3991_s3 = inlined_call_operand.vmem [shape: f32[2,8,8,128], index: 3, kind: output, shape index: {}]  }
   0x1   :  { %s3532_s14 = smov 0  }
   0x2 LB: > { %s25_s15 = sadd.s32 1, %s3501_s13  ;;  %p2619_p0 = scmp.ge.s32.totalorder %s3505_s14, 1  ;;  %s3505_s14 = sphi %s3532_s14, %s13_s14   ;;  %s3501_s13 = sphi %s3530_s13, %s3993_s13   ;;  %s3497_s12 = sphi %s3528_s12, %s3992_s12  }
   0x3   : > { %p27_p1 = scmp.ge.s32.totalorder %s25_s15, 2  ;;  %p134_p2 = scmp.lt.s32.totalorder %s3505_s14, 3 }
   0x5   : > { %s3995_s15 = smov (%p27_p1, %s25_s15), 0  ;;  %p135_p3 = pnand %p2619_p0, %p134_p2 }
   0x6   : > { %p165_p4 = scmp.lt.s32.totalorder (!%p135_p3), %s3497_s12, 1  ;;  %s2881_s16 = sshll.u32 (!%p135_p3), %s3497_s12, 6 }
   0x7   : > { %138 = sbr.rel (%p135_p3) target bundleno = 418 (0x1a2), region = 28  ;;  %s192_s19 = scalar_lea.vmem (!%p135_p3), %s3988_s0, %s2881_s16 }
   0x8   : > { %v226_v0 = vld [vmem:[%s192_s19] sm:$0xff] (!%p135_p3)  ;;  %v228_v1 = vld [vmem:[%s192_s19 + $0x8] sm:$0xff] (!%p135_p3)  ;;  %v230_v2 = vld [vmem:[%s192_s19 + $0x10] sm:$0xff] (!%p135_p3) }
   0x9   : > { %227 = vst [vmem:[#allocation2 + $0x8] sm:$0xff] (!%p135_p3), %v226_v0  ;;  %229 = vst [vmem:[#allocation2 + $0x10] sm:$0xff] (!%p135_p3), %v228_v1  ;;  %v232_v3 = vld [vmem:[%s192_s19 + $0x18] sm:$0xff] (!%p135_p3)  ;;  %v234_v4 = vld [vmem:[%s192_s19 + $0x20] sm:$0xff] (!%p135_p3) }
   0xa   : > { %231 = vst [vmem:[#allocation2 + $0x18] sm:$0xff] (!%p135_p3), %v230_v2  ;;  %v236_v5 = vld [vmem:[%s192_s19 + $0x28] sm:$0xff] (!%p135_p3)  ;;  %233 = vst [vmem:[#allocation2 + $0x20] sm:$0xff] (!%p135_p3), %v232_v3  ;;  %v238_v6 = vld [vmem:[%s192_s19 + $0x30] sm:$0xff] (!%p135_p3) }
   0xb   : > { %235 = vst [vmem:[#allocation2 + $0x28] sm:$0xff] (!%p135_p3), %v234_v4  ;;  %237 = vst [vmem:[#allocation2 + $0x30] sm:$0xff] (!%p135_p3), %v236_v5  ;;  %v240_v7 = vld [vmem:[%s192_s19 + $0x38] sm:$0xff] (!%p135_p3) }
   0xc   : > { %239 = vst [vmem:[#allocation2 + $0x38] sm:$0xff] (!%p135_p3), %v238_v6  ;;  %241 = vst [vmem:[#allocation2 + $0x40] sm:$0xff] (!%p135_p3), %v240_v7 }
   0xe   : > { %s3997_s12 = smov (!%p165_p4, %s3497_s12), 1 }
   0xf   : > { %s2879_s20 = sshll.u32 %s3997_s12, 6 }
  0x10   : > { %s3557_s23 = scalar_lea.vmem %s3989_s1, %s2879_s20  ;;  %s3562_s26 = scalar_lea.vmem %s3991_s3, %s2879_s20 }
  0x11   : > { %249 = vsyncadd [#allocation3], 1024  ;;  %v292_v8 = vld [vmem:[%s192_s19] sm:$0xff] }
  0x12   : > { %293 = vst [vmem:[#allocation2] sm:$0xff] %v292_v8 }
  0x13   : > { %301 = vsyncadd [#allocation3 + $0x1], 128  ;;  %s2884_s27 = sadd.s32 56, %s2881_s16 }
  0x14   : > { %s310_s30 = scalar_lea.vmem %s3988_s0, %s2884_s27 }
  0x15   : > { %v345_v9 = vld [vmem:[%s310_s30] sm:$0xff] }
  0x16   : > { %346 = vst [vmem:[#allocation2 + $0x48] sm:$0xff] %v345_v9 }
  0x17   : > { %354 = vsyncadd [#allocation3 + $0x2], 128  ;;  %v3507_v10 = vmov 0  }
  0x18   : > { %355 = vst [vmem:[#allocation2 + $0x50] sm:$0xf] %v3507_v10 }
  0x19   : > { %3489 = dma.done.wait [#allocation3], 1024 }
  0x1a   : > { %3490 = vsyncadd [#allocation3], 4294966272 }
  0x1b   : > { %3491 = dma.done.wait [#allocation3 + $0x1], 128 }
  0x1c   : > { %3492 = vsyncadd [#allocation3 + $0x1], 4294967168 }
  0x1d   : > { %3493 = dma.done.wait [#allocation3 + $0x2], 128 }
  0x1e   : > { %3494 = vsyncadd [#allocation3 + $0x2], 4294967168  ;;  %370 = vst [vmem:[#allocation2] sm:$0xf] %v3507_v10  ;;  %v3359_v11 = vld [vmem:[%s3990_s2 + $0x40] sm:$0xff]   ;;  %v3361_v13 = vld [vmem:[%s3990_s2 + $0x48] sm:$0xff]  }
  0x1f   : > { %371 = vst [vmem:[#allocation2 + $0x4] sm:$0xf] %v3507_v10  ;;  %372 = vst [vmem:[#allocation2 + $0x48] sm:$0xf] %v3507_v10  ;;  %v3360_v12 = vld [vmem:[%s3990_s2] sm:$0xff]   ;;  %3030 = vmatprep.subr.bf16.mxu0 %v3359_v11  ;;  %v3362_v14 = vld [vmem:[%s3990_s2 + $0x8] sm:$0xff]  }
  0x20   : > { %373 = vst [vmem:[#allocation2 + $0x4c] sm:$0xf] %v3507_v10  ;;  %3062 = vmatprep.subr.bf16.mxu1 %v3360_v12  ;;  %3031 = vmatpush3.bf16.msra.mxu0 %v3359_v11  ;;  %v3363_v15 = vld [vmem:[%s3990_s2 + $0x50] sm:$0xff]   ;;  %v3365_v17 = vld [vmem:[%s3990_s2 + $0x58] sm:$0xff]   ;;  %v3367_v19 = vld [vmem:[%s3990_s2 + $0x60] sm:$0xff]   ;;  %vm847_vm1 = vcmask 1046528  }
  0x21   : > { %3063 = vmatpush3.bf16.msra.mxu1 %v3360_v12  ;;  %3032 = vmatprep.subr.bf16.mxu0 %v3361_v13  ;;  %v3364_v16 = vld [vmem:[%s3990_s2 + $0x10] sm:$0xff]   ;;  %v3366_v18 = vld [vmem:[%s3990_s2 + $0x18] sm:$0xff]   ;;  %v3368_v20 = vld [vmem:[%s3990_s2 + $0x20] sm:$0xff]   ;;  %vm467_vm0 = vsmask.f32 7424 }
  0x22   : > { %3064 = vmatprep.subr.bf16.mxu1 %v3362_v14  ;;  %v3369_v21 = vld [vmem:[%s3990_s2 + $0x68] sm:$0xff]   ;;  %v3608_v27 = vld [vmem:[#allocation2 + $0x10] sm:$0xff]   ;;  %v3373_v35 = vld [vmem:[%s3990_s2 + $0x78] sm:$0xff]  }
  0x23   : > { %v3370_v22 = vld [vmem:[%s3990_s2 + $0x28] sm:$0xff]   ;;  %v3371_v31 = vld [vmem:[%s3990_s2 + $0x70] sm:$0xff]   ;;  %v484_v37 = vshll.u32 %v3608_v27, 16  ;;  %v3622_v39 = vld [vmem:[#allocation2 + $0x18] sm:$0xff]   ;;  %v488_v42 = vshrl.u32 %v3608_v27, 16 }
  0x24   : > { %3033 = vmatpush3.bf16.msra.mxu0 %v3361_v13  ;;  %v3606_v26 = vld [vmem:[#allocation2 + $0x8] sm:$0xff]   ;;  %v3372_v32 = vld [vmem:[%s3990_s2 + $0x30] sm:$0xff]   ;;  %v3374_v40 = vld [vmem:[%s3990_s2 + $0x38] sm:$0xff]   ;;  %v492_v43 = vshll.u32 %v3622_v39, 16  ;;  %v496_v53 = vshrl.u32 %v3622_v39, 16 }
  0x25   : > { %3065 = vmatpush3.bf16.msra.mxu1 %v3362_v14  ;;  %3034 = vmatprep.subr.bf16.mxu0 %v3363_v15  ;;  %v374_v23 = vld [vmem:[#allocation2] sm:$0xf]  ;;  %v476_v30 = vshll.u32 %v3606_v26, 16  ;;  %v480_v36 = vshrl.u32 %v3606_v26, 16  ;;  %v486_v45 = vrot.slane %v484_v37, 1  ;;  %v3638_v51 = vld [vmem:[#allocation2 + $0x28] sm:$0xff]  }
  0x26   : > { %3066 = vmatprep.subr.bf16.mxu1 %v3364_v16  ;;  %v3603_v24 = vld [vmem:[#allocation2 + $0x4] sm:$0xf]  ;;  %v494_v50 = vrot.slane %v492_v43, 1  ;;  %v3380_v55 = vld [vmem:[%s3990_s2 + $0x88] sm:$0xff]   ;;  %v508_v59 = vshll.u32 %v3638_v51, 16  ;;  %v3653_v62 = vld [vmem:[#allocation2 + $0x30] sm:$0xff]  }
  0x27   : > { %v2644_v25 = vcombine.low %v374_v23, %v3603_v24  ;;  %v478_v34 = vrot.slane %v476_v30, 1  ;;  %v3630_v46 = vld [vmem:[#allocation2 + $0x20] sm:$0xff]   ;;  %v490_v49 = vor.u32 %v488_v42, %v486_v45  ;;  %v3381_v56 = vld [vmem:[%s3990_s2 + $0xc8] sm:$0xff]   ;;  %v3384_v63 = vld [vmem:[%s3990_s2 + $0x90] sm:$0xff]   ;;  %v512_v5 = vshrl.u32 %v3638_v51, 16 }
  0x28   : > { %3035 = vmatpush3.bf16.msra.mxu0 %v3363_v15  ;;  %v3378_v47 = vld [vmem:[%s3990_s2 + $0x80] sm:$0xff]   ;;  %v500_v54 = vshll.u32 %v3630_v46, 16  ;;  %v504_v58 = vshrl.u32 %v3630_v46, 16  ;;  %v498_v60 = vor.u32 %v496_v53, %v494_v50  ;;  %v3385_v0 = vld [vmem:[%s3990_s2 + $0xd0] sm:$0xff]   ;;  %v510_v2 = vrot.slane %v508_v59, 1  ;;  %v3662_v3 = vld [vmem:[#allocation2 + $0x38] sm:$0xff]  }
  0x29   : > { %3067 = vmatpush3.bf16.msra.mxu1 %v3364_v16  ;;  %3036 = vmatprep.subr.bf16.mxu0 %v3365_v17  ;;  %v469_v28 = vshrl.u32 %v2644_v25, 16  ;;  %v471_v29 = vshll.u32 %v2644_v25, 16  ;;  %v482_v44 = vor.u32 %v480_v36, %v478_v34  ;;  %v3379_v48 = vld [vmem:[%s3990_s2 + $0xc0] sm:$0xff]   ;;  %v495_v57 = vsel %vm467_vm0, %v490_v49, %v494_v50  ;;  %v3386_v7 = vld [vmem:[%s3990_s2 + $0x98] sm:$0xff]   ;;  %v3392_v23 = vld [vmem:[%s3990_s2 + $0xa8] sm:$0xff]  }
  0x2a   : > { %3068 = vmatprep.subr.bf16.mxu1 %v3366_v18  ;;  %3078 = vmatprep.mubr.bf16.mxu1 %v2644_v25  ;;  %v502_v61 = vrot.slane %v500_v54, 1  ;;  %v516_v6 = vshll.u32 %v3653_v62, 16  ;;  %v3387_v8 = vld [vmem:[%s3990_s2 + $0xd8] sm:$0xff]   ;;  %v3673_v9 = vld [vmem:[#allocation2 + $0x40] ss:$0 sps:$4 sm:$0x11]   ;;  %v514_v13 = vor.u32 %v512_v5, %v510_v2 }
  0x2b   : > { %v473_v33 = vrot.slane %v471_v29, 1  ;;  %v487_v52 = vsel %vm467_vm0, %v482_v44, %v486_v45  ;;  %v520_v11 = vshrl.u32 %v3653_v62, 16  ;;  %v524_v12 = vshll.u32 %v3662_v3, 16  ;;  %v3390_v15 = vld [vmem:[%s3990_s2 + $0xa0] sm:$0xff]   ;;  %v3393_v25 = vld [vmem:[%s3990_s2 + $0xe8] sm:$0xff]   ;;  %v3398_v36 = vld [vmem:[%s3990_s2 + $0xb8] sm:$0xff]  }
  0x2c   : > { %3037 = vmatpush3.bf16.msra.mxu0 %v3365_v17  ;;  %v506_v1 = vor.u32 %v504_v58, %v502_v61  ;;  %v503_v4 = vsel %vm467_vm0, %v498_v60, %v502_v61  ;;  %v518_v14 = vrot.slane %v516_v6, 1  ;;  %v3391_v16 = vld [vmem:[%s3990_s2 + $0xe0] sm:$0xff]   ;;  %v528_v17 = vshrl.u32 %v3662_v3, 16  ;;  %v3399_v37 = vld [vmem:[%s3990_s2 + $0xf8] sm:$0xff]   ;;  %v3402_v45 = vld [vmem:[#allocation2 + $0x10] sm:$0xff]  }
  0x2d   : > { %3069 = vmatpush3.bf16.msra.mxu1 %v3366_v18  ;;  %3038 = vmatprep.subr.bf16.mxu0 %v3367_v19  ;;  %v474_v38 = vor.u32 %v473_v33, %v469_v28  ;;  %v3397_v33 = vld [vmem:[%s3990_s2 + $0xf0] sm:$0xff]   ;;  %v3404_v42 = vld [vmem:[%s3990_s2 + $0x140] sm:$0xff]   ;;  %v853_v43 = vrot.slane %v3622_v39, 1  ;;  %v3407_v49 = vld [vmem:[#allocation2 + $0x18] sm:$0xff]   ;;  %v861_v5 = vrot.slane %v3662_v3, 1 }
  0x2e   : > { %3070 = vmatprep.subr.bf16.mxu1 %v3368_v20  ;;  %v511_v10 = vsel %vm467_vm0, %v506_v1, %v510_v2  ;;  %v522_v18 = vor.u32 %v520_v11, %v518_v14  ;;  %v3409_v50 = vld [vmem:[%s3990_s2 + $0x110] sm:$0xff]   ;;  %v3408_v53 = vld [vmem:[#allocation2 + $0x20] sm:$0xff]   ;;  %v3411_v54 = vld [vmem:[%s3990_s2 + $0x118] sm:$0xff]  }
  0x2f   : > { %v479_v41 = vsel %vm467_vm0, %v474_v38, %v478_v34  ;;  %v849_v34 = vrot.slane %v3606_v26, 1  ;;  %v3412_v58 = vld [vmem:[%s3990_s2 + $0x158] sm:$0xff]   ;;  %v3413_v60 = vld [vmem:[#allocation2 + $0x28] sm:$0xff]   ;;  %v3754_v1 = vld [vmem:[#allocation2 + $0x10] sm:$0xff]  }
  0x30   : > { %3039 = vmatpush3.bf16.msra.mxu0 %v3367_v19  ;;  %3046 = vmatprep.mubr.bf16.mxu0 %v479_v41  ;;  %v526_v19 = vrot.slane %v524_v12, 1  ;;  %v3403_v41 = vld [vmem:[%s3990_s2 + $0x100] sm:$0xff]   ;;  %v1542_v2 = vld [vmem:[#allocation2 + $0x8] sm:$0xe]  ;;  %v3419_v11 = vld [vmem:[#allocation2 + $0x38] sm:$0xff]   ;;  %v1329_v12 = vshll.u32 %v3754_v1, 16 }
  0x31   : > { %3071 = vmatpush3.bf16.msra.mxu1 %v3368_v20  ;;  %3040 = vmatprep.subr.bf16.mxu0 %v3369_v21  ;;  %v532_v20 = vshll.u32 %v3673_v9, 16 }
  0x32   : > { %3072 = vmatprep.subr.bf16.mxu1 %v3370_v22  ;;  %v527_v28 = vsel %vm467_vm0, %v522_v18, %v526_v19  ;;  %v530_v30 = vor.u32 %v528_v17, %v526_v19  ;;  %v3421_v17 = vld [vmem:[%s3990_s2 + $0x130] sm:$0xff]   ;;  %v1333_v19 = vshrl.u32 %v3754_v1, 16 }
  0x33   : > { %v3422_v18 = vld [vmem:[%s3990_s2 + $0x170] sm:$0xff]  }
  0x34   : > { %3041 = vmatpush3.bf16.msra.mxu0 %v3369_v21  ;;  %v519_v21 = vsel %vm467_vm0, %v514_v13, %v518_v14 }
  0x35   : > { %3073 = vmatpush3.bf16.msra.mxu1 %v3370_v22  ;;  %3042 = vmatprep.subr.bf16.mxu0 %v3371_v31  ;;  %v826_v22 = vld [vmem:[#allocation2] sm:$0xe] }
  0x36   : > { %3074 = vmatprep.subr.bf16.mxu1 %v3372_v32  ;;  %v2685_v29 = vcombine.low %v826_v22, %v3603_v24  ;;  %v1331_v22 = vrot.slane %v1329_v12, 1 }
  0x38   : > { %3043 = vmatpush3.bf16.msra.mxu0 %v3371_v31  ;;  %v534_v31 = vrot.slane %v532_v20, 1  ;;  %v848_v24 = vrot.slane %v2685_v29, 1 }
  0x39   : > { %3075 = vmatpush3.bf16.msra.mxu1 %v3372_v32  ;;  %3044 = vmatprep.subr.bf16.mxu0 %v3373_v35  ;;  %v3396_v32 = vld [vmem:[%s3990_s2 + $0xb0] sm:$0xff]  }
  0x3a   : > { %3076 = vmatprep.subr.bf16.mxu1 %v3374_v40  ;;  %v850_v38 = vsel %vm847_vm1, %v848_v24, %v849_v34 }
  0x3c   : > { %3045 = vmatpush3.bf16.msra.mxu0 %v3373_v35  ;;  %v535_v35 = vsel %vm467_vm0, %v530_v30, %v534_v31  ;;  %v3423_v30 = vld [vmem:[%s3990_s2 + $0x138] sm:$0xff]  }
  0x3d   : > { %3077 = vmatpush3.bf16.msra.mxu1 %v3374_v40  ;;  %3094 = vmatprep.subr.bf16.mxu0 %v3378_v47  ;;  %v3401_v40 = vld [vmem:[#allocation2 + $0x8] sm:$0xff]   ;;  %v3424_v31 = vld [vmem:[%s3990_s2 + $0x178] sm:$0xff]  }
  0x3e   : > { %3126 = vmatprep.subr.bf16.mxu1 %v3379_v48 }
  0x3f   : > { %3047 = vmatmul.mubr.bf16.vlgmr.msra.gmra.mrb[0].mxu0 %v487_v52  ;;  %v3410_v52 = vld [vmem:[%s3990_s2 + $0x150] sm:$0xff]  }
  0x40   : > { %3079 = vmatmul.mubr.bf16.vlgmr.msra.gmra.mrb[0].mxu1 %v3606_v26  ;;  %3095 = vmatpush3.bf16.msra.mxu0 %v3378_v47  ;;  %v851_v26 = vrot.slane %v3608_v27, 1  ;;  %v3406_v47 = vld [vmem:[%s3990_s2 + $0x148] sm:$0xff]  }
  0x41   : > { %3127 = vmatpush3.bf16.msra.mxu1 %v3379_v48  ;;  %3096 = vmatprep.subr.bf16.mxu0 %v3380_v55 }
  0x42   : > { %3128 = vmatprep.subr.bf16.mxu1 %v3381_v56  ;;  %3050 = vmatprep.mubr.bf16.mxu0 %v495_v57  ;;  %v852_v44 = vsel %vm847_vm1, %v849_v34, %v851_v26  ;;  %v854_v48 = vsel %vm847_vm1, %v851_v26, %v853_v43  ;;  %v1245_v57 = vld [vmem:[#allocation2 + $0xc] sm:$0xf]  ;;  %v3430_v26 = vld [vmem:[%s3990_s2 + $0x1c0] sm:$0xff]  }
  0x43   : > { %3082 = vmatprep.mubr.bf16.mxu1 %v3608_v27  ;;  %v3405_v27 = vld [vmem:[%s3990_s2 + $0x108] sm:$0xff]  }
  0x44   : > { %3097 = vmatpush3.bf16.msra.mxu0 %v3380_v55  ;;  %v3790_v34 = vld [vmem:[#allocation2 + $0x28] sm:$0xff]  }
  0x45   : > { %3129 = vmatpush3.bf16.msra.mxu1 %v3381_v56  ;;  %3098 = vmatprep.subr.bf16.mxu0 %v3384_v63  ;;  %v1244_v56 = vld [vmem:[#allocation2 + $0x8] sm:$0xf] }
  0x46   : > { %3130 = vmatprep.subr.bf16.mxu1 %v3385_v0  ;;  %v2742_v61 = vcombine.low %v1244_v56, %v1245_v57 }
  0x47   : > { %3051 = vmatmul.mubr.bf16.gmra.mrb[4].mxu0 %v503_v4  ;;  %v3414_v4 = vld [vmem:[#allocation2 + $0x30] sm:$0xff]  }
  0x48   : > { %3083 = vmatmul.mubr.bf16.gmra.mrb[4].mxu1 %v3622_v39  ;;  %3099 = vmatpush3.bf16.msra.mxu0 %v3384_v63  ;;  %v855_v39 = vrot.slane %v3630_v46, 1  ;;  %v3415_v63 = vld [vmem:[%s3990_s2 + $0x120] sm:$0xff]   ;;  %v1322_v13 = vshrl.u32 %v2742_v61, 16 }
  0x49   : > { %3131 = vmatpush3.bf16.msra.mxu1 %v3385_v0  ;;  %3100 = vmatprep.subr.bf16.mxu0 %v3386_v7  ;;  %v3416_v0 = vld [vmem:[%s3990_s2 + $0x160] sm:$0xff]  }
  0x4a   : > { %3132 = vmatprep.subr.bf16.mxu1 %v3387_v8  ;;  %3054 = vmatprep.mubr.bf16.mxu0 %v511_v10  ;;  %v856_v55 = vsel %vm847_vm1, %v853_v43, %v855_v39  ;;  %v2775_v10 = vcombine.low %v1542_v2, %v1245_v57  ;;  %v1570_v57 = vrot.slane %v3790_v34, 1  ;;  %v3832_v2 = vld [vmem:[#allocation2 + $0x40] sm:$0xff]  }
  0x4b   : > { %3086 = vmatprep.mubr.bf16.mxu1 %v3630_v46  ;;  %v857_v46 = vrot.slane %v3638_v51, 1  ;;  %v1377_v12 = vshll.u32 %v3832_v2, 16 }
  0x4c   : > { %3101 = vmatpush3.bf16.msra.mxu0 %v3386_v7  ;;  %v3417_v7 = vld [vmem:[%s3990_s2 + $0x128] sm:$0xff]   ;;  %v1563_v20 = vrot.slane %v2775_v10, 1 }
  0x4d   : > { %3133 = vmatpush3.bf16.msra.mxu1 %v3387_v8  ;;  %3102 = vmatprep.subr.bf16.mxu0 %v3390_v15  ;;  %v858_v59 = vsel %vm847_vm1, %v855_v39, %v857_v46  ;;  %v3418_v8 = vld [vmem:[%s3990_s2 + $0x168] sm:$0xff]  }
  0x4e   : > { %3134 = vmatprep.subr.bf16.mxu1 %v3391_v16  ;;  %v3432_v39 = vld [vmem:[%s3990_s2 + $0x1c8] sm:$0xff]  }
  0x4f   : > { %3055 = vmatmul.mubr.bf16.gmra.mrb[8].mxu0 %v519_v21  ;;  %v3420_v21 = vld [vmem:[#allocation2 + $0x40] sm:$0xff]  }
  0x50   : > { %3087 = vmatmul.mubr.bf16.gmra.mrb[8].mxu1 %v3638_v51  ;;  %3103 = vmatpush3.bf16.msra.mxu0 %v3390_v15  ;;  %v859_v51 = vrot.slane %v3653_v62, 1  ;;  %v863_v15 = vrot.slane %v3673_v9, 1  ;;  %v3776_v9 = vld [vmem:[#allocation2 + $0x20] sm:$0xff]  }
  0x51   : > { %3135 = vmatpush3.bf16.msra.mxu1 %v3391_v16  ;;  %3104 = vmatprep.subr.bf16.mxu0 %v3392_v23  ;;  %v3767_v16 = vld [vmem:[#allocation2 + $0x18] sm:$0xff]   ;;  %v1345_v24 = vshll.u32 %v3776_v9, 16 }
  0x52   : > { %3136 = vmatprep.subr.bf16.mxu1 %v3393_v25  ;;  %3058 = vmatprep.mubr.bf16.mxu0 %v527_v28  ;;  %v860_v6 = vsel %vm847_vm1, %v857_v46, %v859_v51  ;;  %v1564_v28 = vrot.slane %v3754_v1, 1  ;;  %v1337_v29 = vshll.u32 %v3767_v16, 16 }
  0x53   : > { %3090 = vmatprep.mubr.bf16.mxu1 %v3653_v62  ;;  %v1324_v62 = vshll.u32 %v2742_v61, 16  ;;  %v1347_v43 = vrot.slane %v1345_v24, 1 }
  0x54   : > { %3105 = vmatpush3.bf16.msra.mxu0 %v3392_v23 }
  0x55   : > { %3137 = vmatpush3.bf16.msra.mxu1 %v3393_v25  ;;  %3106 = vmatprep.subr.bf16.mxu0 %v3396_v32  ;;  %v1326_v14 = vrot.slane %v1324_v62, 1  ;;  %v864_v25 = vsel %vm847_vm1, %v861_v5, %v863_v15  ;;  %v1959_v62 = vld [vmem:[#allocation2 + $0x10] sm:$0xf] }
  0x56   : > { %3138 = vmatprep.subr.bf16.mxu1 %v3397_v33 }
  0x57   : > { %3059 = vmatmul.mubr.bf16.gmra.mrb[12].mxu0 %v535_v35  ;;  %v1327_v23 = vor.u32 %v1326_v14, %v1322_v13  ;;  %v1335_v35 = vor.u32 %v1333_v19, %v1331_v22 }
  0x58   : > { %3091 = vmatmul.mubr.bf16.gmra.mrb[12].mxu1 %v3662_v3  ;;  %3107 = vmatpush3.bf16.msra.mxu0 %v3396_v32  ;;  %v862_v3 = vsel %vm847_vm1, %v859_v51, %v861_v5  ;;  %v3835_v5 = vld [vmem:[#allocation2 + $0x48] ss:$0 sps:$4 sm:$0x11]  }
  0x59   : > { %3139 = vmatpush3.bf16.msra.mxu1 %v3397_v33  ;;  %3108 = vmatprep.subr.bf16.mxu0 %v3398_v36  ;;  %v1332_v32 = vsel %vm467_vm0, %v1327_v23, %v1331_v22  ;;  %v1341_v33 = vshrl.u32 %v3767_v16, 16  ;;  %v1385_v19 = vshll.u32 %v3835_v5, 16  ;;  %v1576_v22 = vrot.slane %v3832_v2, 1  ;;  %v3443_v23 = vld [vmem:[%s3990_s2 + $0x1a8] sm:$0xff]  }
  0x5a   : > { %3140 = vmatprep.subr.bf16.mxu1 %v3399_v37  ;;  %3110 = vmatprep.mubr.bf16.mxu0 %v850_v38  ;;  %v1566_v38 = vrot.slane %v3767_v16, 1 }
  0x5b   : > { %3142 = vmatprep.mubr.bf16.mxu1 %v3401_v40  ;;  %v3429_v40 = vld [vmem:[%s3990_s2 + $0x180] sm:$0xff]  }
  0x5c   : > { %3109 = vmatpush3.bf16.msra.mxu0 %v3398_v36  ;;  %v1565_v36 = vsel %vm847_vm1, %v1563_v20, %v1564_v28 }
  0x5d   : > { %3141 = vmatpush3.bf16.msra.mxu1 %v3399_v37  ;;  %3158 = vmatprep.subr.bf16.mxu0 %v3403_v41  ;;  %v1339_v37 = vrot.slane %v1337_v29, 1 }
  0x5e   : > { %3190 = vmatprep.subr.bf16.mxu1 %v3404_v42 }
  0x5f   : > { %3111 = vmatmul.mubr.bf16.vlgmr.msra.gmra.mrb[16].mxu0 %v852_v44  ;;  %v1353_v44 = vshll.u32 %v3790_v34, 16 }
  0x60   : > { %3143 = vmatmul.mubr.bf16.vlgmr.msra.gmra.mrb[16].mxu1 %v3402_v45  ;;  %3159 = vmatpush3.bf16.msra.mxu0 %v3403_v41  ;;  %v3431_v41 = vld [vmem:[%s3990_s2 + $0x188] sm:$0xff]   ;;  %v3804_v45 = vld [vmem:[#allocation2 + $0x30] sm:$0xff]  }
  0x61   : > { %3191 = vmatpush3.bf16.msra.mxu1 %v3404_v42  ;;  %3160 = vmatprep.subr.bf16.mxu0 %v3405_v27  ;;  %v1343_v42 = vor.u32 %v1341_v33, %v1339_v37  ;;  %v1361_v46 = vshll.u32 %v3804_v45, 16  ;;  %v1365_v61 = vshrl.u32 %v3804_v45, 16  ;;  %v1578_v33 = vrot.slane %v3835_v5, 1 }
  0x62   : > { %3192 = vmatprep.subr.bf16.mxu1 %v3406_v47  ;;  %3114 = vmatprep.mubr.bf16.mxu0 %v854_v48  ;;  %v1349_v48 = vshrl.u32 %v3776_v9, 16 }
  0x63   : > { %3146 = vmatprep.mubr.bf16.mxu1 %v3407_v49  ;;  %v1567_v49 = vsel %vm847_vm1, %v1564_v28, %v1566_v38  ;;  %v1363_v1 = vrot.slane %v1361_v46, 1  ;;  %v3862_v28 = vld [vmem:[#allocation2 + $0x18] sm:$0xff]  }
  0x64   : > { %3161 = vmatpush3.bf16.msra.mxu0 %v3405_v27  ;;  %v1340_v27 = vsel %vm467_vm0, %v1335_v35, %v1339_v37  ;;  %v1351_v56 = vor.u32 %v1349_v48, %v1347_v43  ;;  %v3447_v35 = vld [vmem:[%s3990_s2 + $0x1b0] sm:$0xff]   ;;  %v2048_v48 = vshrl.u32 %v3862_v28, 16 }
  0x65   : > { %3193 = vmatpush3.bf16.msra.mxu1 %v3406_v47  ;;  %3162 = vmatprep.subr.bf16.mxu0 %v3409_v50  ;;  %v1568_v47 = vrot.slane %v3776_v9, 1  ;;  %v1367_v13 = vor.u32 %v1365_v61, %v1363_v1  ;;  %v3900_v61 = vld [vmem:[#allocation2 + $0x38] sm:$0xff]  }
  0x66   : > { %3194 = vmatprep.subr.bf16.mxu1 %v3410_v52 }
  0x67   : > { %3115 = vmatmul.mubr.bf16.gmra.mrb[20].mxu0 %v856_v55  ;;  %v1569_v55 = vsel %vm847_vm1, %v1566_v38, %v1568_v47 }
  0x68   : > { %3147 = vmatmul.mubr.bf16.gmra.mrb[20].mxu1 %v3408_v53  ;;  %3163 = vmatpush3.bf16.msra.mxu0 %v3409_v50  ;;  %v3813_v50 = vld [vmem:[#allocation2 + $0x38] sm:$0xff]   ;;  %v1355_v53 = vrot.slane %v1353_v44, 1 }
  0x69   : > { %3195 = vmatpush3.bf16.msra.mxu1 %v3410_v52  ;;  %3164 = vmatprep.subr.bf16.mxu0 %v3411_v54  ;;  %v1348_v52 = vsel %vm467_vm0, %v1343_v42, %v1347_v43  ;;  %v1369_v51 = vshll.u32 %v3813_v50, 16  ;;  %v1574_v16 = vrot.slane %v3813_v50, 1 }
  0x6a   : > { %3196 = vmatprep.subr.bf16.mxu1 %v3412_v58  ;;  %3118 = vmatprep.mubr.bf16.mxu0 %v858_v59  ;;  %v3436_v59 = vld [vmem:[%s3990_s2 + $0x1d0] sm:$0xff]  }
  0x6b   : > { %3150 = vmatprep.mubr.bf16.mxu1 %v3413_v60  ;;  %v1572_v60 = vrot.slane %v3804_v45, 1  ;;  %v1371_v14 = vrot.slane %v1369_v51, 1  ;;  %v3881_v45 = vld [vmem:[#allocation2 + $0x28] sm:$0xff]  }
  0x6c   : > { %3165 = vmatpush3.bf16.msra.mxu0 %v3411_v54  ;;  %v1357_v54 = vshrl.u32 %v3790_v34, 16  ;;  %v1577_v34 = vsel %vm847_vm1, %v1574_v16, %v1576_v22 }
  0x6d   : > { %3197 = vmatpush3.bf16.msra.mxu1 %v3412_v58  ;;  %3166 = vmatprep.subr.bf16.mxu0 %v3415_v63  ;;  %v3435_v58 = vld [vmem:[%s3990_s2 + $0x190] sm:$0xff]   ;;  %v1372_v9 = vsel %vm467_vm0, %v1367_v13, %v1371_v14 }
  0x6e   : > { %3198 = vmatprep.subr.bf16.mxu1 %v3416_v0 }
  0x6f   : > { %3119 = vmatmul.mubr.bf16.gmra.mrb[24].mxu0 %v860_v6  ;;  %v1571_v6 = vsel %vm847_vm1, %v1568_v47, %v1570_v57  ;;  %v3449_v47 = vld [vmem:[%s3990_s2 + $0x1b8] sm:$0xff]  }
  0x70   : > { %3151 = vmatmul.mubr.bf16.gmra.mrb[24].mxu1 %v3414_v4  ;;  %3167 = vmatpush3.bf16.msra.mxu0 %v3415_v63  ;;  %v3437_v63 = vld [vmem:[%s3990_s2 + $0x198] sm:$0xff]   ;;  %v1356_v4 = vsel %vm467_vm0, %v1351_v56, %v1355_v53  ;;  %v3456_v56 = vld [vmem:[%s3990_s2 + $0x200] sm:$0xff]  }
  0x71   : > { %3199 = vmatpush3.bf16.msra.mxu1 %v3416_v0  ;;  %3168 = vmatprep.subr.bf16.mxu0 %v3417_v7  ;;  %v1359_v0 = vor.u32 %v1357_v54, %v1355_v53  ;;  %v2060_v54 = vshll.u32 %v3881_v45, 16 }
  0x72   : > { %3200 = vmatprep.subr.bf16.mxu1 %v3418_v8  ;;  %3122 = vmatprep.mubr.bf16.mxu0 %v862_v3  ;;  %v1573_v3 = vsel %vm847_vm1, %v1570_v57, %v1572_v60  ;;  %v3898_v57 = vld [vmem:[#allocation2 + $0x30] sm:$0xff]  }
  0x73   : > { %3154 = vmatprep.mubr.bf16.mxu1 %v3419_v11  ;;  %v1364_v10 = vsel %vm467_vm0, %v1359_v0, %v1363_v1  ;;  %v1373_v11 = vshrl.u32 %v3813_v50, 16  ;;  %v3451_v50 = vld [vmem:[#allocation2 + $0x10] sm:$0xff]   ;;  %v2064_v0 = vshrl.u32 %v3881_v45, 16  ;;  %v2068_v1 = vshll.u32 %v3898_v57, 16 }
  0x74   : > { %3169 = vmatpush3.bf16.msra.mxu0 %v3417_v7  ;;  %v3838_v7 = vld [vmem:[#allocation2 + $0x14] sm:$0xf]  ;;  %v2072_v5 = vshrl.u32 %v3898_v57, 16 }
  0x75   : > { %3201 = vmatpush3.bf16.msra.mxu1 %v3418_v8  ;;  %3170 = vmatprep.subr.bf16.mxu0 %v3421_v17  ;;  %v3438_v8 = vld [vmem:[%s3990_s2 + $0x1d8] sm:$0xff]   ;;  %v2832_v15 = vcombine.low %v1959_v62, %v3838_v7  ;;  %v1375_v20 = vor.u32 %v1373_v11, %v1371_v14  ;;  %v2076_v62 = vshll.u32 %v3900_v61, 16  ;;  %v3914_v11 = vld [vmem:[#allocation2 + $0x40] sm:$0xff]   ;;  %v3916_v14 = vld [vmem:[#allocation2 + $0x48] sm:$0xff]  }
  0x76   : > { %3202 = vmatprep.subr.bf16.mxu1 %v3422_v18 }
  0x77   : > { %3123 = vmatmul.mubr.bf16.gmra.mrb[28].mxu0 %v864_v25  ;;  %v1381_v25 = vshrl.u32 %v3832_v2, 16  ;;  %v2039_v29 = vshll.u32 %v2832_v15, 16  ;;  %v2037_v37 = vshrl.u32 %v2832_v15, 16  ;;  %v3458_v2 = vld [vmem:[#allocation2 + $0x20] sm:$0xff]   ;;  %v2078_v13 = vrot.slane %v2076_v62, 1 }
  0x78   : > { %3155 = vmatmul.mubr.bf16.gmra.mrb[28].mxu1 %v3420_v21  ;;  %3171 = vmatpush3.bf16.msra.mxu0 %v3421_v17  ;;  %v3441_v17 = vld [vmem:[%s3990_s2 + $0x1a0] sm:$0xff]   ;;  %v1379_v21 = vrot.slane %v1377_v12, 1  ;;  %v3460_v12 = vld [vmem:[#allocation2 + $0x28] sm:$0xff]  }
  0x79   : > { %3203 = vmatpush3.bf16.msra.mxu1 %v3422_v18  ;;  %3172 = vmatprep.subr.bf16.mxu0 %v3423_v30  ;;  %v3442_v18 = vld [vmem:[%s3990_s2 + $0x1e0] sm:$0xff]   ;;  %v2041_v38 = vrot.slane %v2039_v29, 1  ;;  %v3930_v29 = vld [vmem:[#allocation2 + $0x50] ss:$0 sps:$4 sm:$0x11]  }
  0x7a   : > { %3204 = vmatprep.subr.bf16.mxu1 %v3424_v31  ;;  %3174 = vmatprep.mubr.bf16.mxu0 %v1332_v32  ;;  %v1387_v32 = vrot.slane %v1385_v19, 1  ;;  %v1380_v24 = vsel %vm467_vm0, %v1375_v20, %v1379_v21  ;;  %v3464_v19 = vld [vmem:[#allocation2 + $0x30] sm:$0xff]  }
  0x7b   : > { %3206 = vmatprep.mubr.bf16.mxu1 %v1565_v36  ;;  %v1383_v36 = vor.u32 %v1381_v25, %v1379_v21  ;;  %v2042_v43 = vor.u32 %v2041_v38, %v2037_v37  ;;  %v2088_v21 = vshrl.u32 %v3914_v11, 16  ;;  %v3468_v25 = vld [vmem:[%s3990_s2 + $0x220] sm:$0xff]  }
  0x7c   : > { %3173 = vmatpush3.bf16.msra.mxu0 %v3423_v30  ;;  %v1575_v30 = vsel %vm847_vm1, %v1572_v60, %v1574_v16  ;;  %v2062_v60 = vrot.slane %v2060_v54, 1  ;;  %v3463_v16 = vld [vmem:[%s3990_s2 + $0x218] sm:$0xff]   ;;  %v3470_v37 = vld [vmem:[#allocation2 + $0x40] sm:$0xff]   ;;  %v2283_v54 = vrot.slane %v3881_v45, 1  ;;  %v2293_v45 = vrot.slane %v3930_v29, 1 }
  0x7d   : > { %3205 = vmatpush3.bf16.msra.mxu1 %v3424_v31  ;;  %3222 = vmatprep.subr.bf16.mxu0 %v3429_v40  ;;  %v3444_v31 = vld [vmem:[%s3990_s2 + $0x1e8] sm:$0xff]   ;;  %v1388_v42 = vsel %vm467_vm0, %v1383_v36, %v1387_v32  ;;  %v2100_v36 = vshll.u32 %v3930_v29, 16 }
  0x7e   : > { %3254 = vmatprep.subr.bf16.mxu1 %v3430_v26 }
  0x7f   : > { %3175 = vmatmul.mubr.bf16.vlgmr.msra.gmra.mrb[32].mxu0 %v1340_v27  ;;  %v1579_v27 = vsel %vm847_vm1, %v1576_v22, %v1578_v33  ;;  %v2092_v22 = vshll.u32 %v3916_v14, 16  ;;  %v2257_v33 = vld [vmem:[#allocation2 + $0x10] sm:$0xe] }
  0x80   : > { %3207 = vmatmul.mubr.bf16.vlgmr.msra.gmra.mrb[32].mxu1 %v1567_v49  ;;  %3223 = vmatpush3.bf16.msra.mxu0 %v3429_v40  ;;  %v2044_v40 = vshll.u32 %v3862_v28, 16  ;;  %v2865_v38 = vcombine.low %v2257_v33, %v3838_v7  ;;  %v2285_v7 = vrot.slane %v3898_v57, 1 }
  0x81   : > { %3255 = vmatpush3.bf16.msra.mxu1 %v3430_v26  ;;  %3224 = vmatprep.subr.bf16.mxu0 %v3431_v41  ;;  %v3875_v26 = vld [vmem:[#allocation2 + $0x20] sm:$0xff]   ;;  %v2094_v32 = vrot.slane %v2092_v22, 1 }
  0x82   : > { %3256 = vmatprep.subr.bf16.mxu1 %v3432_v39  ;;  %3178 = vmatprep.mubr.bf16.mxu0 %v1348_v52  ;;  %v2046_v44 = vrot.slane %v2044_v40, 1  ;;  %v2052_v49 = vshll.u32 %v3875_v26, 16  ;;  %v2056_v53 = vshrl.u32 %v3875_v26, 16 }
  0x83   : > { %3210 = vmatprep.mubr.bf16.mxu1 %v1569_v55 }
  0x84   : > { %3225 = vmatpush3.bf16.msra.mxu0 %v3431_v41  ;;  %v3448_v41 = vld [vmem:[%s3990_s2 + $0x1f0] sm:$0xff]   ;;  %v2047_v52 = vsel %vm467_vm0, %v2042_v43, %v2046_v44  ;;  %v2050_v46 = vor.u32 %v2048_v48, %v2046_v44  ;;  %v2054_v55 = vrot.slane %v2052_v49, 1  ;;  %v3472_v44 = vld [vmem:[#allocation2 + $0x48] sm:$0xff]   ;;  %v2287_v48 = vrot.slane %v3900_v61, 1 }
  0x85   : > { %3257 = vmatpush3.bf16.msra.mxu1 %v3432_v39  ;;  %3226 = vmatprep.subr.bf16.mxu0 %v3435_v58  ;;  %v3450_v39 = vld [vmem:[%s3990_s2 + $0x1f8] sm:$0xff]   ;;  %v3474_v43 = vld [vmem:[%s3990_s2 + $0x230] sm:$0xff]  }
  0x86   : > { %3258 = vmatprep.subr.bf16.mxu1 %v3436_v59  ;;  %v2055_v51 = vsel %vm467_vm0, %v2050_v46, %v2054_v55  ;;  %v2291_v46 = vrot.slane %v3916_v14, 1 }
  0x87   : > { %3179 = vmatmul.mubr.bf16.gmra.mrb[36].mxu0 %v1356_v4 }
  0x88   : > { %3211 = vmatmul.mubr.bf16.gmra.mrb[36].mxu1 %v1571_v6  ;;  %3227 = vmatpush3.bf16.msra.mxu0 %v3435_v58  ;;  %v3454_v58 = vld [vmem:[#allocation2 + $0x18] sm:$0xff]   ;;  %v2066_v6 = vor.u32 %v2064_v0, %v2062_v60 }
  0x89   : > { %3259 = vmatpush3.bf16.msra.mxu1 %v3436_v59  ;;  %3228 = vmatprep.subr.bf16.mxu0 %v3437_v63  ;;  %v2058_v59 = vor.u32 %v2056_v53, %v2054_v55  ;;  %v2289_v53 = vrot.slane %v3914_v11, 1 }
  0x8a   : > { %3260 = vmatprep.subr.bf16.mxu1 %v3438_v8  ;;  %3182 = vmatprep.mubr.bf16.mxu0 %v1364_v10  ;;  %v3462_v10 = vld [vmem:[%s3990_s2 + $0x210] sm:$0xff]  }
  0x8b   : > { %3214 = vmatprep.mubr.bf16.mxu1 %v1573_v3  ;;  %v2063_v4 = vsel %vm467_vm0, %v2058_v59, %v2062_v60  ;;  %v2294_v59 = vsel %vm847_vm1, %v2291_v46, %v2293_v45 }
  0x8c   : > { %3229 = vmatpush3.bf16.msra.mxu0 %v3437_v63  ;;  %v3457_v63 = vld [vmem:[%s3990_s2 + $0x208] sm:$0xff]  }
  0x8d   : > { %3261 = vmatpush3.bf16.msra.mxu1 %v3438_v8  ;;  %3230 = vmatprep.subr.bf16.mxu0 %v3441_v17  ;;  %v2070_v8 = vrot.slane %v2068_v1, 1 }
  0x8e   : > { %3262 = vmatprep.subr.bf16.mxu1 %v3442_v18 }
  0x8f   : > { %3183 = vmatmul.mubr.bf16.gmra.mrb[40].mxu0 %v1372_v9  ;;  %v2074_v3 = vor.u32 %v2072_v5, %v2070_v8  ;;  %v2071_v15 = vsel %vm467_vm0, %v2066_v6, %v2070_v8 }
  0x90   : > { %3215 = vmatmul.mubr.bf16.gmra.mrb[40].mxu1 %v1575_v30  ;;  %3231 = vmatpush3.bf16.msra.mxu0 %v3441_v17  ;;  %v2080_v17 = vshrl.u32 %v3900_v61, 16  ;;  %v3466_v30 = vld [vmem:[#allocation2 + $0x38] sm:$0xff]  }
  0x91   : > { %3263 = vmatpush3.bf16.msra.mxu1 %v3442_v18  ;;  %3232 = vmatprep.subr.bf16.mxu0 %v3443_v23  ;;  %v2084_v18 = vshll.u32 %v3914_v11, 16  ;;  %v2079_v20 = vsel %vm467_vm0, %v2074_v3, %v2078_v13 }
  0x92   : > { %3264 = vmatprep.subr.bf16.mxu1 %v3444_v31  ;;  %3186 = vmatprep.mubr.bf16.mxu0 %v1380_v24  ;;  %v2082_v9 = vor.u32 %v2080_v17, %v2078_v13 }
  0x93   : > { %3218 = vmatprep.mubr.bf16.mxu1 %v1577_v34  ;;  %v3469_v34 = vld [vmem:[%s3990_s2 + $0x228] sm:$0xff]  }
  0x94   : > { %3233 = vmatpush3.bf16.msra.mxu0 %v3443_v23  ;;  %v2086_v23 = vrot.slane %v2084_v18, 1 }
  0x95   : > { %3265 = vmatpush3.bf16.msra.mxu1 %v3444_v31  ;;  %3234 = vmatprep.subr.bf16.mxu0 %v3447_v35 }
  0x96   : > { %3266 = vmatprep.subr.bf16.mxu1 %v3448_v41  ;;  %v2090_v31 = vor.u32 %v2088_v21, %v2086_v23  ;;  %v2087_v24 = vsel %vm467_vm0, %v2082_v9, %v2086_v23 }
  0x97   : > { %3187 = vmatmul.mubr.bf16.gmra.mrb[44].mxu0 %v1388_v42  ;;  %v2102_v42 = vrot.slane %v2100_v36, 1 }
  0x98   : > { %3219 = vmatmul.mubr.bf16.gmra.mrb[44].mxu1 %v1579_v27  ;;  %3235 = vmatpush3.bf16.msra.mxu0 %v3447_v35  ;;  %v2096_v35 = vshrl.u32 %v3916_v14, 16  ;;  %v2095_v40 = vsel %vm467_vm0, %v2090_v31, %v2094_v32  ;;  %v2278_v27 = vrot.slane %v2865_v38, 1 }
  0x99   : > { %3267 = vmatpush3.bf16.msra.mxu1 %v3448_v41  ;;  %3236 = vmatprep.subr.bf16.mxu0 %v3449_v47 }
  0x9a   : > { %3268 = vmatprep.subr.bf16.mxu1 %v3450_v39  ;;  %3238 = vmatprep.mubr.bf16.mxu0 %v3451_v50  ;;  %v2098_v41 = vor.u32 %v2096_v35, %v2094_v32 }
  0x9b   : > { %3270 = vmatprep.mubr.bf16.mxu1 %v2047_v52  ;;  %v2281_v52 = vrot.slane %v3875_v26, 1  ;;  %v2292_v26 = vsel %vm847_vm1, %v2289_v53, %v2291_v46 }
  0x9c   : > { %3237 = vmatpush3.bf16.msra.mxu0 %v3449_v47  ;;  %v2279_v47 = vrot.slane %v3862_v28, 1  ;;  %v2103_v49 = vsel %vm467_vm0, %v2098_v41, %v2102_v42  ;;  %v2288_v28 = vsel %vm847_vm1, %v2285_v7, %v2287_v48 }
  0x9d   : > { %3269 = vmatpush3.bf16.msra.mxu1 %v3450_v39  ;;  %3286 = vmatprep.subr.bf16.mxu0 %v3456_v56  ;;  %v3475_v39 = vld [vmem:[%s3990_s2 + $0x238] sm:$0xff]   ;;  %v2284_v57 = vsel %vm847_vm1, %v2281_v52, %v2283_v54 }
  0x9e   : > { %3318 = vmatprep.subr.bf16.mxu1 %v3456_v56  ;;  %v2280_v50 = vsel %vm847_vm1, %v2278_v27, %v2279_v47  ;;  %v2282_v55 = vsel %vm847_vm1, %v2279_v47, %v2281_v52 }
  0x9f   : > { %3239 = vmatmul.mubr.bf16.vlgmr.msra.gmra.mrb[48].mxu0 %v3454_v58  ;;  %v2286_v58 = vsel %vm847_vm1, %v2283_v54, %v2285_v7 }
  0xa0   : > { %3271 = vmatmul.mubr.bf16.vlgmr.msra.gmra.mrb[48].mxu1 %v2055_v51  ;;  %3287 = vmatpush3.bf16.msra.mxu0 %v3456_v56 }
  0xa1   : > { %3326 = vmatpush3.bf16.msra.mxu1 %v3456_v56  ;;  %3288 = vmatprep.subr.bf16.mxu0 %v3457_v63  ;;  %v2290_v56 = vsel %vm847_vm1, %v2287_v48, %v2289_v53 }
  0xa2   : > { %3319 = vmatprep.subr.bf16.mxu1 %v3457_v63  ;;  %3242 = vmatprep.mubr.bf16.mxu0 %v3458_v2 }
  0xa3   : > { %3274 = vmatprep.mubr.bf16.mxu1 %v2063_v4 }
  0xa4   : > { %3289 = vmatpush3.bf16.msra.mxu0 %v3457_v63 }
  0xa5   : > { %3327 = vmatpush3.bf16.msra.mxu1 %v3457_v63  ;;  %3290 = vmatprep.subr.bf16.mxu0 %v3462_v10 }
  0xa6   : > { %3320 = vmatprep.subr.bf16.mxu1 %v3462_v10 }
  0xa7   : > { %3243 = vmatmul.mubr.bf16.gmra.mrb[52].mxu0 %v3460_v12 }
  0xa8   : > { %3275 = vmatmul.mubr.bf16.gmra.mrb[52].mxu1 %v2071_v15  ;;  %3291 = vmatpush3.bf16.msra.mxu0 %v3462_v10 }
  0xa9   : > { %3328 = vmatpush3.bf16.msra.mxu1 %v3462_v10  ;;  %3292 = vmatprep.subr.bf16.mxu0 %v3463_v16 }
  0xaa   : > { %3321 = vmatprep.subr.bf16.mxu1 %v3463_v16  ;;  %3246 = vmatprep.mubr.bf16.mxu0 %v3464_v19 }
  0xab   : > { %3278 = vmatprep.mubr.bf16.mxu1 %v2079_v20 }
  0xac   : > { %3293 = vmatpush3.bf16.msra.mxu0 %v3463_v16 }
  0xad   : > { %3329 = vmatpush3.bf16.msra.mxu1 %v3463_v16  ;;  %3294 = vmatprep.subr.bf16.mxu0 %v3468_v25 }
  0xae   : > { %3322 = vmatprep.subr.bf16.mxu1 %v3468_v25 }
  0xaf   : > { %3247 = vmatmul.mubr.bf16.gmra.mrb[56].mxu0 %v3466_v30 }
  0xb0   : > { %3279 = vmatmul.mubr.bf16.gmra.mrb[56].mxu1 %v2087_v24  ;;  %3295 = vmatpush3.bf16.msra.mxu0 %v3468_v25 }
  0xb1   : > { %3330 = vmatpush3.bf16.msra.mxu1 %v3468_v25  ;;  %3296 = vmatprep.subr.bf16.mxu0 %v3469_v34 }
  0xb2   : > { %3323 = vmatprep.subr.bf16.mxu1 %v3469_v34  ;;  %3250 = vmatprep.mubr.bf16.mxu0 %v3470_v37 }
  0xb3   : > { %3282 = vmatprep.mubr.bf16.mxu1 %v2095_v40 }
  0xb4   : > { %3297 = vmatpush3.bf16.msra.mxu0 %v3469_v34 }
  0xb5   : > { %3331 = vmatpush3.bf16.msra.mxu1 %v3469_v34  ;;  %3298 = vmatprep.subr.bf16.mxu0 %v3474_v43 }
  0xb6   : > { %3324 = vmatprep.subr.bf16.mxu1 %v3474_v43 }
  0xb7   : > { %3251 = vmatmul.mubr.bf16.gmra.mrb[60].mxu0 %v3472_v44 }
  0xb8   : > { %3283 = vmatmul.mubr.bf16.gmra.mrb[60].mxu1 %v2103_v49  ;;  %3299 = vmatpush3.bf16.msra.mxu0 %v3474_v43 }
  0xb9   : > { %3332 = vmatpush3.bf16.msra.mxu1 %v3474_v43  ;;  %3300 = vmatprep.subr.bf16.mxu0 %v3475_v39 }
  0xba   : > { %3325 = vmatprep.subr.bf16.mxu1 %v3475_v39  ;;  %3302 = vmatprep.mubr.bf16.mxu0 %v2280_v50 }
  0xbb   : > { %3310 = vmatprep.mubr.bf16.mxu1 %v2288_v28 }
  0xbc   : > { %3301 = vmatpush3.bf16.msra.mxu0 %v3475_v39 }
  0xbd   : > { %3333 = vmatpush3.bf16.msra.mxu1 %v3475_v39 }
  0xbf   : > { %3303 = vmatmul.mubr.bf16.vlgmr.msra.gmra.mrb[64].mxu0 %v2282_v55 }
  0xc0   : > { %3311 = vmatmul.mubr.bf16.vlgmr.msra.gmra.mrb[64].mxu1 %v2290_v56  ;;  %3306 = vmatprep.mubr.bf16.mxu0 %v2284_v57 }
  0xc1   : > { %3314 = vmatprep.mubr.bf16.mxu1 %v2292_v26 }
  0xc7   : > { %3307 = vmatmul.mubr.bf16.gmra.mrb[68].mxu0 %v2286_v58 }
  0xc8   : > { %3315 = vmatmul.mubr.bf16.gmra.mrb[68].mxu1 %v2294_v59 }
 0x112   : > { %v3048_v60 = vpop.f32.mrb[0].mxu0 }
 0x113   : > { %v3080_v61 = vpop.f32.mrb[0].mxu1  ;;  %v626_v51 = vpop.f32.mrb[1].mxu0 }
 0x114   : > { %v779_v63 = vadd.f32 %v3080_v61, %v3048_v60  ;;  %v771_v0 = vpop.f32.mrb[1].mxu1  ;;  %v3049_v1 = vpop.f32.mrb[2].mxu0 }
 0x115   : > { %v772_v2 = vadd.f32 %v771_v0, %v626_v51  ;;  %v3081_v4 = vpop.f32.mrb[2].mxu1  ;;  %v629_v5 = vpop.f32.mrb[3].mxu0 }
 0x116   : > { %v774_v62 = vpop.f32.mrb[3].mxu1 }
 0x11a   : > { %v3052_v6 = vpop.f32.mrb[4].mxu0 }
 0x11b   : > { %v3084_v8 = vpop.f32.mrb[4].mxu1  ;;  %v640_v10 = vpop.f32.mrb[5].mxu0 }
 0x11c   : > { %v793_v11 = vadd.f32 %v3084_v8, %v3052_v6  ;;  %v785_v12 = vpop.f32.mrb[5].mxu1  ;;  %v3053_v3 = vpop.f32.mrb[6].mxu0 }
 0x11d   : > { %v786_v13 = vadd.f32 %v785_v12, %v640_v10  ;;  %v3085_v14 = vpop.f32.mrb[6].mxu1  ;;  %v643_v15 = vpop.f32.mrb[7].mxu0 }
 0x11e   : > { %v788_v16 = vpop.f32.mrb[7].mxu1 }
 0x122   : > { %v3056_v17 = vpop.f32.mrb[8].mxu0 }
 0x123   : > { %v3088_v18 = vpop.f32.mrb[8].mxu1  ;;  %v654_v19 = vpop.f32.mrb[9].mxu0 }
 0x124   : > { %v807_v20 = vadd.f32 %v3088_v18, %v3056_v17  ;;  %v799_v21 = vpop.f32.mrb[9].mxu1  ;;  %v3057_v22 = vpop.f32.mrb[10].mxu0 }
 0x125   : > { %v800_v9 = vadd.f32 %v799_v21, %v654_v19  ;;  %v3089_v23 = vpop.f32.mrb[10].mxu1  ;;  %v657_v25 = vpop.f32.mrb[11].mxu0 }
 0x126   : > { %v802_v29 = vpop.f32.mrb[11].mxu1 }
 0x12a   : > { %v3060_v30 = vpop.f32.mrb[12].mxu0 }
 0x12b   : > { %v3092_v31 = vpop.f32.mrb[12].mxu1  ;;  %v668_v32 = vpop.f32.mrb[13].mxu0 }
 0x12c   : > { %v821_v33 = vadd.f32 %v3092_v31, %v3060_v30  ;;  %v813_v24 = vpop.f32.mrb[13].mxu1  ;;  %v3061_v34 = vpop.f32.mrb[14].mxu0 }
 0x12d   : > { %v814_v35 = vadd.f32 %v813_v24, %v668_v32  ;;  %v3093_v36 = vpop.f32.mrb[14].mxu1  ;;  %v671_v37 = vpop.f32.mrb[15].mxu0 }
 0x12e   : > { %v816_v38 = vpop.f32.mrb[15].mxu1 }
 0x132   : > { %v3112_v40 = vpop.f32.mrb[16].mxu0 }
 0x133   : > { %v1011_v41 = vadd.f32 %v3112_v40, %v779_v63  ;;  %v3144_v42 = vpop.f32.mrb[16].mxu1  ;;  %v955_v43 = vpop.f32.mrb[17].mxu0 }
 0x134   : > { %v1010_v44 = vadd.f32 %v955_v43, %v772_v2  ;;  %v1181_v27 = vpop.f32.mrb[17].mxu1  ;;  %v3113_v47 = vpop.f32.mrb[18].mxu0 }
 0x135   : > { %v1237_v7 = vadd.f32 %v3144_v42, %v1011_v41  ;;  %v3145_v48 = vpop.f32.mrb[18].mxu1  ;;  %v958_v49 = vpop.f32.mrb[19].mxu0 }
 0x136   : > { %v1236_v39 = vadd.f32 %v1181_v27, %v1010_v44  ;;  %v1184_v50 = vpop.f32.mrb[19].mxu1 }
 0x13a   : > { %v3116_v28 = vpop.f32.mrb[20].mxu0 }
 0x13b   : > { %v1013_v52 = vadd.f32 %v3116_v28, %v793_v11  ;;  %v3148_v53 = vpop.f32.mrb[20].mxu1  ;;  %v969_v54 = vpop.f32.mrb[21].mxu0 }
 0x13c   : > { %v1012_v46 = vadd.f32 %v969_v54, %v786_v13  ;;  %v1195_v55 = vpop.f32.mrb[21].mxu1  ;;  %v3117_v56 = vpop.f32.mrb[22].mxu0 }
 0x13d   : > { %v1239_v57 = vadd.f32 %v3148_v53, %v1013_v52  ;;  %v3149_v26 = vpop.f32.mrb[22].mxu1  ;;  %v972_v45 = vpop.f32.mrb[23].mxu0 }
 0x13e   : > { %v1238_v58 = vadd.f32 %v1195_v55, %v1012_v46  ;;  %v1198_v59 = vpop.f32.mrb[23].mxu1 }
 0x142   : > { %v3120_v60 = vpop.f32.mrb[24].mxu0 }
 0x143   : > { %v1015_v61 = vadd.f32 %v3120_v60, %v807_v20  ;;  %v3152_v51 = vpop.f32.mrb[24].mxu1  ;;  %v983_v63 = vpop.f32.mrb[25].mxu0 }
 0x144   : > { %v1014_v0 = vadd.f32 %v983_v63, %v800_v9  ;;  %v1209_v1 = vpop.f32.mrb[25].mxu1  ;;  %v3121_v2 = vpop.f32.mrb[26].mxu0 }
 0x145   : > { %v1241_v4 = vadd.f32 %v3152_v51, %v1015_v61  ;;  %v3153_v5 = vpop.f32.mrb[26].mxu1  ;;  %v986_v62 = vpop.f32.mrb[27].mxu0 }
 0x146   : > { %v1240_v6 = vadd.f32 %v1209_v1, %v1014_v0  ;;  %v1212_v8 = vpop.f32.mrb[27].mxu1 }
 0x14a   : > { %v3124_v10 = vpop.f32.mrb[28].mxu0 }
 0x14b   : > { %v1017_v11 = vadd.f32 %v3124_v10, %v821_v33  ;;  %v3156_v12 = vpop.f32.mrb[28].mxu1  ;;  %v997_v3 = vpop.f32.mrb[29].mxu0 }
 0x14c   : > { %v1016_v13 = vadd.f32 %v997_v3, %v814_v35  ;;  %v1223_v14 = vpop.f32.mrb[29].mxu1  ;;  %v3125_v15 = vpop.f32.mrb[30].mxu0 }
 0x14d   : > { %v1243_v16 = vadd.f32 %v3156_v12, %v1017_v11  ;;  %v3157_v17 = vpop.f32.mrb[30].mxu1  ;;  %v1000_v18 = vpop.f32.mrb[31].mxu0 }
 0x14e   : > { %v1242_v19 = vadd.f32 %v1223_v14, %v1016_v13  ;;  %v1226_v20 = vpop.f32.mrb[31].mxu1 }
 0x152   : > { %v3176_v21 = vpop.f32.mrb[32].mxu0 }
 0x153   : > { %v1535_v22 = vadd.f32 %v3176_v21, %v1237_v7  ;;  %v3208_v9 = vpop.f32.mrb[32].mxu1  ;;  %v1479_v23 = vpop.f32.mrb[33].mxu0 }
 0x154   : > { %v1534_v25 = vadd.f32 %v1479_v23, %v1236_v39  ;;  %v1670_v29 = vpop.f32.mrb[33].mxu1  ;;  %v3177_v30 = vpop.f32.mrb[34].mxu0 }
 0x155   : > { %v1726_v31 = vadd.f32 %v3208_v9, %v1535_v22  ;;  %v3209_v32 = vpop.f32.mrb[34].mxu1  ;;  %v1482_v33 = vpop.f32.mrb[35].mxu0 }
 0x156   : > { %v1725_v24 = vadd.f32 %v1670_v29, %v1534_v25  ;;  %v1673_v34 = vpop.f32.mrb[35].mxu1 }
 0x15a   : > { %v3180_v35 = vpop.f32.mrb[36].mxu0 }
 0x15b   : > { %v1537_v36 = vadd.f32 %v3180_v35, %v1239_v57  ;;  %v3212_v37 = vpop.f32.mrb[36].mxu1  ;;  %v1493_v38 = vpop.f32.mrb[37].mxu0 }
 0x15c   : > { %v1536_v40 = vadd.f32 %v1493_v38, %v1238_v58  ;;  %v1684_v41 = vpop.f32.mrb[37].mxu1  ;;  %v3181_v42 = vpop.f32.mrb[38].mxu0 }
 0x15d   : > { %v1728_v43 = vadd.f32 %v3212_v37, %v1537_v36  ;;  %v3213_v44 = vpop.f32.mrb[38].mxu1  ;;  %v1496_v27 = vpop.f32.mrb[39].mxu0 }
 0x15e   : > { %v1727_v47 = vadd.f32 %v1684_v41, %v1536_v40  ;;  %v1687_v7 = vpop.f32.mrb[39].mxu1 }
 0x162   : > { %v3184_v48 = vpop.f32.mrb[40].mxu0 }
 0x163   : > { %v1539_v49 = vadd.f32 %v3184_v48, %v1241_v4  ;;  %v3216_v39 = vpop.f32.mrb[40].mxu1  ;;  %v1507_v50 = vpop.f32.mrb[41].mxu0 }
 0x164   : > { %v1538_v28 = vadd.f32 %v1507_v50, %v1240_v6  ;;  %v1698_v52 = vpop.f32.mrb[41].mxu1  ;;  %v3185_v53 = vpop.f32.mrb[42].mxu0 }
 0x165   : > { %v1730_v54 = vadd.f32 %v3216_v39, %v1539_v49  ;;  %v3217_v46 = vpop.f32.mrb[42].mxu1  ;;  %v1510_v55 = vpop.f32.mrb[43].mxu0 }
 0x166   : > { %v1729_v56 = vadd.f32 %v1698_v52, %v1538_v28  ;;  %v1701_v57 = vpop.f32.mrb[43].mxu1  ;;  %v2449_v55 = vld [vmem:[%s3557_s23 + $0x8] sm:$0xff] }
 0x16a   : > { %v3188_v26 = vpop.f32.mrb[44].mxu0 }
 0x16b   : > { %v1541_v45 = vadd.f32 %v3188_v26, %v1243_v16  ;;  %v3220_v58 = vpop.f32.mrb[44].mxu1  ;;  %v1521_v59 = vpop.f32.mrb[45].mxu0  ;;  %v2453_v26 = vld [vmem:[%s3557_s23 + $0x28] sm:$0xff] }
 0x16c   : > { %v1540_v60 = vadd.f32 %v1521_v59, %v1242_v19  ;;  %v1712_v61 = vpop.f32.mrb[45].mxu1  ;;  %v3189_v51 = vpop.f32.mrb[46].mxu0 }
 0x16d   : > { %v1732_v63 = vadd.f32 %v3220_v58, %v1541_v45  ;;  %v3221_v0 = vpop.f32.mrb[46].mxu1  ;;  %v1524_v1 = vpop.f32.mrb[47].mxu0  ;;  %v2448_v58 = vld [vmem:[%s3557_s23] sm:$0xff] }
 0x16e   : > { %v1731_v2 = vadd.f32 %v1712_v61, %v1540_v60  ;;  %v1715_v4 = vpop.f32.mrb[47].mxu1  ;;  %v2452_v51 = vld [vmem:[%s3557_s23 + $0x20] sm:$0xff] }
 0x172   : > { %v3240_v5 = vpop.f32.mrb[48].mxu0 }
 0x173   : > { %v1952_v62 = vadd.f32 %v3240_v5, %v1726_v31  ;;  %v3272_v6 = vpop.f32.mrb[48].mxu1  ;;  %v1896_v8 = vpop.f32.mrb[49].mxu0 }
 0x174   : > { %v1951_v10 = vadd.f32 %v1896_v8, %v1725_v24  ;;  %v2194_v11 = vpop.f32.mrb[49].mxu1  ;;  %v3241_v12 = vpop.f32.mrb[50].mxu0 }
 0x175   : > { %v2250_v3 = vadd.f32 %v3272_v6, %v1952_v62  ;;  %v3273_v13 = vpop.f32.mrb[50].mxu1  ;;  %v1899_v14 = vpop.f32.mrb[51].mxu0 }
 0x176   : > { %v2249_v15 = vadd.f32 %v2194_v11, %v1951_v10  ;;  %v2197_v16 = vpop.f32.mrb[51].mxu1  ;;  %v2451_v11 = vld [vmem:[%s3557_s23 + $0x18] sm:$0xff] }
 0x177   : > { %v2455_v13 = vld [vmem:[%s3557_s23 + $0x38] sm:$0xff] }
 0x17a   : > { %v3244_v17 = vpop.f32.mrb[52].mxu0 }
 0x17b   : > { %v1954_v18 = vadd.f32 %v3244_v17, %v1728_v43  ;;  %v3276_v19 = vpop.f32.mrb[52].mxu1  ;;  %v1910_v20 = vpop.f32.mrb[53].mxu0 }
 0x17c   : > { %v1953_v21 = vadd.f32 %v1910_v20, %v1727_v47  ;;  %v2208_v22 = vpop.f32.mrb[53].mxu1  ;;  %v3245_v9 = vpop.f32.mrb[54].mxu0 }
 0x17d   : > { %v2252_v23 = vadd.f32 %v3276_v19, %v1954_v18  ;;  %v3277_v25 = vpop.f32.mrb[54].mxu1  ;;  %v1913_v29 = vpop.f32.mrb[55].mxu0  ;;  %v2454_v19 = vld [vmem:[%s3557_s23 + $0x30] sm:$0xff] }
 0x17e   : > { %v2251_v30 = vadd.f32 %v2208_v22, %v1953_v21  ;;  %v2211_v31 = vpop.f32.mrb[55].mxu1 }
 0x182   : > { %v3248_v32 = vpop.f32.mrb[56].mxu0 }
 0x183   : > { %v1956_v33 = vadd.f32 %v3248_v32, %v1730_v54  ;;  %v3280_v24 = vpop.f32.mrb[56].mxu1  ;;  %v1924_v34 = vpop.f32.mrb[57].mxu0 }
 0x184   : > { %v1955_v35 = vadd.f32 %v1924_v34, %v1729_v56  ;;  %v2222_v36 = vpop.f32.mrb[57].mxu1  ;;  %v3249_v37 = vpop.f32.mrb[58].mxu0 }
 0x185   : > { %v2254_v38 = vadd.f32 %v3280_v24, %v1956_v33  ;;  %v3281_v40 = vpop.f32.mrb[58].mxu1  ;;  %v1927_v41 = vpop.f32.mrb[59].mxu0 }
 0x186   : > { %v2253_v42 = vadd.f32 %v2222_v36, %v1955_v35  ;;  %v2225_v43 = vpop.f32.mrb[59].mxu1 }
 0x18a   : > { %v3252_v44 = vpop.f32.mrb[60].mxu0 }
 0x18b   : > { %v1958_v27 = vadd.f32 %v3252_v44, %v1732_v63  ;;  %v3284_v47 = vpop.f32.mrb[60].mxu1  ;;  %v1938_v7 = vpop.f32.mrb[61].mxu0 }
 0x18c   : > { %v1957_v48 = vadd.f32 %v1938_v7, %v1731_v2  ;;  %v2236_v49 = vpop.f32.mrb[61].mxu1  ;;  %v3253_v39 = vpop.f32.mrb[62].mxu0 }
 0x18d   : > { %v2256_v50 = vadd.f32 %v3284_v47, %v1958_v27  ;;  %v3285_v28 = vpop.f32.mrb[62].mxu1  ;;  %v1941_v52 = vpop.f32.mrb[63].mxu0 }
 0x18e   : > { %v2255_v53 = vadd.f32 %v2236_v49, %v1957_v48  ;;  %v2239_v54 = vpop.f32.mrb[63].mxu1 }
 0x192   : > { %v3304_v46 = vpop.f32.mrb[64].mxu0 }
 0x193   : > { %v2441_v56 = vadd.f32 %v3304_v46, %v2250_v3  ;;  %v3312_v57 = vpop.f32.mrb[64].mxu1  ;;  %v2385_v45 = vpop.f32.mrb[65].mxu0 }
 0x194   : > { %v2445_v59 = vadd.f32 %v3312_v57, %v2254_v38  ;;  %v2440_v60 = vadd.f32 %v2385_v45, %v2249_v15  ;;  %v2413_v61 = vpop.f32.mrb[65].mxu1  ;;  %v3305_v63 = vpop.f32.mrb[66].mxu0  ;;  %v2450_v15 = vld [vmem:[%s3557_s23 + $0x10] sm:$0xff] }
 0x195   : > { %v2457_v0 = vadd.f32 %v2449_v55, %v2441_v56  ;;  %v2444_v1 = vadd.f32 %v2413_v61, %v2253_v42  ;;  %v3313_v2 = vpop.f32.mrb[66].mxu1  ;;  %v2388_v4 = vpop.f32.mrb[67].mxu0 }
 0x196   : > { %v2461_v5 = vadd.f32 %v2453_v26, %v2445_v59  ;;  %v2456_v62 = vadd.f32 %v2448_v58, %v2440_v60  ;;  %v2416_v6 = vpop.f32.mrb[67].mxu1 }
 0x197   : > { %2465 = vst [vmem:[%s3562_s26 + $0x8] sm:$0xff] %v2457_v0  ;;  %v2460_v8 = vadd.f32 %v2452_v51, %v2444_v1 }
 0x198   : > { %2469 = vst [vmem:[%s3562_s26 + $0x28] sm:$0xff] %v2461_v5  ;;  %2464 = vst [vmem:[%s3562_s26] sm:$0xff] %v2456_v62 }
 0x199   : > { %2468 = vst [vmem:[%s3562_s26 + $0x20] sm:$0xff] %v2460_v8 }
 0x19a   : > { %v3308_v10 = vpop.f32.mrb[68].mxu0 }
 0x19b   : > { %v2443_v12 = vadd.f32 %v3308_v10, %v2252_v23  ;;  %v3316_v3 = vpop.f32.mrb[68].mxu1  ;;  %v2399_v14 = vpop.f32.mrb[69].mxu0 }
 0x19c   : > { %v2447_v16 = vadd.f32 %v3316_v3, %v2256_v50  ;;  %v2442_v17 = vadd.f32 %v2399_v14, %v2251_v30  ;;  %v2427_v18 = vpop.f32.mrb[69].mxu1  ;;  %v3309_v20 = vpop.f32.mrb[70].mxu0 }
 0x19d   : > { %v2459_v21 = vadd.f32 %v2451_v11, %v2443_v12  ;;  %v2446_v22 = vadd.f32 %v2427_v18, %v2255_v53  ;;  %v3317_v9 = vpop.f32.mrb[70].mxu1  ;;  %v2402_v25 = vpop.f32.mrb[71].mxu0 }
 0x19e   : > { %v2463_v29 = vadd.f32 %v2455_v13, %v2447_v16  ;;  %v2458_v31 = vadd.f32 %v2450_v15, %v2442_v17  ;;  %v2430_v23 = vpop.f32.mrb[71].mxu1 }
 0x19f   : > { %2467 = vst [vmem:[%s3562_s26 + $0x18] sm:$0xff] %v2459_v21  ;;  %v2462_v32 = vadd.f32 %v2454_v19, %v2446_v22 }
 0x1a0   : > { %2471 = vst [vmem:[%s3562_s26 + $0x38] sm:$0xff] %v2463_v29  ;;  %2466 = vst [vmem:[%s3562_s26 + $0x10] sm:$0xff] %v2458_v31 }
 0x1a1   : > { %2470 = vst [vmem:[%s3562_s26 + $0x30] sm:$0xff] %v2462_v32 }
 0x1a2 PF: > { %s13_s14 = sadd.s32 1, %s3505_s14   ;;  %s3992_s12 = smov %s3501_s13 }
 0x1a3   : > { %p10_p5 = scmp.ge.s32.totalorder %s13_s14, 4   ;;  %s3993_s13 = smov %s3995_s15 }
 0x1a5   :  { %12 = sbr.rel (!%p10_p5) target bundleno = 2 (0x2), region = 205 }
 0x1ac   :  { %2502 = vsyncmov [#allocation3] }
 0x1af   :  { %s2503_s23 = vpop.sfrf %2502 }
 0x1b0   :  { %p2876_p6 = scmp.ne.s32.totalorder %s2503_s23, 0 }
 0x1b2   :  { %2507 = shalt.err (%p2876_p6)  }
 0x1b3   :  { %2509 = vsyncmov [#allocation3 + $0x1] }
 0x1b6   :  { %s2510_s19 = vpop.sfrf %2509 }
 0x1b7   :  { %p2877_p7 = scmp.ne.s32.totalorder %s2510_s19, 0 }
 0x1b9   :  { %2514 = shalt.err (%p2877_p7)  }
 0x1ba   :  { %2516 = vsyncmov [#allocation3 + $0x2] }
 0x1bd   :  { %s2517_s26 = vpop.sfrf %2516 }
 0x1be   :  { %p2878_p8 = scmp.ne.s32.totalorder %s2517_s26, 0 }
 0x1c0   :  { %2521 = shalt.err (%p2878_p8)  }

// kernel: preact_unit_forward.2
= control target key start
LH: loop header
LB: loop body
LE: loop exit
PB: predicated region body
PF: predicated region fallthrough
CT: control target
= control target key end

     0   :  { %s5004_s27 = smov 0   ;;  %s5006_s28 = smov 0   ;;  %s6216_s0 = inlined_call_operand.vmem [shape: f32[2,18,32,128], index: 0, kind: input, shape index: {}]   ;;  %s6217_s1 = inlined_call_operand.vmem [shape: bf16[9,128,128], index: 1, kind: input, shape index: {}]   ;;  %s6218_s2 = inlined_call_operand.vmem [shape: f32[1,128], index: 2, kind: input, shape index: {}]   ;;  %s6219_s3 = inlined_call_operand.vmem [shape: f32[1,128], index: 3, kind: input, shape index: {}]   ;;  %s6220_s4 = inlined_call_operand.vmem [shape: f32[1,128], index: 4, kind: input, shape index: {}]   ;;  %s6221_s5 = inlined_call_operand.vmem [shape: f32[1,128], index: 5, kind: input, shape index: {}]   ;;  %s6222_s6 = inlined_call_operand.vmem [shape: bf16[128,128], index: 6, kind: input, shape index: {}]   ;;  %s6223_s7 = inlined_call_operand.vmem [shape: bf16[2,128,128], index: 7, kind: output, shape index: {0}]   ;;  %s6224_s8 = inlined_call_operand.vmem [shape: f32[2,8,8,128], index: 8, kind: output, shape index: {1}]  }
   0x1   :  { %s5008_s29 = smov 0  }
   0x2 LB: > { %s31_s30 = sadd.s32 1, %s4951_s28  ;;  %p3851_p0 = scmp.ge.s32.totalorder %s4955_s29, 1  ;;  %s4955_s29 = sphi %s5008_s29, %s19_s29   ;;  %s4951_s28 = sphi %s5006_s28, %s6258_s28   ;;  %s4947_s27 = sphi %s5004_s27, %s6257_s27  }
   0x3   : > { %p33_p1 = scmp.ge.s32.totalorder %s31_s30, 2  ;;  %p247_p2 = scmp.lt.s32.totalorder %s4955_s29, 3 }
   0x5   : > { %s6260_s30 = smov (%p33_p1, %s31_s30), 0  ;;  %p248_p3 = pnand %p3851_p0, %p247_p2 }
   0x6   : > { %p288_p4 = scmp.lt.s32.totalorder (!%p248_p3), %s4947_s27, 1  ;;  %s310_s9 = smul.u32 (!%p248_p3), 576, %s4947_s27 }
   0x7   : > { %251 = sbr.rel (%p248_p3) target bundleno = 483 (0x1e3), region = 44 }
   0x8   : > { %s5025_s12 = scalar_lea.vmem (!%p248_p3), %s6216_s0, %s310_s9 }
   0x9   : > { %v353_v0 = vld [vmem:[%s5025_s12 + $0x20] sm:$0xff] (!%p248_p3)  ;;  %v355_v1 = vld [vmem:[%s5025_s12 + $0x28] sm:$0xff] (!%p248_p3)  ;;  %v357_v2 = vld [vmem:[%s5025_s12 + $0x30] sm:$0xff] (!%p248_p3) }
   0xa   : > { %354 = vst [vmem:[#allocation2 + $0x20] sm:$0xff] (!%p248_p3), %v353_v0  ;;  %356 = vst [vmem:[#allocation2 + $0x28] sm:$0xff] (!%p248_p3), %v355_v1  ;;  %v359_v3 = vld [vmem:[%s5025_s12 + $0x38] sm:$0xff] (!%p248_p3)  ;;  %v361_v4 = vld [vmem:[%s5025_s12 + $0x40] sm:$0xff] (!%p248_p3) }
   0xb   : > { %358 = vst [vmem:[#allocation2 + $0x30] sm:$0xff] (!%p248_p3), %v357_v2  ;;  %360 = vst [vmem:[#allocation2 + $0x38] sm:$0xff] (!%p248_p3), %v359_v3  ;;  %v363_v5 = vld [vmem:[%s5025_s12 + $0x48] sm:$0xff] (!%p248_p3)  ;;  %v365_v6 = vld [vmem:[%s5025_s12 + $0x50] sm:$0xff] (!%p248_p3) }
   0xc   : > { %362 = vst [vmem:[#allocation2 + $0x40] sm:$0xff] (!%p248_p3), %v361_v4  ;;  %v367_v7 = vld [vmem:[%s5025_s12 + $0x58] sm:$0xff] (!%p248_p3)  ;;  %364 = vst [vmem:[#allocation2 + $0x48] sm:$0xff] (!%p248_p3), %v363_v5  ;;  %v369_v8 = vld [vmem:[%s5025_s12 + $0x60] sm:$0xff] (!%p248_p3) }
   0xd   : > { %366 = vst [vmem:[#allocation2 + $0x50] sm:$0xff] (!%p248_p3), %v365_v6  ;;  %368 = vst [vmem:[#allocation2 + $0x58] sm:$0xff] (!%p248_p3), %v367_v7  ;;  %v371_v9 = vld [vmem:[%s5025_s12 + $0x68] sm:$0xff] (!%p248_p3)  ;;  %v373_v10 = vld [vmem:[%s5025_s12 + $0x70] sm:$0xff] (!%p248_p3) }
   0xe   : > { %s6262_s27 = smov (!%p288_p4, %s4947_s27), 1  ;;  %370 = vst [vmem:[#allocation2 + $0x60] sm:$0xff] %v369_v8  ;;  %372 = vst [vmem:[#allocation2 + $0x68] sm:$0xff] %v371_v9  ;;  %v375_v11 = vld [vmem:[%s5025_s12 + $0x78] sm:$0xff]  ;;  %v377_v12 = vld [vmem:[%s5025_s12 + $0x80] sm:$0xff] }
   0xf   : > { %s4087_s13 = sshll.u32 %s6262_s27, 6  ;;  %374 = vst [vmem:[#allocation2 + $0x70] sm:$0xff] %v373_v10  ;;  %v379_v13 = vld [vmem:[%s5025_s12 + $0x88] sm:$0xff]  ;;  %376 = vst [vmem:[#allocation2 + $0x78] sm:$0xff] %v375_v11  ;;  %v381_v14 = vld [vmem:[%s5025_s12 + $0x90] sm:$0xff] }
  0x10   : > { %s5030_s16 = scalar_lea.vmem %s6223_s7, %s4087_s13  ;;  %s5035_s19 = scalar_lea.vmem %s6224_s8, %s4087_s13  ;;  %378 = vst [vmem:[#allocation2 + $0x80] sm:$0xff] %v377_v12  ;;  %380 = vst [vmem:[#allocation2 + $0x88] sm:$0xff] %v379_v13  ;;  %v383_v15 = vld [vmem:[%s5025_s12 + $0x98] sm:$0xff]  ;;  %v385_v16 = vld [vmem:[%s5025_s12 + $0xa0] sm:$0xff] }
  0x11   : > { %382 = vst [vmem:[#allocation2 + $0x90] sm:$0xff] %v381_v14  ;;  %384 = vst [vmem:[#allocation2 + $0x98] sm:$0xff] %v383_v15  ;;  %v387_v17 = vld [vmem:[%s5025_s12 + $0xa8] sm:$0xff]  ;;  %v389_v18 = vld [vmem:[%s5025_s12 + $0xb0] sm:$0xff] }
  0x12   : > { %386 = vst [vmem:[#allocation2 + $0xa0] sm:$0xff] %v385_v16  ;;  %v391_v19 = vld [vmem:[%s5025_s12 + $0xb8] sm:$0xff]  ;;  %388 = vst [vmem:[#allocation2 + $0xa8] sm:$0xff] %v387_v17  ;;  %v393_v20 = vld [vmem:[%s5025_s12 + $0xc0] sm:$0xff] }
  0x13   : > { %390 = vst [vmem:[#allocation2 + $0xb0] sm:$0xff] %v389_v18  ;;  %392 = vst [vmem:[#allocation2 + $0xb8] sm:$0xff] %v391_v19  ;;  %v395_v21 = vld [vmem:[%s5025_s12 + $0xc8] sm:$0xff]  ;;  %v397_v22 = vld [vmem:[%s5025_s12 + $0xd0] sm:$0xff] }
  0x14   : > { %394 = vst [vmem:[#allocation2 + $0xc0] sm:$0xff] %v393_v20  ;;  %396 = vst [vmem:[#allocation2 + $0xc8] sm:$0xff] %v395_v21  ;;  %v399_v23 = vld [vmem:[%s5025_s12 + $0xd8] sm:$0xff]  ;;  %v401_v24 = vld [vmem:[%s5025_s12 + $0xe0] sm:$0xff] }
  0x15   : > { %398 = vst [vmem:[#allocation2 + $0xd0] sm:$0xff] %v397_v22  ;;  %v403_v25 = vld [vmem:[%s5025_s12 + $0xe8] sm:$0xff]  ;;  %400 = vst [vmem:[#allocation2 + $0xd8] sm:$0xff] %v399_v23  ;;  %v405_v26 = vld [vmem:[%s5025_s12 + $0xf0] sm:$0xff] }
  0x16   : > { %402 = vst [vmem:[#allocation2 + $0xe0] sm:$0xff] %v401_v24  ;;  %404 = vst [vmem:[#allocation2 + $0xe8] sm:$0xff] %v403_v25  ;;  %v407_v27 = vld [vmem:[%s5025_s12 + $0xf8] sm:$0xff]  ;;  %v409_v28 = vld [vmem:[%s5025_s12 + $0x100] sm:$0xff] }
  0x17   : > { %406 = vst [vmem:[#allocation2 + $0xf0] sm:$0xff] %v405_v26  ;;  %408 = vst [vmem:[#allocation2 + $0xf8] sm:$0xff] %v407_v27  ;;  %v411_v29 = vld [vmem:[%s5025_s12 + $0x108] sm:$0xff]  ;;  %v413_v30 = vld [vmem:[%s5025_s12 + $0x110] sm:$0xff] }
  0x18   : > { %410 = vst [vmem:[#allocation2 + $0x100] sm:$0xff] %v409_v28  ;;  %v415_v31 = vld [vmem:[%s5025_s12 + $0x118] sm:$0xff]  ;;  %412 = vst [vmem:[#allocation2 + $0x108] sm:$0xff] %v411_v29  ;;  %v417_v32 = vld [vmem:[%s5025_s12 + $0x120] sm:$0xff] }
  0x19   : > { %414 = vst [vmem:[#allocation2 + $0x110] sm:$0xff] %v413_v30  ;;  %416 = vst [vmem:[#allocation2 + $0x118] sm:$0xff] %v415_v31  ;;  %v419_v33 = vld [vmem:[%s5025_s12 + $0x128] sm:$0xff]  ;;  %v421_v34 = vld [vmem:[%s5025_s12 + $0x130] sm:$0xff] }
  0x1a   : > { %418 = vst [vmem:[#allocation2 + $0x120] sm:$0xff] %v417_v32  ;;  %420 = vst [vmem:[#allocation2 + $0x128] sm:$0xff] %v419_v33  ;;  %v423_v35 = vld [vmem:[%s5025_s12 + $0x138] sm:$0xff]  ;;  %v425_v36 = vld [vmem:[%s5025_s12 + $0x140] sm:$0xff] }
  0x1b   : > { %422 = vst [vmem:[#allocation2 + $0x130] sm:$0xff] %v421_v34  ;;  %v427_v37 = vld [vmem:[%s5025_s12 + $0x148] sm:$0xff]  ;;  %424 = vst [vmem:[#allocation2 + $0x138] sm:$0xff] %v423_v35  ;;  %v429_v38 = vld [vmem:[%s5025_s12 + $0x150] sm:$0xff] }
  0x1c   : > { %426 = vst [vmem:[#allocation2 + $0x140] sm:$0xff] %v425_v36  ;;  %428 = vst [vmem:[#allocation2 + $0x148] sm:$0xff] %v427_v37  ;;  %v431_v39 = vld [vmem:[%s5025_s12 + $0x158] sm:$0xff]  ;;  %v433_v40 = vld [vmem:[%s5025_s12 + $0x160] sm:$0xff] }
  0x1d   : > { %430 = vst [vmem:[#allocation2 + $0x150] sm:$0xff] %v429_v38  ;;  %432 = vst [vmem:[#allocation2 + $0x158] sm:$0xff] %v431_v39  ;;  %v435_v41 = vld [vmem:[%s5025_s12 + $0x168] sm:$0xff]  ;;  %v437_v42 = vld [vmem:[%s5025_s12 + $0x170] sm:$0xff] }
  0x1e   : > { %434 = vst [vmem:[#allocation2 + $0x160] sm:$0xff] %v433_v40  ;;  %v439_v43 = vld [vmem:[%s5025_s12 + $0x178] sm:$0xff]  ;;  %436 = vst [vmem:[#allocation2 + $0x168] sm:$0xff] %v435_v41  ;;  %v441_v44 = vld [vmem:[%s5025_s12 + $0x180] sm:$0xff] }
  0x1f   : > { %438 = vst [vmem:[#allocation2 + $0x170] sm:$0xff] %v437_v42  ;;  %440 = vst [vmem:[#allocation2 + $0x178] sm:$0xff] %v439_v43  ;;  %v443_v45 = vld [vmem:[%s5025_s12 + $0x188] sm:$0xff]  ;;  %v445_v46 = vld [vmem:[%s5025_s12 + $0x190] sm:$0xff] }
  0x20   : > { %442 = vst [vmem:[#allocation2 + $0x180] sm:$0xff] %v441_v44  ;;  %444 = vst [vmem:[#allocation2 + $0x188] sm:$0xff] %v443_v45  ;;  %v447_v47 = vld [vmem:[%s5025_s12 + $0x198] sm:$0xff]  ;;  %v449_v48 = vld [vmem:[%s5025_s12 + $0x1a0] sm:$0xff] }
  0x21   : > { %446 = vst [vmem:[#allocation2 + $0x190] sm:$0xff] %v445_v46  ;;  %v451_v49 = vld [vmem:[%s5025_s12 + $0x1a8] sm:$0xff]  ;;  %448 = vst [vmem:[#allocation2 + $0x198] sm:$0xff] %v447_v47  ;;  %v453_v50 = vld [vmem:[%s5025_s12 + $0x1b0] sm:$0xff] }
  0x22   : > { %450 = vst [vmem:[#allocation2 + $0x1a0] sm:$0xff] %v449_v48  ;;  %452 = vst [vmem:[#allocation2 + $0x1a8] sm:$0xff] %v451_v49  ;;  %v455_v51 = vld [vmem:[%s5025_s12 + $0x1b8] sm:$0xff]  ;;  %v457_v52 = vld [vmem:[%s5025_s12 + $0x1c0] sm:$0xff] }
  0x23   : > { %454 = vst [vmem:[#allocation2 + $0x1b0] sm:$0xff] %v453_v50  ;;  %456 = vst [vmem:[#allocation2 + $0x1b8] sm:$0xff] %v455_v51  ;;  %v459_v53 = vld [vmem:[%s5025_s12 + $0x1c8] sm:$0xff]  ;;  %v461_v54 = vld [vmem:[%s5025_s12 + $0x1d0] sm:$0xff] }
  0x24   : > { %458 = vst [vmem:[#allocation2 + $0x1c0] sm:$0xff] %v457_v52  ;;  %v463_v55 = vld [vmem:[%s5025_s12 + $0x1d8] sm:$0xff]  ;;  %460 = vst [vmem:[#allocation2 + $0x1c8] sm:$0xff] %v459_v53  ;;  %v465_v56 = vld [vmem:[%s5025_s12 + $0x1e0] sm:$0xff] }
  0x25   : > { %462 = vst [vmem:[#allocation2 + $0x1d0] sm:$0xff] %v461_v54  ;;  %464 = vst [vmem:[#allocation2 + $0x1d8] sm:$0xff] %v463_v55  ;;  %v467_v57 = vld [vmem:[%s5025_s12 + $0x1e8] sm:$0xff]  ;;  %v469_v58 = vld [vmem:[%s5025_s12 + $0x1f0] sm:$0xff] }
  0x26   : > { %466 = vst [vmem:[#allocation2 + $0x1e0] sm:$0xff] %v465_v56  ;;  %468 = vst [vmem:[#allocation2 + $0x1e8] sm:$0xff] %v467_v57  ;;  %v471_v59 = vld [vmem:[%s5025_s12 + $0x1f8] sm:$0xff]  ;;  %v473_v60 = vld [vmem:[%s5025_s12 + $0x200] sm:$0xff] }
  0x27   : > { %470 = vst [vmem:[#allocation2 + $0x1f0] sm:$0xff] %v469_v58  ;;  %v475_v61 = vld [vmem:[%s5025_s12 + $0x208] sm:$0xff]  ;;  %472 = vst [vmem:[#allocation2 + $0x1f8] sm:$0xff] %v471_v59  ;;  %v477_v62 = vld [vmem:[%s5025_s12 + $0x210] sm:$0xff] }
  0x28   : > { %474 = vst [vmem:[#allocation2 + $0x200] sm:$0xff] %v473_v60  ;;  %476 = vst [vmem:[#allocation2 + $0x208] sm:$0xff] %v475_v61  ;;  %v479_v63 = vld [vmem:[%s5025_s12 + $0x218] sm:$0xff] }
  0x29   : > { %478 = vst [vmem:[#allocation2 + $0x210] sm:$0xff] %v477_v62  ;;  %480 = vst [vmem:[#allocation2 + $0x218] sm:$0xff] %v479_v63 }
  0x2a   : > { %488 = vsyncadd [#allocation4], 8704 }
  0x2b   : > { %4943 = dma.done.wait [#allocation4], 8704 }
  0x2c   : > { %4944 = vsyncadd [#allocation4], 4294958592  ;;  %v610_v0 = vlaneseq  ;;  %v4957_v1 = vmov 0.0|0.0   ;;  %v4779_v4 = vld [vmem:[%s6217_s1 + $0x40] sm:$0xff]   ;;  %v4781_v6 = vld [vmem:[%s6217_s1 + $0x48] sm:$0xff]   ;;  %v4958_v19 = vmov 0  }
  0x2d   : > { %v5101_v2 = vrot.slane %v4957_v1, 4  ;;  %745 = vst [vmem:[#allocation3] sm:$0xff] %v4957_v1  ;;  %1232 = vst [vmem:[#allocation3 + $0xd8] sm:$0xff] %v4957_v1  ;;  %v4780_v5 = vld [vmem:[%s6217_s1 + $0x100] sm:$0xff]   ;;  %4312 = vmatprep.subr.bf16.mxu1 %v4779_v4  ;;  %v4782_v8 = vld [vmem:[%s6217_s1 + $0x108] sm:$0xff]   ;;  %v5141_v20 = vrot.slane %v4958_v19, 1 }
  0x2e   : > { %v611_v3 = vshrl.u32 %v610_v0, 7  ;;  %4440 = vmatprep.subr.bf16.mxu0 %v4780_v5  ;;  %4313 = vmatpush3.bf16.msra.mxu1 %v4779_v4  ;;  %v4783_v9 = vld [vmem:[%s6217_s1 + $0x50] sm:$0xff]   ;;  %v4785_v13 = vld [vmem:[%s6217_s1 + $0x58] sm:$0xff]   ;;  %v4787_v17 = vld [vmem:[%s6217_s1 + $0x60] sm:$0xff]   ;;  %vm959_vm4 = vcmask 1043456   ;;  %vm3375_vm15 = vcmask 1040384  }
  0x2f   : > { %987 = vst [vmem:[#allocation3 + $0x128] ss:$-220 sps:$4 sm:$0xff] %v5101_v2   ;;  %4441 = vmatpush3.bf16.msra.mxu0 %v4780_v5  ;;  %4314 = vmatprep.subr.bf16.mxu1 %v4781_v6  ;;  %v4784_v10 = vld [vmem:[%s6217_s1 + $0x110] sm:$0xff]   ;;  %v4786_v14 = vld [vmem:[%s6217_s1 + $0x118] sm:$0xff]   ;;  %v4788_v18 = vld [vmem:[%s6217_s1 + $0x120] sm:$0xff]  }
  0x30   : > { %v612_v7 = vadd.s32 8, %v611_v3  ;;  %4442 = vmatprep.subr.bf16.mxu0 %v4782_v8  ;;  %v5122_v11 = vmul.u32 2, %v611_v3  ;;  %v4789_v21 = vld [vmem:[%s6217_s1 + $0x68] sm:$0xff]   ;;  %v5152_v23 = vld [vmem:[%s6218_s2] ss:$0 sm:$0xff]  ;;  %v4791_v29 = vld [vmem:[%s6217_s1 + $0x70] sm:$0xff]  }
  0x31   : > { %v4790_v22 = vld [vmem:[%s6217_s1 + $0x128] sm:$0xff]   ;;  %v5157_v25 = vld [vmem:[%s6219_s3] ss:$0 sm:$0xff]  ;;  %v762_v26 = vld [vmem:[#allocation2 + $0x51] ss:$2 sm:$0xff] }
  0x32   : > { %v5124_v12 = vmul.u32 2, %v612_v7  ;;  %4315 = vmatpush3.bf16.msra.mxu1 %v4781_v6  ;;  %v845_v15 = vadd.s32 1, %v5122_v11  ;;  %v760_v24 = vld [vmem:[#allocation2 + $0x41] ss:$2 sm:$0xff]  ;;  %v794_v30 = vmul.f32 %v5152_v23, %v762_v26  ;;  %v1237_v33 = vld [vmem:[#allocation2 + $0x31] ss:$2 sm:$0xff] }
  0x33   : > { %4443 = vmatpush3.bf16.msra.mxu0 %v4782_v8  ;;  %4316 = vmatprep.subr.bf16.mxu1 %v4783_v9  ;;  %v793_v27 = vmul.f32 %v5152_v23, %v760_v24  ;;  %v1235_v32 = vld [vmem:[#allocation2 + $0x21] ss:$2 sm:$0xff]  ;;  %v1241_v36 = vld [vmem:[#allocation2 + $0x71] ss:$2 sm:$0xff]  ;;  %v1271_v38 = vmul.f32 %v5152_v23, %v1237_v33  ;;  %vm642_vm7 = vcmp.ge.s32.totalorder %v5122_v11, 1  ;;  %vm662_vm8 = vcmp.le.s32.totalorder %v5122_v11, 16 }
  0x34   : > { %4444 = vmatprep.subr.bf16.mxu0 %v4784_v10  ;;  %v846_v16 = vadd.s32 1, %v5124_v12  ;;  %vm847_vm0 = vcmp.ge.s32.totalorder %v845_v15, 1  ;;  %vm867_vm2 = vcmp.le.s32.totalorder %v845_v15, 16  ;;  %v1239_v35 = vld [vmem:[#allocation2 + $0x61] ss:$2 sm:$0xff]  ;;  %v1270_v37 = vmul.f32 %v5152_v23, %v1235_v32  ;;  %v4792_v44 = vld [vmem:[%s6217_s1 + $0x130] sm:$0xff]   ;;  %vm5483_vm11 = vmand %vm642_vm7, %vm662_vm8 }
  0x35   : > { %v811_v34 = vadd.f32 %v5157_v25, %v793_v27  ;;  %v764_v39 = vld [vmem:[#allocation2 + $0x81] ss:$2 sm:$0xff]  ;;  %v812_v40 = vadd.f32 %v5157_v25, %v794_v30  ;;  %v1272_v41 = vmul.f32 %v5152_v23, %v1239_v35  ;;  %v1273_v42 = vmul.f32 %v5152_v23, %v1241_v36  ;;  %v766_v43 = vld [vmem:[#allocation2 + $0x91] ss:$2 sm:$0xff]  ;;  %vm5178_vm5 = vmand %vm847_vm0, %vm867_vm2  ;;  %754 = vst [vmem:[#allocation3 + $0x48] sm:$0xf] %v4958_v19 }
  0x36   : > { %4317 = vmatpush3.bf16.msra.mxu1 %v4783_v9  ;;  %vm848_vm1 = vcmp.ge.s32.totalorder %v846_v16, 1  ;;  %vm868_vm3 = vcmp.le.s32.totalorder %v846_v16, 16  ;;  %v5160_v28 = vld [vmem:[#allocation3 + $0x48] sm:$0xf0]  ;;  %v1288_v47 = vadd.f32 %v5157_v25, %v1270_v37  ;;  %v1289_v48 = vadd.f32 %v5157_v25, %v1271_v38  ;;  %v1245_v60 = vld [vmem:[#allocation2 + $0xb1] ss:$2 sm:$0xff] }
  0x37   : > { %4445 = vmatpush3.bf16.msra.mxu0 %v4784_v10  ;;  %4318 = vmatprep.subr.bf16.mxu1 %v4785_v13  ;;  %v1529_v31 = vrot.slane %v5160_v28, 4  ;;  %v829_v45 = vmax.f32 %v811_v34, 0.0  ;;  %v795_v49 = vmul.f32 %v5152_v23, %v764_v39  ;;  %v830_v50 = vmax.f32 %v812_v40, 0.0  ;;  %vm5187_vm6 = vmand %vm848_vm1, %vm868_vm3  ;;  %v1243_v55 = vld [vmem:[#allocation2 + $0xa1] ss:$2 sm:$0xff]  ;;  %v4793_v61 = vld [vmem:[%s6217_s1 + $0x78] sm:$0xff]  }
  0x38   : > { %4446 = vmatprep.subr.bf16.mxu0 %v4786_v14  ;;  %v1290_v52 = vadd.f32 %v5157_v25, %v1272_v41  ;;  %v1291_v53 = vadd.f32 %v5157_v25, %v1273_v42  ;;  %v796_v54 = vmul.f32 %v5152_v23, %v766_v43  ;;  %v1306_v57 = vmax.f32 %v1288_v47, 0.0  ;;  %v4794_v3 = vld [vmem:[%s6217_s1 + $0x138] sm:$0xff]   ;;  %v4795_v26 = vld [vmem:[%s6217_s1] sm:$0xff]  }
  0x39   : > { %v925_v56 = vsel %vm5178_vm5, %v829_v45, 0.0  ;;  %v1307_v58 = vmax.f32 %v1289_v48, 0.0  ;;  %v813_v59 = vadd.f32 %v5157_v25, %v795_v49  ;;  %v926_v62 = vsel %vm5187_vm6, %v830_v50, 0.0  ;;  %v1247_v30 = vld [vmem:[#allocation2 + $0xe1] ss:$2 sm:$0xff] }
  0x3a   : > { %4319 = vmatpush3.bf16.msra.mxu1 %v4785_v13  ;;  %v1308_v63 = vmax.f32 %v1290_v52, 0.0  ;;  %v1309_v0 = vmax.f32 %v1291_v53, 0.0  ;;  %v814_v1 = vadd.f32 %v5157_v25, %v796_v54  ;;  %v942_v4 = vpack.c.bf16 %v926_v62, %v925_v56  ;;  %v5230_v36 = vld [vmem:[%s6217_s1 + $0x140] sm:$0xff]   ;;  %v1249_v37 = vld [vmem:[#allocation2 + $0xf1] ss:$2 sm:$0xff] }
  0x3b   : > { %4447 = vmatpush3.bf16.msra.mxu0 %v4786_v14  ;;  %4320 = vmatprep.subr.bf16.mxu1 %v4787_v17  ;;  %v1396_v5 = vsel %vm5178_vm5, %v1306_v57, 0.0  ;;  %v1397_v6 = vsel %vm5187_vm6, %v1307_v58, 0.0  ;;  %v831_v7 = vmax.f32 %v813_v59, 0.0  ;;  %v1275_v27 = vmul.f32 %v5152_v23, %v1245_v60  ;;  %v772_v47 = vld [vmem:[#allocation2 + $0x101] ss:$2 sm:$0xff] }
  0x3c   : > { %4448 = vmatprep.subr.bf16.mxu0 %v4788_v18  ;;  %v1398_v8 = vsel %vm5178_vm5, %v1308_v63, 0.0  ;;  %v1399_v9 = vsel %vm5187_vm6, %v1309_v0, 0.0  ;;  %v1414_v10 = vpack.c.bf16 %v1397_v6, %v1396_v5  ;;  %v832_v13 = vmax.f32 %v814_v1, 0.0  ;;  %v774_v48 = vld [vmem:[#allocation2 + $0x111] ss:$2 sm:$0xff] }
  0x3d   : > { %v961_v14 = vrot.slane %v942_v4, 4  ;;  %v1415_v15 = vpack.c.bf16 %v1399_v9, %v1398_v8  ;;  %v927_v16 = vsel %vm5178_vm5, %v831_v7, 0.0  ;;  %v1293_v39 = vadd.f32 %v5157_v25, %v1275_v27  ;;  %v1251_v1 = vld [vmem:[#allocation2 + $0x121] ss:$2 sm:$0xff] }
  0x3e   : > { %4321 = vmatpush3.bf16.msra.mxu1 %v4787_v17  ;;  %v1274_v17 = vmul.f32 %v5152_v23, %v1243_v55  ;;  %v928_v24 = vsel %vm5187_vm6, %v832_v13, 0.0  ;;  %v1276_v45 = vmul.f32 %v5152_v23, %v1247_v30  ;;  %v799_v0 = vmul.f32 %v5152_v23, %v772_v47  ;;  %v778_v30 = vld [vmem:[#allocation2 + $0x151] ss:$2 sm:$0xff] }
  0x3f   : > { %4449 = vmatpush3.bf16.msra.mxu0 %v4788_v18  ;;  %4322 = vmatprep.subr.bf16.mxu1 %v4789_v21  ;;  %v768_v18 = vld [vmem:[#allocation2 + $0xc1] ss:$2 sm:$0xff]  ;;  %v962_v32 = vsel %vm959_vm4, %v5101_v2, %v961_v14  ;;  %v1433_v33 = vrot.slane %v1415_v15, 4  ;;  %v943_v34 = vpack.c.bf16 %v928_v24, %v927_v16  ;;  %v1311_v52 = vmax.f32 %v1293_v39, 0.0 }
  0x40   : > { %4450 = vmatprep.subr.bf16.mxu0 %v4790_v22  ;;  %v1292_v35 = vadd.f32 %v5157_v25, %v1274_v17  ;;  %988 = vst [vmem:[#allocation3 + $0x50] sm:$0xff] %v962_v32  ;;  %v1530_v38 = vrot.slane %v962_v32, 4  ;;  %v1294_v59 = vadd.f32 %v5157_v25, %v1276_v45  ;;  %v800_v6 = vmul.f32 %v5152_v23, %v774_v48  ;;  %v1253_v17 = vld [vmem:[#allocation2 + $0x131] ss:$2 sm:$0xff] }
  0x41   : > { %v963_v43 = vrot.slane %v943_v34, 4  ;;  %v1401_v57 = vsel %vm5187_vm6, %v1311_v52, 0.0  ;;  %v817_v13 = vadd.f32 %v5157_v25, %v799_v0  ;;  %vm643_vm9 = vcmp.ge.s32.totalorder %v5124_v12, 1 }
  0x42   : > { %4323 = vmatpush3.bf16.msra.mxu1 %v4789_v21  ;;  %v770_v21 = vld [vmem:[#allocation2 + $0xd1] ss:$2 sm:$0xff]  ;;  %v1531_v49 = vsel %vm959_vm4, %v1529_v31, %v1530_v38  ;;  %v1277_v31 = vmul.f32 %v5152_v23, %v1249_v37  ;;  %v1312_v5 = vmax.f32 %v1294_v59, 0.0  ;;  %v818_v16 = vadd.f32 %v5157_v25, %v800_v6 }
  0x43   : > { %4451 = vmatpush3.bf16.msra.mxu0 %v4790_v22  ;;  %4324 = vmatprep.subr.bf16.mxu1 %v4791_v29  ;;  %v1432_v22 = vrot.slane %v1414_v10, 4  ;;  %v798_v40 = vmul.f32 %v5152_v23, %v770_v21  ;;  %v5246_v54 = vsel %vm959_vm4, %v961_v14, %v963_v43  ;;  %v776_v21 = vld [vmem:[#allocation2 + $0x141] ss:$2 sm:$0xff]  ;;  %vm663_vm10 = vcmp.le.s32.totalorder %v5124_v12, 16 }
  0x44   : > { %4452 = vmatprep.subr.bf16.mxu0 %v4792_v44  ;;  %4328 = vmatprep.mubr.bf16.mxu1 %v1531_v49  ;;  %989 = vst [vmem:[#allocation3 + $0x58] sm:$0xff] %v5246_v54  ;;  %v1532_v56 = vrot.slane %v5246_v54, 4  ;;  %v1295_v63 = vadd.f32 %v5157_v25, %v1277_v31  ;;  %v1402_v15 = vsel %vm5178_vm5, %v1312_v5, 0.0  ;;  %v836_v37 = vmax.f32 %v818_v16, 0.0  ;;  %v4801_v54 = vld [vmem:[%s6217_s1 + $0x18] sm:$0xff]   ;;  %vm5492_vm12 = vmand %vm643_vm9, %vm663_vm10 }
  0x45   : > { %1459 = vst [vmem:[#allocation3 + $0xe0] sm:$0xf0] %v1432_v22  ;;  %v5236_v42 = vsel %vm959_vm4, %v1432_v22, %v1433_v33  ;;  %v816_v53 = vadd.f32 %v5157_v25, %v798_v40  ;;  %v802_v31 = vmul.f32 %v5152_v23, %v778_v30  ;;  %vm1854_vm13 = vsmask.f32 7424  ;;  %vm5686_vm14 = vmpackc.low %vm5492_vm12, %vm5483_vm11 }
  0x46   : > { %4325 = vmatpush3.bf16.msra.mxu1 %v4791_v29  ;;  %v797_v29 = vmul.f32 %v5152_v23, %v768_v18  ;;  %1460 = vst [vmem:[#allocation3 + $0xe8] sm:$0xff] %v5236_v42  ;;  %v2282_v50 = vrot.slane %v5236_v42, 4  ;;  %v1313_v10 = vmax.f32 %v1295_v63, 0.0  ;;  %v1278_v18 = vmul.f32 %v5152_v23, %v1251_v1 }
  0x47   : > { %4453 = vmatpush3.bf16.msra.mxu0 %v4792_v44  ;;  %4326 = vmatprep.subr.bf16.mxu1 %v4793_v61  ;;  %v1310_v44 = vmax.f32 %v1292_v35, 0.0  ;;  %v834_v58 = vmax.f32 %v816_v53, 0.0  ;;  %v932_v49 = vsel %vm5187_vm6, %v836_v37, 0.0  ;;  %v820_v63 = vadd.f32 %v5157_v25, %v802_v31 }
  0x48   : > { %4454 = vmatprep.subr.bf16.mxu0 %v4794_v3  ;;  %v815_v41 = vadd.f32 %v5157_v25, %v797_v29  ;;  %v1403_v27 = vsel %vm5187_vm6, %v1313_v10, 0.0  ;;  %v835_v29 = vmax.f32 %v817_v13, 0.0  ;;  %v1296_v42 = vadd.f32 %v5157_v25, %v1278_v18  ;;  %v1261_v10 = vld [vmem:[#allocation2 + $0x1b1] ss:$2 sm:$0xff] }
  0x49   : > { %v1400_v55 = vsel %vm5178_vm5, %v1310_v44, 0.0  ;;  %v930_v4 = vsel %vm5187_vm6, %v834_v58, 0.0  ;;  %v1417_v35 = vpack.c.bf16 %v1403_v27, %v1402_v15  ;;  %v1257_v44 = vld [vmem:[#allocation2 + $0x171] ss:$2 sm:$0xff]  ;;  %v780_v58 = vld [vmem:[#allocation2 + $0x181] ss:$2 sm:$0xff] }
  0x4a   : > { %4327 = vmatpush3.bf16.msra.mxu1 %v4793_v61  ;;  %v833_v28 = vmax.f32 %v815_v41, 0.0  ;;  %v1416_v60 = vpack.c.bf16 %v1401_v57, %v1400_v55  ;;  %v4797_v61 = vld [vmem:[%s6217_s1 + $0x8] sm:$0xff]   ;;  %v931_v40 = vsel %vm5178_vm5, %v835_v29, 0.0  ;;  %v1279_v41 = vmul.f32 %v5152_v23, %v1253_v17  ;;  %v4802_v17 = vld [vmem:[%s6217_s1 + $0x158] sm:$0xff]  }
  0x4b   : > { %4455 = vmatpush3.bf16.msra.mxu0 %v4794_v3  ;;  %4344 = vmatprep.subr.bf16.mxu1 %v4795_v26  ;;  %v1533_v3 = vsel %vm959_vm4, %v1530_v38, %v1532_v56  ;;  %v1255_v38 = vld [vmem:[#allocation2 + $0x161] ss:$2 sm:$0xff]  ;;  %v5289_v48 = vrot.slane %v1417_v35, 4  ;;  %v1314_v53 = vmax.f32 %v1296_v42, 0.0  ;;  %v1281_v0 = vmul.f32 %v5152_v23, %v1257_v44 }
  0x4c   : > { %4472 = vmatprep.subr.bf16.mxu0 %v5230_v36  ;;  %v929_v62 = vsel %vm5178_vm5, %v833_v28, 0.0  ;;  %v2246_v7 = vld [vmem:[#allocation3 + $0xe0] sm:$0xf0]  ;;  %v1435_v8 = vrot.slane %v1416_v60, 4  ;;  %v1297_v52 = vadd.f32 %v5157_v25, %v1279_v41  ;;  %v1280_v57 = vmul.f32 %v5152_v23, %v1255_v38 }
  0x4d   : > { %4329 = vmatmul.mubr.bf16.vlgmr.msra.gmra.mrb[0].mxu1 %v1533_v3  ;;  %v944_v9 = vpack.c.bf16 %v930_v4, %v929_v62  ;;  %v2281_v14 = vrot.slane %v2246_v7, 4  ;;  %v782_v3 = vld [vmem:[#allocation2 + $0x191] ss:$2 sm:$0xff]  ;;  %v803_v7 = vmul.f32 %v5152_v23, %v780_v58  ;;  %v838_v16 = vmax.f32 %v820_v63, 0.0  ;;  %v784_v42 = vld [vmem:[#allocation2 + $0x1c1] ss:$2 sm:$0xff] }
  0x4e   : > { %4345 = vmatpush3.bf16.msra.mxu1 %v4795_v26  ;;  %v1436_v22 = vsel %vm959_vm4, %v1433_v33, %v1435_v8  ;;  %v4799_v26 = vld [vmem:[%s6217_s1 + $0x10] sm:$0xff]   ;;  %v4798_v33 = vld [vmem:[%s6217_s1 + $0x148] sm:$0xff]   ;;  %v5302_v28 = vsel %vm959_vm4, %v1435_v8, %v5289_v48  ;;  %v1298_v1 = vadd.f32 %v5157_v25, %v1280_v57  ;;  %v4803_v8 = vld [vmem:[%s6217_s1 + $0x20] sm:$0xff]   ;;  %v1299_v18 = vadd.f32 %v5157_v25, %v1281_v0 }
  0x4f   : > { %4346 = vmatprep.subr.bf16.mxu1 %v4797_v61  ;;  %v965_v24 = vrot.slane %v944_v9, 4  ;;  %v2283_v32 = vsel %vm959_vm4, %v2281_v14, %v2282_v50  ;;  %1461 = vst [vmem:[#allocation3 + $0xf0] sm:$0xff] %v1436_v22  ;;  %v2284_v34 = vrot.slane %v1436_v22, 4  ;;  %1462 = vst [vmem:[#allocation3 + $0xf8] sm:$0xff] %v5302_v28  ;;  %v2286_v59 = vrot.slane %v5302_v28, 4 }
  0x50   : > { %4456 = vmatprep.mubr.bf16.mxu0 %v2283_v32  ;;  %v1259_v9 = vld [vmem:[#allocation2 + $0x1a1] ss:$2 sm:$0xff]  ;;  %v804_v22 = vmul.f32 %v5152_v23, %v782_v3  ;;  %v934_v30 = vsel %vm5187_vm6, %v838_v16, 0.0  ;;  %v1317_v35 = vmax.f32 %v1299_v18, 0.0  ;;  %v1283_v41 = vmul.f32 %v5152_v23, %v1261_v10  ;;  %v4809_v18 = vld [vmem:[%s6217_s1 + $0x38] sm:$0xff]  }
  0x51   : > { %v966_v39 = vsel %vm959_vm4, %v963_v43, %v965_v24  ;;  %v2285_v45 = vsel %vm959_vm4, %v2282_v50, %v2284_v34  ;;  %v945_v43 = vpack.c.bf16 %v932_v49, %v931_v40  ;;  %v801_v50 = vmul.f32 %v5152_v23, %v776_v21  ;;  %v4805_v32 = vld [vmem:[%s6217_s1 + $0x28] sm:$0xff]  }
  0x52   : > { %4347 = vmatpush3.bf16.msra.mxu1 %v4797_v61  ;;  %990 = vst [vmem:[#allocation3 + $0x60] sm:$0xff] %v966_v39  ;;  %v1534_v47 = vrot.slane %v966_v39, 4  ;;  %4457 = vmatmul.mubr.bf16.vlgmr.msra.gmra.mrb[0].mxu0 %v2285_v45  ;;  %v4800_v61 = vld [vmem:[%s6217_s1 + $0x150] sm:$0xff]   ;;  %v2287_v4 = vsel %vm959_vm4, %v2284_v34, %v2286_v59  ;;  %v1316_v21 = vmax.f32 %v1298_v1, 0.0  ;;  %v822_v38 = vadd.f32 %v5157_v25, %v804_v22 }
  0x53   : > { %4348 = vmatprep.subr.bf16.mxu1 %v4799_v26  ;;  %4473 = vmatpush3.bf16.msra.mxu0 %v5230_v36  ;;  %v5308_v60 = vrot.slane %v945_v43, 4  ;;  %v1315_v36 = vmax.f32 %v1297_v52, 0.0  ;;  %v819_v62 = vadd.f32 %v5157_v25, %v801_v50  ;;  %v1282_v40 = vmul.f32 %v5152_v23, %v1259_v9  ;;  %v786_v50 = vld [vmem:[#allocation2 + $0x1d1] ss:$2 sm:$0xff] }
  0x54   : > { %v1535_v55 = vsel %vm959_vm4, %v1532_v56, %v1534_v47  ;;  %4474 = vmatprep.subr.bf16.mxu0 %v4798_v33  ;;  %v1404_v56 = vsel %vm5178_vm5, %v1314_v53, 0.0  ;;  %4460 = vmatprep.mubr.bf16.mxu0 %v2287_v4  ;;  %v1406_v37 = vsel %vm5178_vm5, %v1316_v21, 0.0  ;;  %v840_v49 = vmax.f32 %v822_v38, 0.0 }
  0x55   : > { %4332 = vmatprep.mubr.bf16.mxu1 %v1535_v55  ;;  %v5324_v5 = vsel %vm959_vm4, %v965_v24, %v5308_v60  ;;  %v1405_v6 = vsel %vm5187_vm6, %v1315_v36, 0.0  ;;  %v837_v15 = vmax.f32 %v819_v62, 0.0  ;;  %v821_v24 = vadd.f32 %v5157_v25, %v803_v7  ;;  %v1263_v55 = vld [vmem:[#allocation2 + $0x1e1] ss:$2 sm:$0xff] }
  0x56   : > { %4349 = vmatpush3.bf16.msra.mxu1 %v4799_v26  ;;  %991 = vst [vmem:[#allocation3 + $0x68] sm:$0xff] %v5324_v5  ;;  %v1536_v13 = vrot.slane %v5324_v5, 4  ;;  %v1418_v14 = vpack.c.bf16 %v1405_v6, %v1404_v56  ;;  %v1300_v52 = vadd.f32 %v5157_v25, %v1282_v40  ;;  %v1301_v53 = vadd.f32 %v5157_v25, %v1283_v41  ;;  %v1265_v56 = vld [vmem:[#allocation2 + $0x1f1] ss:$2 sm:$0xff]  ;;  %v788_v6 = vld [vmem:[#allocation2 + $0x201] ss:$2 sm:$0xff] }
  0x57   : > { %4350 = vmatprep.subr.bf16.mxu1 %v4801_v54  ;;  %4475 = vmatpush3.bf16.msra.mxu0 %v4798_v33  ;;  %v933_v26 = vsel %vm5178_vm5, %v837_v15, 0.0  ;;  %v839_v39 = vmax.f32 %v821_v24, 0.0  ;;  %v936_v58 = vsel %vm5187_vm6, %v840_v49, 0.0  ;;  %v805_v36 = vmul.f32 %v5152_v23, %v784_v42  ;;  %v999_v15 = vld [vmem:[#allocation2 + $0x20] ss:$2 sm:$0xff] }
  0x58   : > { %4476 = vmatprep.subr.bf16.mxu0 %v4800_v61  ;;  %v1537_v27 = vsel %vm959_vm4, %v1534_v47, %v1536_v13  ;;  %v1439_v29 = vrot.slane %v1418_v14, 4  ;;  %v946_v34 = vpack.c.bf16 %v934_v30, %v933_v26  ;;  %v1407_v47 = vsel %vm5187_vm6, %v1317_v35, 0.0  ;;  %v790_v14 = vld [vmem:[#allocation2 + $0x211] ss:$2 sm:$0xff] }
  0x59   : > { %4333 = vmatmul.mubr.bf16.gmra.mrb[4].mxu1 %v1537_v27  ;;  %v1419_v43 = vpack.c.bf16 %v1407_v47, %v1406_v37  ;;  %v1319_v0 = vmax.f32 %v1301_v53, 0.0  ;;  %v806_v1 = vmul.f32 %v5152_v23, %v786_v50  ;;  %v823_v3 = vadd.f32 %v5157_v25, %v805_v36  ;;  %v4810_v36 = vld [vmem:[%s6217_s1 + $0x178] sm:$0xff]  }
  0x5a   : > { %4351 = vmatpush3.bf16.msra.mxu1 %v4801_v54  ;;  %v5355_v33 = vsel %vm959_vm4, %v5289_v48, %v1439_v29  ;;  %v969_v45 = vrot.slane %v946_v34, 4  ;;  %v935_v48 = vsel %vm5178_vm5, %v839_v39, 0.0  ;;  %v4804_v54 = vld [vmem:[%s6217_s1 + $0x160] sm:$0xff]   ;;  %v1284_v4 = vmul.f32 %v5152_v23, %v1263_v55  ;;  %v1001_v39 = vld [vmem:[#allocation2 + $0x30] ss:$2 sm:$0xff] }
  0x5b   : > { %4352 = vmatprep.subr.bf16.mxu1 %v4803_v8  ;;  %4477 = vmatpush3.bf16.msra.mxu0 %v4800_v61  ;;  %1463 = vst [vmem:[#allocation3 + $0x100] sm:$0xff] %v5355_v33  ;;  %v2288_v44 = vrot.slane %v5355_v33, 4  ;;  %v4807_v61 = vld [vmem:[%s6217_s1 + $0x30] sm:$0xff]   ;;  %v1441_v28 = vrot.slane %v1419_v43, 4  ;;  %v947_v63 = vpack.c.bf16 %v936_v58, %v935_v48  ;;  %v824_v16 = vadd.f32 %v5157_v25, %v806_v1 }
  0x5c   : > { %4478 = vmatprep.subr.bf16.mxu0 %v4802_v17  ;;  %v970_v57 = vsel %vm959_vm4, %v5308_v60, %v969_v45  ;;  %v4806_v60 = vld [vmem:[%s6217_s1 + $0x168] sm:$0xff]   ;;  %v1285_v24 = vmul.f32 %v5152_v23, %v1265_v56  ;;  %v1302_v27 = vadd.f32 %v5157_v25, %v1284_v4  ;;  %v807_v38 = vmul.f32 %v5152_v23, %v788_v6  ;;  %v4808_v33 = vld [vmem:[%s6217_s1 + $0x170] sm:$0xff]   ;;  %v5471_v4 = vld [vmem:[%s6217_s1 + $0x180] sm:$0xff]  }
  0x5d   : > { %v2289_v31 = vsel %vm959_vm4, %v2286_v59, %v2288_v44  ;;  %992 = vst [vmem:[#allocation3 + $0x70] sm:$0xff] %v970_v57  ;;  %v1538_v62 = vrot.slane %v970_v57, 4  ;;  %v1318_v59 = vmax.f32 %v1300_v52, 0.0  ;;  %v5393_v9 = vrot.slane %v947_v63, 4 }
  0x5e   : > { %4353 = vmatpush3.bf16.msra.mxu1 %v4803_v8  ;;  %4461 = vmatmul.mubr.bf16.gmra.mrb[4].mxu0 %v2289_v31  ;;  %v5391_v8 = vsel %vm959_vm4, %v1439_v29, %v1441_v28  ;;  %v842_v30 = vmax.f32 %v824_v16, 0.0  ;;  %v1303_v35 = vadd.f32 %v5157_v25, %v1285_v24  ;;  %v1320_v37 = vmax.f32 %v1302_v27, 0.0  ;;  %v5445_v31 = vld [vmem:[%s6217_s1 + $0x80] sm:$0xff]  }
  0x5f   : > { %4354 = vmatprep.subr.bf16.mxu1 %v4805_v32  ;;  %4479 = vmatpush3.bf16.msra.mxu0 %v4802_v17  ;;  %v1539_v7 = vsel %vm959_vm4, %v1536_v13, %v1538_v62  ;;  %v1408_v10 = vsel %vm5178_vm5, %v1318_v59, 0.0  ;;  %1464 = vst [vmem:[#allocation3 + $0x108] sm:$0xff] %v5391_v8  ;;  %v2290_v5 = vrot.slane %v5391_v8, 4  ;;  %v1409_v13 = vsel %vm5187_vm6, %v1319_v0, 0.0 }
  0x60   : > { %4480 = vmatprep.subr.bf16.mxu0 %v4804_v54  ;;  %4336 = vmatprep.mubr.bf16.mxu1 %v1539_v7  ;;  %v841_v17 = vmax.f32 %v823_v3, 0.0  ;;  %v5411_v21 = vsel %vm959_vm4, %v969_v45, %v5393_v9  ;;  %v1420_v22 = vpack.c.bf16 %v1409_v13, %v1408_v10  ;;  %v938_v41 = vsel %vm5187_vm6, %v842_v30, 0.0  ;;  %v1005_v45 = vld [vmem:[#allocation2 + $0x70] ss:$2 sm:$0xff] }
  0x61   : > { %v2291_v29 = vsel %vm959_vm4, %v2288_v44, %v2290_v5  ;;  %993 = vst [vmem:[#allocation3 + $0x78] sm:$0xff] %v5411_v21  ;;  %v1540_v26 = vrot.slane %v5411_v21, 4  ;;  %v808_v42 = vmul.f32 %v5152_v23, %v790_v14  ;;  %v1003_v44 = vld [vmem:[#allocation2 + $0x60] ss:$2 sm:$0xff]  ;;  %v1034_v47 = vmul.f32 %v5152_v23, %v999_v15  ;;  %v506_v13 = vld [vmem:[#allocation2 + $0x50] ss:$2 sm:$0xff] }
  0x62   : > { %4355 = vmatpush3.bf16.msra.mxu1 %v4805_v32  ;;  %v937_v32 = vsel %vm5178_vm5, %v841_v17, 0.0  ;;  %4464 = vmatprep.mubr.bf16.mxu0 %v2291_v29  ;;  %v1443_v34 = vrot.slane %v1420_v22, 4  ;;  %v1321_v48 = vmax.f32 %v1303_v35, 0.0  ;;  %v1410_v52 = vsel %vm5178_vm5, %v1320_v37, 0.0  ;;  %v1007_v22 = vld [vmem:[#allocation2 + $0xa0] ss:$2 sm:$0xff] }
  0x63   : > { %4356 = vmatprep.subr.bf16.mxu1 %v4807_v61  ;;  %4481 = vmatpush3.bf16.msra.mxu0 %v4804_v54  ;;  %v1541_v40 = vsel %vm959_vm4, %v1538_v62, %v1540_v26  ;;  %v948_v43 = vpack.c.bf16 %v938_v41, %v937_v32  ;;  %v825_v54 = vadd.f32 %v5157_v25, %v807_v38  ;;  %v508_v35 = vld [vmem:[#allocation2 + $0x80] ss:$2 sm:$0xff]  ;;  %v4833_v10 = vld [vmem:[%s6217_s1 + $0xd8] sm:$0xff]  }
  0x64   : > { %4482 = vmatprep.subr.bf16.mxu0 %v4806_v60  ;;  %4337 = vmatmul.mubr.bf16.gmra.mrb[8].mxu1 %v1541_v40  ;;  %v5433_v49 = vsel %vm959_vm4, %v1441_v28, %v1443_v34  ;;  %v826_v50 = vadd.f32 %v5157_v25, %v808_v42  ;;  %v1035_v55 = vmul.f32 %v5152_v23, %v1001_v39  ;;  %v1411_v58 = vsel %vm5187_vm6, %v1321_v48, 0.0 }
  0x65   : > { %1465 = vst [vmem:[#allocation3 + $0x110] sm:$0xff] %v5433_v49  ;;  %v2292_v53 = vrot.slane %v5433_v49, 4  ;;  %v973_v57 = vrot.slane %v948_v43, 4  ;;  %v1036_v56 = vmul.f32 %v5152_v23, %v1003_v44  ;;  %v1421_v28 = vpack.c.bf16 %v1411_v58, %v1410_v52 }
  0x66   : > { %4357 = vmatpush3.bf16.msra.mxu1 %v4807_v61  ;;  %v1037_v61 = vmul.f32 %v5152_v23, %v1005_v45  ;;  %v843_v63 = vmax.f32 %v825_v54, 0.0  ;;  %v844_v59 = vmax.f32 %v826_v50, 0.0  ;;  %v5463_v1 = vadd.f32 %v5157_v25, %v1035_v55  ;;  %v510_v45 = vld [vmem:[#allocation2 + $0x90] ss:$2 sm:$0xff] }
  0x67   : > { %4358 = vmatprep.subr.bf16.mxu1 %v4809_v18  ;;  %4483 = vmatpush3.bf16.msra.mxu0 %v4806_v60  ;;  %v2293_v62 = vsel %vm959_vm4, %v2290_v5, %v2292_v53  ;;  %v5457_v0 = vsel %vm959_vm4, %v5393_v9, %v973_v57  ;;  %v5460_v60 = vadd.f32 %v5157_v25, %v1034_v47  ;;  %v1445_v7 = vrot.slane %v1421_v28, 4  ;;  %v504_v5 = vld [vmem:[#allocation2 + $0x40] ss:$2 sm:$0xff] }
  0x68   : > { %4484 = vmatprep.subr.bf16.mxu0 %v4808_v33  ;;  %4465 = vmatmul.mubr.bf16.gmra.mrb[8].mxu0 %v2293_v62  ;;  %v5466_v3 = vadd.f32 %v5157_v25, %v1036_v56  ;;  %994 = vst [vmem:[#allocation3 + $0x80] sm:$0xff] %v5457_v0  ;;  %v1542_v6 = vrot.slane %v5457_v0, 4  ;;  %v939_v8 = vsel %vm5178_vm5, %v843_v63, 0.0  ;;  %v940_v9 = vsel %vm5187_vm6, %v844_v59, 0.0  ;;  %v1011_v56 = vld [vmem:[#allocation2 + $0xe0] ss:$2 sm:$0xff] }
  0x69   : > { %v949_v14 = vpack.c.bf16 %v940_v9, %v939_v8  ;;  %v5497_v51 = vadd.f32 %v5157_v25, %v1037_v61  ;;  %v1070_v11 = vmax.f32 %v5460_v60, 0.0  ;;  %v1071_v15 = vmax.f32 %v5463_v1, 0.0  ;;  %v4846_v60 = vld [vmem:[%s6222_s6] sm:$0xff]  }
  0x6a   : > { %4359 = vmatpush3.bf16.msra.mxu1 %v4809_v18  ;;  %v1543_v16 = vsel %vm959_vm4, %v1540_v26, %v1542_v6  ;;  %v5507_v12 = vsel %vm959_vm4, %v1443_v34, %v1445_v7  ;;  %v1448_v17 = vsel %vm959_vm4, %v1445_v7, %v5101_v2  ;;  %v1072_v18 = vmax.f32 %v5466_v3, 0.0  ;;  %v1009_v26 = vld [vmem:[#allocation2 + $0xb0] ss:$2 sm:$0xff]  ;;  %v4844_v3 = vld [vmem:[%s6217_s1 + $0x208] sm:$0xff]  }
  0x6b   : > { %4485 = vmatpush3.bf16.msra.mxu0 %v4808_v33  ;;  %4376 = vmatprep.subr.bf16.mxu1 %v5445_v31  ;;  %1466 = vst [vmem:[#allocation3 + $0x118] sm:$0xff] %v5507_v12  ;;  %v2294_v24 = vrot.slane %v5507_v12, 4  ;;  %v975_v27 = vrot.slane %v949_v14, 4  ;;  %1467 = vst [vmem:[#allocation3 + $0x120] sm:$0xff] %v1448_v17  ;;  %v1073_v21 = vmax.f32 %v5497_v51, 0.0  ;;  %v1197_v29 = vsel %vm5483_vm11, %v1070_v11, 0.0 }
  0x6c   : > { %4486 = vmatprep.subr.bf16.mxu0 %v4810_v36  ;;  %4340 = vmatprep.mubr.bf16.mxu1 %v1543_v16  ;;  %v1198_v2 = vsel %vm5492_vm12, %v1071_v15, 0.0  ;;  %v1199_v30 = vsel %vm5483_vm11, %v1072_v18, 0.0  ;;  %v543_v32 = vmul.f32 %v5152_v23, %v504_v5  ;;  %v544_v34 = vmul.f32 %v5152_v23, %v506_v13  ;;  %v1013_v5 = vld [vmem:[#allocation2 + $0xf0] ss:$2 sm:$0xff]  ;;  %v512_v13 = vld [vmem:[#allocation2 + $0xc0] ss:$2 sm:$0xff] }
  0x6d   : > { %v2295_v37 = vsel %vm959_vm4, %v2292_v53, %v2294_v24  ;;  %v976_v38 = vsel %vm959_vm4, %v973_v57, %v975_v27  ;;  %996 = vst [vmem:[#allocation3 + $0x90] sm:$0xf] %v975_v27  ;;  %v1200_v33 = vsel %vm5492_vm12, %v1073_v21, 0.0  ;;  %v1215_v39 = vpack.c.bf16 %v1198_v2, %v1197_v29  ;;  %v514_v27 = vld [vmem:[#allocation2 + $0xd0] ss:$2 sm:$0xff] }
  0x6e   : > { %4468 = vmatprep.mubr.bf16.mxu0 %v2295_v37  ;;  %995 = vst [vmem:[#allocation3 + $0x88] sm:$0xff] %v976_v38  ;;  %v1216_v40 = vpack.c.bf16 %v1200_v33, %v1199_v30  ;;  %v5537_v41 = vadd.f32 %v5157_v25, %v543_v32  ;;  %v5540_v42 = vadd.f32 %v5157_v25, %v544_v34  ;;  %v1015_v29 = vld [vmem:[#allocation2 + $0x120] ss:$2 sm:$0xff] }
  0x6f   : > { %4487 = vmatpush3.bf16.msra.mxu0 %v4810_v36  ;;  %v1038_v44 = vmul.f32 %v5152_v23, %v1007_v22  ;;  %v2478_v47 = vshrl.u32 %v1215_v39, 16  ;;  %v2480_v49 = vshll.u32 %v1215_v39, 16  ;;  %v1039_v43 = vmul.f32 %v5152_v23, %v1009_v26 }
  0x70   : > { %4504 = vmatprep.subr.bf16.mxu0 %v5471_v4  ;;  %v545_v48 = vmul.f32 %v5152_v23, %v508_v35  ;;  %v2485_v52 = vshll.u32 %v1216_v40, 16  ;;  %v2489_v53 = vshrl.u32 %v1216_v40, 16  ;;  %v585_v54 = vmax.f32 %v5537_v41, 0.0  ;;  %v1017_v35 = vld [vmem:[#allocation2 + $0x130] ss:$2 sm:$0xff] }
  0x71   : > { %v586_v50 = vmax.f32 %v5540_v42, 0.0  ;;  %v2482_v55 = vrot.slane %v2480_v49, 1  ;;  %v5548_v57 = vadd.f32 %v5157_v25, %v1038_v44  ;;  %v5551_v58 = vadd.f32 %v5157_v25, %v1039_v43 }
  0x72   : > { %v546_v36 = vmul.f32 %v5152_v23, %v510_v45  ;;  %v2254_v61 = vld [vmem:[#allocation3 + $0x120] sm:$0xf]  ;;  %v2487_v62 = vrot.slane %v2485_v52, 1  ;;  %v720_v28 = vsel %vm5483_vm11, %v585_v54, 0.0  ;;  %v5563_v59 = vadd.f32 %v5157_v25, %v545_v48 }
  0x73   : > { %v721_v63 = vsel %vm5492_vm12, %v586_v50, 0.0  ;;  %v2296_v7 = vrot.slane %v2254_v61, 4  ;;  %v2483_v8 = vor.u32 %v2482_v55, %v2478_v47  ;;  %v1074_v14 = vmax.f32 %v5548_v57, 0.0  ;;  %v516_v47 = vld [vmem:[#allocation2 + $0x100] ss:$2 sm:$0xff]  ;;  %v2866_v57 = vld [vmem:[#allocation3 + $0x78] sm:$0xff] }
  0x74   : > { %v5565_v9 = vpack.c.bf16 %v721_v63, %v720_v28  ;;  %v2491_v16 = vor.u32 %v2489_v53, %v2487_v62  ;;  %v6235_v12 = vmax.f32 %v5551_v58, 0.0  ;;  %v5570_v17 = vadd.f32 %v5157_v25, %v546_v36  ;;  %v518_v63 = vld [vmem:[#allocation2 + $0x110] ss:$2 sm:$0xff] }
  0x75   : > { %v587_v22 = vmax.f32 %v5563_v59, 0.0  ;;  %v1502_v26 = vld [vmem:[#allocation3 + $0x88] sm:$0xf]  ;;  %v2297_v2 = vsel %vm959_vm4, %v2294_v24, %v2296_v7  ;;  %v2488_v30 = vsel %vm1854_vm13, %v2483_v8, %v2487_v62  ;;  %v1201_v32 = vsel %vm5483_vm11, %v1074_v14, 0.0 }
  0x76   : > { %746 = vst [vmem:[#allocation3 + $0x8] sm:$0xff] %v5565_v9  ;;  %v1040_v34 = vmul.f32 %v5152_v23, %v1011_v56  ;;  %v1544_v37 = vrot.slane %v1502_v26, 4  ;;  %4469 = vmatmul.mubr.bf16.gmra.mrb[12].mxu0 %v2297_v2  ;;  %v1202_v38 = vsel %vm5492_vm12, %v6235_v12, 0.0  ;;  %v588_v24 = vmax.f32 %v5570_v17, 0.0  ;;  %v4859_v56 = vld [vmem:[#allocation3] sm:$0xff]  ;;  %v4814_v8 = vld [vmem:[%s6217_s1 + $0x188] sm:$0xff]  }
  0x77   : > { %v722_v33 = vsel %vm5483_vm11, %v587_v22, 0.0  ;;  %4488 = vmatprep.mubr.bf16.mxu0 %v2488_v30  ;;  %v1217_v39 = vpack.c.bf16 %v1202_v38, %v1201_v32  ;;  %v1041_v40 = vmul.f32 %v5152_v23, %v1013_v5  ;;  %v547_v45 = vmul.f32 %v5152_v23, %v512_v13  ;;  %v5634_v13 = vld [vmem:[%s6219_s3] ss:$0 sm:$0xff] }
  0x78   : > { %v5592_v44 = vadd.f32 %v5157_v25, %v1040_v34  ;;  %v1545_v49 = vsel %vm959_vm4, %v1542_v6, %v1544_v37  ;;  %v723_v43 = vsel %vm5492_vm12, %v588_v24, 0.0  ;;  %v548_v48 = vmul.f32 %v5152_v23, %v514_v27  ;;  %v1021_v34 = vld [vmem:[#allocation2 + $0x170] ss:$2 sm:$0xff] }
  0x79   : > { %v1042_v52 = vmul.f32 %v5152_v23, %v1015_v29  ;;  %4341 = vmatmul.mubr.bf16.gmra.mrb[12].mxu1 %v1545_v49  ;;  %v2493_v53 = vshll.u32 %v1217_v39, 16  ;;  %v5604_v55 = vpack.c.bf16 %v723_v43, %v722_v33  ;;  %v5607_v36 = vadd.f32 %v5157_v25, %v1041_v40  ;;  %v5619_v23 = vld [vmem:[%s6218_s2] ss:$0 sm:$0xff]  ;;  %v522_v40 = vld [vmem:[#allocation2 + $0x150] ss:$2 sm:$0xff]  ;;  %v4813_v43 = vld [vmem:[%s6217_s1 + $0x88] sm:$0xff]  }
  0x7a   : > { %v6234_v0 = vmax.f32 %v5592_v44, 0.0  ;;  %4360 = vmatprep.mubr.bf16.mxu1 %v4859_v56  ;;  %v2497_v6 = vshrl.u32 %v1217_v39, 16  ;;  %v5611_v61 = vadd.f32 %v5157_v25, %v547_v45  ;;  %v5614_v62 = vadd.f32 %v5157_v25, %v548_v48  ;;  %v1019_v29 = vld [vmem:[#allocation2 + $0x160] ss:$2 sm:$0xff] }
  0x7b   : > { %v1043_v28 = vmul.f32 %v5619_v23, %v1017_v35  ;;  %v2495_v7 = vrot.slane %v2493_v53, 1  ;;  %747 = vst [vmem:[#allocation3 + $0x10] sm:$0xff] %v5604_v55  ;;  %v6230_v5 = vmax.f32 %v5607_v36, 0.0  ;;  %v5637_v27 = vadd.f32 %v5634_v13, %v1042_v52  ;;  %v520_v39 = vld [vmem:[#allocation2 + $0x140] ss:$2 sm:$0xff] }
  0x7c   : > { %v1203_v25 = vsel %vm5483_vm11, %v6234_v0, 0.0  ;;  %v589_v26 = vmax.f32 %v5611_v61, 0.0  ;;  %v590_v2 = vmax.f32 %v5614_v62, 0.0  ;;  %v549_v32 = vmul.f32 %v5619_v23, %v516_v47 }
  0x7d   : > { %v5642_v30 = vadd.f32 %v5634_v13, %v1043_v28  ;;  %v2496_v35 = vsel %vm1854_vm13, %v2491_v16, %v2495_v7  ;;  %v1204_v37 = vsel %vm5492_vm12, %v6230_v5, 0.0  ;;  %v2499_v38 = vor.u32 %v2497_v6, %v2495_v7  ;;  %v4816_v7 = vld [vmem:[%s6217_s1 + $0x190] sm:$0xff]  }
  0x7e   : > { %v6229_v33 = vmax.f32 %v5637_v27, 0.0  ;;  %4489 = vmatmul.mubr.bf16.vlgmr.msra.gmra.mrb[0].mxu0 %v2496_v35  ;;  %v1218_v45 = vpack.c.bf16 %v1204_v37, %v1203_v25  ;;  %v724_v47 = vsel %vm5483_vm11, %v589_v26, 0.0  ;;  %v725_v16 = vsel %vm5492_vm12, %v590_v2, 0.0 }
  0x7f   : > { %v6225_v49 = vmax.f32 %v5642_v30, 0.0  ;;  %4505 = vmatpush3.bf16.msra.mxu0 %v5471_v4  ;;  %v5664_v48 = vpack.c.bf16 %v725_v16, %v724_v47  ;;  %v550_v53 = vmul.f32 %v5619_v23, %v518_v63  ;;  %v5672_v56 = vadd.f32 %v5634_v13, %v549_v32  ;;  %v1023_v47 = vld [vmem:[#allocation2 + $0x1a0] ss:$2 sm:$0xff] }
  0x80   : > { %v1205_v52 = vsel %vm5483_vm11, %v6229_v33, 0.0  ;;  %4506 = vmatprep.subr.bf16.mxu0 %v4814_v8  ;;  %v2501_v6 = vshll.u32 %v1218_v45, 16  ;;  %v2505_v28 = vshrl.u32 %v1218_v45, 16  ;;  %v1044_v25 = vmul.f32 %v5619_v23, %v1019_v29 }
  0x81   : > { %v1206_v4 = vsel %vm5492_vm12, %v6225_v49, 0.0  ;;  %v5694_v32 = vpack.c.bf16 %v586_v50, %v585_v54  ;;  %v574_v29 = vadd.f32 %v5634_v13, %v550_v53  ;;  %v591_v37 = vmax.f32 %v5672_v56, 0.0  ;;  %v4815_v54 = vld [vmem:[%s6217_s1 + $0x90] sm:$0xff]   ;;  %v524_v56 = vld [vmem:[#allocation2 + $0x180] ss:$2 sm:$0xff] }
  0x82   : > { %v1219_v35 = vpack.c.bf16 %v1206_v4, %v1205_v52  ;;  %v1045_v45 = vmul.f32 %v5619_v23, %v1021_v34  ;;  %v5707_v41 = vpack.c.bf16 %v588_v24, %v587_v22  ;;  %v2503_v42 = vrot.slane %v2501_v6, 1  ;;  %v4818_v22 = vld [vmem:[%s6217_s1 + $0x198] sm:$0xff]   ;;  %v1027_v4 = vld [vmem:[#allocation2 + $0x1e0] ss:$2 sm:$0xff] }
  0x83   : > { %4864 = vmatmul.mubr.msk.bf16.vlgmr.msra.gmra.mrb[0].mxu1 %vm5686_vm14, %v5694_v32  ;;  %v5716_v50 = vadd.f32 %v5634_v13, %v1044_v25  ;;  %v552_v59 = vmul.f32 %v5619_v23, %v522_v40  ;;  %4507 = vmatpush3.bf16.msra.mxu0 %v4814_v8  ;;  %v592_v24 = vmax.f32 %v574_v29, 0.0  ;;  %v726_v34 = vsel %vm5483_vm11, %v591_v37, 0.0  ;;  %v1025_v52 = vld [vmem:[#allocation2 + $0x1b0] ss:$2 sm:$0xff] }
  0x84   : > { %4377 = vmatpush3.bf16.msra.mxu1 %v5445_v31  ;;  %4867 = vmatprep.mubr.msk.bf16.mxu1 %vm5686_vm14, %v5707_v41  ;;  %v551_v31 = vmul.f32 %v5619_v23, %v520_v39  ;;  %v2509_v17 = vshll.u32 %v1219_v35, 16  ;;  %v5726_v16 = vadd.f32 %v5634_v13, %v1045_v45  ;;  %v2504_v53 = vsel %vm1854_vm13, %v2499_v38, %v2503_v42  ;;  %v526_v6 = vld [vmem:[#allocation2 + $0x190] ss:$2 sm:$0xff] }
  0x85   : > { %4378 = vmatprep.subr.bf16.mxu1 %v4813_v43  ;;  %v2507_v39 = vor.u32 %v2505_v28, %v2503_v42  ;;  %4508 = vmatprep.subr.bf16.mxu0 %v4816_v7  ;;  %v6226_v40 = vmax.f32 %v5716_v50, 0.0  ;;  %v2513_v8 = vshrl.u32 %v1219_v35, 16  ;;  %v727_v29 = vsel %vm5492_vm12, %v592_v24, 0.0  ;;  %v4817_v38 = vld [vmem:[%s6217_s1 + $0x98] sm:$0xff]  }
  0x86   : > { %4492 = vmatprep.mubr.bf16.mxu0 %v2504_v53  ;;  %v2511_v25 = vrot.slane %v2509_v17, 1  ;;  %v6227_v49 = vmax.f32 %v5726_v16, 0.0  ;;  %v5734_v45 = vadd.f32 %v5634_v13, %v551_v31  ;;  %v5739_v28 = vpack.c.bf16 %v727_v29, %v726_v34 }
  0x87   : > { %v1207_v35 = vsel %vm5483_vm11, %v6226_v40, 0.0  ;;  %v5746_v42 = vadd.f32 %v5634_v13, %v552_v59  ;;  %v1046_v17 = vmul.f32 %v5619_v23, %v1023_v47  ;;  %4509 = vmatpush3.bf16.msra.mxu0 %v4816_v7  ;;  %v1047_v40 = vmul.f32 %v5619_v23, %v1025_v52  ;;  %v4820_v7 = vld [vmem:[%s6217_s1 + $0x1a0] sm:$0xff]  }
  0x88   : > { %4379 = vmatpush3.bf16.msra.mxu1 %v4813_v43  ;;  %v2512_v31 = vsel %vm1854_vm13, %v2507_v39, %v2511_v25  ;;  %v1208_v43 = vsel %vm5492_vm12, %v6227_v49, 0.0  ;;  %v2515_v34 = vor.u32 %v2513_v8, %v2511_v25  ;;  %v593_v53 = vmax.f32 %v5734_v45, 0.0  ;;  %4510 = vmatprep.subr.bf16.mxu0 %v4818_v22  ;;  %v1029_v45 = vld [vmem:[#allocation2 + $0x1f0] ss:$2 sm:$0xff] }
  0x89   : > { %4380 = vmatprep.subr.bf16.mxu1 %v4815_v54  ;;  %4493 = vmatmul.mubr.bf16.gmra.mrb[4].mxu0 %v2512_v31  ;;  %v1220_v29 = vpack.c.bf16 %v1208_v43, %v1207_v35  ;;  %v594_v59 = vmax.f32 %v5746_v42, 0.0  ;;  %v5758_v47 = vadd.f32 %v5634_v13, %v1046_v17  ;;  %v5767_v39 = vpack.c.bf16 %v590_v2, %v589_v26  ;;  %v528_v42 = vld [vmem:[#allocation2 + $0x1c0] ss:$2 sm:$0xff]  ;;  %v530_v17 = vld [vmem:[#allocation2 + $0x1d0] ss:$2 sm:$0xff] }
  0x8a   : > { %v728_v52 = vsel %vm5483_vm11, %v593_v53, 0.0  ;;  %v553_v8 = vmul.f32 %v5619_v23, %v524_v56  ;;  %v554_v25 = vmul.f32 %v5619_v23, %v526_v6  ;;  %v1048_v35 = vmul.f32 %v5619_v23, %v1027_v4  ;;  %v4822_v43 = vld [vmem:[%s6217_s1 + $0x1a8] sm:$0xff]  }
  0x8b   : > { %4870 = vmatmul.mubr.msk.bf16.gmra.mrb[4].mxu1 %vm5686_vm14, %v5767_v39  ;;  %v5777_v61 = vpack.c.bf16 %v592_v24, %v591_v37  ;;  %v2517_v62 = vshll.u32 %v1220_v29, 16  ;;  %v729_v26 = vsel %vm5492_vm12, %v594_v59, 0.0  ;;  %v5785_v2 = vadd.f32 %v5634_v13, %v1047_v40  ;;  %4511 = vmatpush3.bf16.msra.mxu0 %v4818_v22  ;;  %v4819_v37 = vld [vmem:[%s6217_s1 + $0xa0] sm:$0xff]  }
  0x8c   : > { %4381 = vmatpush3.bf16.msra.mxu1 %v4815_v54  ;;  %v6228_v56 = vmax.f32 %v5758_v47, 0.0  ;;  %v5788_v6 = vpack.c.bf16 %v729_v26, %v728_v52  ;;  %v2521_v54 = vshrl.u32 %v1220_v29, 16  ;;  %v577_v24 = vadd.f32 %v5634_v13, %v553_v8  ;;  %4512 = vmatprep.subr.bf16.mxu0 %v4820_v7  ;;  %v2459_v52 = vld [vmem:[#allocation3 + $0xd8] sm:$0x1] }
  0x8d   : > { %4873 = vmatprep.mubr.msk.bf16.mxu1 %vm5686_vm14, %v5777_v61  ;;  %4382 = vmatprep.subr.bf16.mxu1 %v4817_v38  ;;  %v578_v4 = vadd.f32 %v5634_v13, %v554_v25  ;;  %v2519_v31 = vrot.slane %v2517_v62, 1  ;;  %v6233_v40 = vmax.f32 %v5785_v2, 0.0  ;;  %v1049_v29 = vmul.f32 %v5619_v23, %v1029_v45 }
  0x8e   : > { %v1209_v22 = vsel %vm5483_vm11, %v6228_v56, 0.0  ;;  %v595_v8 = vmax.f32 %v577_v24, 0.0  ;;  %v5805_v25 = vadd.f32 %v5634_v13, %v1048_v35  ;;  %v555_v62 = vmul.f32 %v5619_v23, %v528_v42  ;;  %v4821_v35 = vld [vmem:[%s6217_s1 + $0xa8] sm:$0xff]  }
  0x8f   : > { %v596_v26 = vmax.f32 %v578_v4, 0.0  ;;  %v2520_v49 = vsel %vm1854_vm13, %v2515_v34, %v2519_v31  ;;  %v1210_v56 = vsel %vm5492_vm12, %v6233_v40, 0.0  ;;  %v2523_v33 = vor.u32 %v2521_v54, %v2519_v31  ;;  %4513 = vmatpush3.bf16.msra.mxu0 %v4820_v7  ;;  %v4824_v4 = vld [vmem:[%s6217_s1 + $0x1b0] sm:$0xff]  }
  0x90   : > { %4383 = vmatpush3.bf16.msra.mxu1 %v4817_v38  ;;  %v5814_v5 = vadd.f32 %v5634_v13, %v1049_v29  ;;  %4496 = vmatprep.mubr.bf16.mxu0 %v2520_v49  ;;  %v1221_v45 = vpack.c.bf16 %v1210_v56, %v1209_v22  ;;  %v730_v38 = vsel %vm5483_vm11, %v595_v8, 0.0  ;;  %v6231_v42 = vmax.f32 %v5805_v25, 0.0 }
  0x91   : > { %4384 = vmatprep.subr.bf16.mxu1 %v4819_v37  ;;  %v731_v34 = vsel %vm5492_vm12, %v596_v26, 0.0  ;;  %v556_v49 = vmul.f32 %v5619_v23, %v530_v17  ;;  %v579_v56 = vadd.f32 %v5634_v13, %v555_v62  ;;  %v5832_v31 = vpack.c.bf16 %v594_v59, %v593_v53  ;;  %4514 = vmatprep.subr.bf16.mxu0 %v4822_v43 }
  0x92   : > { %v5824_v54 = vpack.c.bf16 %v731_v34, %v730_v38  ;;  %v6232_v24 = vmax.f32 %v5814_v5, 0.0  ;;  %v2525_v22 = vshll.u32 %v1221_v45, 16  ;;  %v1211_v7 = vsel %vm5483_vm11, %v6231_v42, 0.0 }
  0x93   : > { %4876 = vmatmul.mubr.msk.bf16.gmra.mrb[8].mxu1 %vm5686_vm14, %v5832_v31  ;;  %v2529_v17 = vshrl.u32 %v1221_v45, 16  ;;  %v2541_v29 = vshll.u32 %v2459_v52, 16  ;;  %v5841_v62 = vpack.c.bf16 %v596_v26, %v595_v8  ;;  %v580_v59 = vadd.f32 %v5634_v13, %v556_v49  ;;  %v4826_v8 = vld [vmem:[%s6217_s1 + $0x1b8] sm:$0xff]   ;;  %4515 = vmatpush3.bf16.msra.mxu0 %v4822_v43 }
  0x94   : > { %4385 = vmatpush3.bf16.msra.mxu1 %v4819_v37  ;;  %v1212_v53 = vsel %vm5492_vm12, %v6232_v24, 0.0  ;;  %v597_v38 = vmax.f32 %v579_v56, 0.0  ;;  %v1863_v34 = vshll.u32 %v5565_v9, 16  ;;  %v2527_v42 = vrot.slane %v2525_v22, 1  ;;  %v4823_v37 = vld [vmem:[%s6217_s1 + $0xb0] sm:$0xff]   ;;  %4516 = vmatprep.subr.bf16.mxu0 %v4824_v4 }
  0x95   : > { %4879 = vmatprep.mubr.msk.bf16.mxu1 %vm5686_vm14, %v5841_v62  ;;  %4386 = vmatprep.subr.bf16.mxu1 %v4821_v35  ;;  %v1222_v52 = vpack.c.bf16 %v1212_v53, %v1211_v7  ;;  %v598_v26 = vmax.f32 %v580_v59, 0.0  ;;  %v1871_v56 = vshll.u32 %v5604_v55, 16  ;;  %v2543_v0 = vrot.slane %v2541_v29, 1 }
  0x96   : > { %v732_v45 = vsel %vm5483_vm11, %v597_v38, 0.0  ;;  %v1865_v49 = vrot.slane %v1863_v34, 1  ;;  %v2528_v22 = vsel %vm1854_vm13, %v2523_v33, %v2527_v42  ;;  %v2531_v24 = vor.u32 %v2529_v17, %v2527_v42  ;;  %v4825_v33 = vld [vmem:[%s6217_s1 + $0xb8] sm:$0xff]  }
  0x97   : > { %v2533_v7 = vshll.u32 %v1222_v52, 16  ;;  %v2537_v53 = vshrl.u32 %v1222_v52, 16  ;;  %4497 = vmatmul.mubr.bf16.gmra.mrb[8].mxu0 %v2528_v22  ;;  %v733_v40 = vsel %vm5492_vm12, %v598_v26, 0.0  ;;  %v1867_v43 = vshrl.u32 %v5565_v9, 16  ;;  %v532_v52 = vld [vmem:[#allocation2 + $0x200] ss:$2 sm:$0xff] }
  0x98   : > { %4387 = vmatpush3.bf16.msra.mxu1 %v4821_v35  ;;  %v5865_v12 = vpack.c.bf16 %v733_v40, %v732_v45  ;;  %v1875_v42 = vshrl.u32 %v5604_v55, 16  ;;  %v1879_v17 = vshll.u32 %v5664_v48, 16  ;;  %4517 = vmatpush3.bf16.msra.mxu0 %v4824_v4  ;;  %v1866_v35 = vsel %vm1854_vm13, %v5141_v20, %v1865_v49  ;;  %v4828_v55 = vld [vmem:[%s6217_s1 + $0x1c0] sm:$0xff]   ;;  %v534_v20 = vld [vmem:[#allocation2 + $0x210] ss:$2 sm:$0xff] }
  0x99   : > { %v2535_v59 = vrot.slane %v2533_v7, 1  ;;  %4388 = vmatprep.subr.bf16.mxu1 %v4823_v37  ;;  %v5875_v34 = vpack.c.bf16 %v598_v26, %v597_v38  ;;  %4518 = vmatprep.subr.bf16.mxu0 %v4826_v8  ;;  %v1873_v40 = vrot.slane %v1871_v56, 1  ;;  %v1869_v4 = vor.u32 %v1867_v43, %v1865_v49  ;;  %v4827_v38 = vld [vmem:[%s6217_s1 + $0xc0] sm:$0xff]  }
  0x9a   : > { %v5887_v45 = vrot.slane %v1879_v17, 1  ;;  %v1887_v56 = vshll.u32 %v5739_v28, 16  ;;  %v558_v49 = vmul.f32 %v5619_v23, %v534_v20  ;;  %v1883_v22 = vshrl.u32 %v5664_v48, 16 }
  0x9b   : > { %v2536_v29 = vsel %vm1854_vm13, %v2531_v24, %v2535_v59  ;;  %4882 = vmatmul.mubr.msk.bf16.gmra.mrb[12].mxu1 %vm5686_vm14, %v5875_v34  ;;  %v2539_v9 = vor.u32 %v2537_v53, %v2535_v59  ;;  %v1877_v26 = vor.u32 %v1875_v42, %v1873_v40  ;;  %v1891_v7 = vshrl.u32 %v5739_v28, 16 }
  0x9c   : > { %4500 = vmatprep.mubr.bf16.mxu0 %v2536_v29  ;;  %4389 = vmatpush3.bf16.msra.mxu1 %v4823_v37  ;;  %v557_v37 = vmul.f32 %v5619_v23, %v532_v52  ;;  %v1895_v53 = vshll.u32 %v5788_v6, 16  ;;  %v5908_v48 = vadd.f32 %v5634_v13, %v558_v49  ;;  %v1889_v28 = vrot.slane %v1887_v56, 1  ;;  %v4835_v56 = vld [vmem:[%s6217_s1 + $0xe0] sm:$0xff]  }
  0x9d   : > { %v2544_v24 = vsel %vm1854_vm13, %v2539_v9, %v2543_v0  ;;  %4390 = vmatprep.subr.bf16.mxu1 %v4825_v33  ;;  %4392 = vmatprep.mubr.bf16.mxu1 %v1866_v35  ;;  %v1874_v0 = vsel %vm1854_vm13, %v1869_v4, %v1873_v40  ;;  %v1882_v23 = vsel %vm1854_vm13, %v1877_v26, %v5887_v45  ;;  %v1903_v4 = vshll.u32 %v5824_v54, 16 }
  0x9e   : > { %4519 = vmatpush3.bf16.msra.mxu0 %v4826_v8  ;;  %v4829_v8 = vld [vmem:[%s6217_s1 + $0xc8] sm:$0xff]   ;;  %v5905_v43 = vadd.f32 %v5634_v13, %v557_v37  ;;  %v600_v59 = vmax.f32 %v5908_v48, 0.0  ;;  %v1885_v42 = vor.u32 %v1883_v22, %v5887_v45  ;;  %v4831_v13 = vld [vmem:[%s6217_s1 + $0xd0] sm:$0xff]   ;;  %v1893_v17 = vor.u32 %v1891_v7, %v1889_v28 }
  0x9f   : > { %4536 = vmatprep.subr.bf16.mxu0 %v4828_v55  ;;  %4501 = vmatmul.mubr.bf16.gmra.mrb[12].mxu0 %v2544_v24  ;;  %v1897_v35 = vrot.slane %v1895_v53, 1  ;;  %v1899_v20 = vshrl.u32 %v5788_v6, 16  ;;  %v1911_v24 = vshll.u32 %v5865_v12, 16  ;;  %v4832_v6 = vld [vmem:[%s6217_s1 + $0x1d0] sm:$0xff]   ;;  %v1915_v19 = vshrl.u32 %v5865_v12, 16  ;;  %v4837_v22 = vld [vmem:[%s6217_s1 + $0xe8] sm:$0xff]  }
  0xa0   : > { %4391 = vmatpush3.bf16.msra.mxu1 %v4825_v33  ;;  %4885 = vmatprep.mubr.msk.bf16.mxu0 %vm5686_vm14, %v5694_v32  ;;  %v599_v32 = vmax.f32 %v5905_v43, 0.0  ;;  %v4830_v33 = vld [vmem:[%s6217_s1 + $0x1c8] sm:$0xff]   ;;  %v735_v9 = vsel %vm5492_vm12, %v600_v59, 0.0  ;;  %v5934_v52 = vsel %vm1854_vm13, %v1885_v42, %v1889_v28  ;;  %v2861_v53 = vld [vmem:[#allocation3 + $0x50] sm:$0xf0]  ;;  %v2862_v28 = vld [vmem:[#allocation3 + $0x58] sm:$0xff]  ;;  %v4911_v48 = vpack.c.bf16 %v1073_v21, %v1072_v18 }
  0xa1   : > { %4408 = vmatprep.subr.bf16.mxu1 %v4827_v38  ;;  %v5945_v46 = vsel %vm1854_vm13, %v1893_v17, %v1897_v35  ;;  %v1913_v26 = vrot.slane %v1911_v24, 1  ;;  %v4841_v42 = vld [vmem:[%s6217_s1 + $0xf8] sm:$0xff]   ;;  %v2897_v17 = vrot.slane %v2862_v28, 4  ;;  %v2865_v18 = vld [vmem:[#allocation3 + $0x70] sm:$0xff]  ;;  %v2905_v24 = vrot.slane %v2866_v57, 4 }
  0xa2   : > { %v734_v29 = vsel %vm5483_vm11, %v599_v32, 0.0  ;;  %v4908_v1 = vpack.c.bf16 %v600_v59, %v599_v32  ;;  %v6246_v32 = vmax.f32 %v5551_v58, 0.0  ;;  %v4850_v21 = vld [vmem:[%s6222_s6 + $0x10] sm:$0xff]   ;;  %v2903_v58 = vrot.slane %v2865_v18, 4 }
  0xa3   : > { %4393 = vmatmul.mubr.bf16.vlgmr.msra.gmra.mrb[0].mxu1 %v1874_v0  ;;  %v5927_v40 = vpack.c.bf16 %v735_v9, %v734_v29  ;;  %v5982_v12 = vor.u32 %v1915_v19, %v1913_v26  ;;  %v2863_v9 = vld [vmem:[#allocation3 + $0x60] sm:$0xff]  ;;  %v3066_v19 = vld [vmem:[#allocation3 + $0x8] sm:$0xff]  ;;  %v6251_v28 = vmax.f32 %v5716_v50, 0.0 }
  0xa4   : > { %4409 = vmatpush3.bf16.msra.mxu1 %v4827_v38  ;;  %4396 = vmatprep.mubr.bf16.mxu1 %v1882_v23  ;;  %v4839_v23 = vld [vmem:[%s6217_s1 + $0xf0] sm:$0xff]   ;;  %v4914_v59 = vpack.c.bf16 %v6246_v32, %v1074_v14  ;;  %v4852_v14 = vld [vmem:[%s6222_s6 + $0x18] sm:$0xff]   ;;  %v4851_v50 = vld [vmem:[%s6217_s1 + $0x228] sm:$0xff]  }
  0xa5   : > { %4410 = vmatprep.subr.bf16.mxu1 %v4829_v8  ;;  %753 = vst [vmem:[#allocation3 + $0x40] sm:$0xff] %v5927_v40 }
  0xa7   : > { %4888 = vmatmul.mubr.msk.bf16.vlgmr.msra.gmra.mrb[0].mxu0 %vm5686_vm14, %v5707_v41  ;;  %v1907_v41 = vshrl.u32 %v5824_v54, 16  ;;  %v4834_v54 = vld [vmem:[%s6217_s1 + $0x1d8] sm:$0xff]  }
  0xa8   : > { %4411 = vmatpush3.bf16.msra.mxu1 %v4829_v8  ;;  %4537 = vmatpush3.bf16.msra.mxu0 %v4828_v55  ;;  %v1905_v55 = vrot.slane %v1903_v4, 1  ;;  %v4838_v8 = vld [vmem:[%s6217_s1 + $0x1e8] sm:$0xff]  }
  0xa9   : > { %4891 = vmatprep.mubr.msk.bf16.mxu0 %vm5686_vm14, %v5767_v39  ;;  %4538 = vmatprep.subr.bf16.mxu0 %v4830_v33  ;;  %v1901_v39 = vor.u32 %v1899_v20, %v1897_v35  ;;  %v4905_v35 = vpack.c.bf16 %v1071_v15, %v1070_v11  ;;  %v2864_v4 = vld [vmem:[#allocation3 + $0x68] sm:$0xff]  ;;  %v2899_v11 = vrot.slane %v2863_v9, 4  ;;  %v2869_v9 = vld [vmem:[#allocation3 + $0x90] sm:$0xf] }
  0xaa   : > { %4412 = vmatprep.subr.bf16.mxu1 %v4831_v13  ;;  %v1909_v38 = vor.u32 %v1907_v41, %v1905_v55  ;;  %v4848_v15 = vld [vmem:[%s6222_s6 + $0x8] sm:$0xff]   ;;  %v2901_v43 = vrot.slane %v2864_v4, 4  ;;  %v4845_v41 = vld [vmem:[%s6217_s1 + $0x210] sm:$0xff]  }
  0xab   : > { %4397 = vmatmul.mubr.bf16.gmra.mrb[4].mxu1 %v5934_v52  ;;  %v5965_v49 = vsel %vm1854_vm13, %v1901_v39, %v1905_v55  ;;  %v2900_v20 = vsel %vm959_vm4, %v2897_v17, %v2899_v11  ;;  %v6248_v55 = vmax.f32 %v5607_v36, 0.0  ;;  %v2906_v36 = vsel %vm959_vm4, %v2903_v58, %v2905_v24 }
  0xac   : > { %4413 = vmatpush3.bf16.msra.mxu1 %v4831_v13  ;;  %4400 = vmatprep.mubr.bf16.mxu1 %v5945_v46  ;;  %v1836_v37 = vld [vmem:[#allocation3 + $0x40] sm:$0x1]  ;;  %v5975_v7 = vsel %vm1854_vm13, %v1909_v38, %v1913_v26  ;;  %v4840_v13 = vld [vmem:[%s6217_s1 + $0x1f0] sm:$0xff]   ;;  %v2902_v51 = vsel %vm959_vm4, %v2899_v11, %v2901_v43  ;;  %v6249_v38 = vmax.f32 %v5637_v27, 0.0  ;;  %v6250_v26 = vmax.f32 %v5642_v30, 0.0  ;;  %v2868_v30 = vld [vmem:[#allocation3 + $0x88] sm:$0xff] }
  0xad   : > { %4539 = vmatpush3.bf16.msra.mxu0 %v4830_v33  ;;  %4414 = vmatprep.subr.bf16.mxu1 %v4833_v10  ;;  %v1919_v0 = vshll.u32 %v1836_v37, 16  ;;  %v2867_v37 = vld [vmem:[#allocation3 + $0x80] sm:$0xff]  ;;  %v2911_v11 = vrot.slane %v2869_v9, 4 }
  0xae   : > { %4540 = vmatprep.subr.bf16.mxu0 %v4832_v6  ;;  %v4854_v27 = vld [vmem:[%s6222_s6 + $0x20] sm:$0xff]  }
  0xaf   : > { %4894 = vmatmul.mubr.msk.bf16.gmra.mrb[4].mxu0 %vm5686_vm14, %v5777_v61  ;;  %v4836_v61 = vld [vmem:[%s6217_s1 + $0x1e0] sm:$0xff]  }
  0xb0   : > { %4415 = vmatpush3.bf16.msra.mxu1 %v4833_v10  ;;  %4897 = vmatprep.mubr.msk.bf16.mxu0 %vm5686_vm14, %v5832_v31  ;;  %v1921_v31 = vrot.slane %v1919_v0, 1  ;;  %v4843_v10 = vld [vmem:[%s6217_s1 + $0x200] sm:$0xff]   ;;  %v2907_v0 = vrot.slane %v2867_v37, 4 }
  0xb1   : > { %4541 = vmatpush3.bf16.msra.mxu0 %v4832_v6  ;;  %4416 = vmatprep.subr.bf16.mxu1 %v4835_v56  ;;  %v6247_v6 = vmax.f32 %v5592_v44, 0.0  ;;  %v4847_v44 = vld [vmem:[%s6217_s1 + $0x218] sm:$0xff]  }
  0xb2   : > { %4542 = vmatprep.subr.bf16.mxu0 %v4834_v54  ;;  %v1922_v33 = vsel %vm1854_vm13, %v5982_v12, %v1921_v31  ;;  %v2909_v31 = vrot.slane %v2868_v30, 4  ;;  %v3148_v30 = vshll.u32 %v5927_v40, 16 }
  0xb3   : > { %4401 = vmatmul.mubr.bf16.gmra.mrb[8].mxu1 %v5965_v49  ;;  %v4917_v39 = vpack.c.bf16 %v6248_v55, %v6247_v6  ;;  %v3476_v6 = vld [vmem:[#allocation3 + $0x100] sm:$0xff]  ;;  %v3477_v55 = vld [vmem:[#allocation3 + $0x108] sm:$0xff] }
  0xb4   : > { %4417 = vmatpush3.bf16.msra.mxu1 %v4835_v56  ;;  %4404 = vmatprep.mubr.bf16.mxu1 %v5975_v7  ;;  %v2904_v56 = vsel %vm959_vm4, %v2901_v43, %v2903_v58  ;;  %v3474_v43 = vld [vmem:[#allocation3 + $0xf0] sm:$0xff]  ;;  %v2912_v57 = vsel %vm959_vm4, %v2909_v31, %v2911_v11 }
  0xb5   : > { %4543 = vmatpush3.bf16.msra.mxu0 %v4834_v54  ;;  %4418 = vmatprep.subr.bf16.mxu1 %v4837_v22  ;;  %v4920_v54 = vpack.c.bf16 %v6250_v26, %v6249_v38  ;;  %v3515_v26 = vrot.slane %v3477_v55, 4 }
  0xb6   : > { %4544 = vmatprep.subr.bf16.mxu0 %v4836_v61 }
  0xb7   : > { %4900 = vmatmul.mubr.msk.bf16.gmra.mrb[8].mxu0 %vm5686_vm14, %v5841_v62  ;;  %v2896_v62 = vrot.slane %v2861_v53, 4  ;;  %v3473_v53 = vld [vmem:[#allocation3 + $0xe8] sm:$0xff] }
  0xb8   : > { %4419 = vmatpush3.bf16.msra.mxu1 %v4837_v22  ;;  %4903 = vmatprep.mubr.msk.bf16.mxu0 %vm5686_vm14, %v5875_v34  ;;  %v4842_v34 = vld [vmem:[%s6217_s1 + $0x1f8] sm:$0xff]   ;;  %v4856_v22 = vld [vmem:[%s6222_s6 + $0x28] sm:$0xff]  }
  0xb9   : > { %4545 = vmatpush3.bf16.msra.mxu0 %v4836_v61  ;;  %4420 = vmatprep.subr.bf16.mxu1 %v4839_v23  ;;  %v2898_v29 = vsel %vm959_vm4, %v2896_v62, %v2897_v17  ;;  %v4849_v61 = vld [vmem:[%s6217_s1 + $0x220] sm:$0xff]   ;;  %v6253_v62 = vmax.f32 %v5758_v47, 0.0  ;;  %v6254_v17 = vmax.f32 %v5785_v2, 0.0  ;;  %v2910_v47 = vsel %vm959_vm4, %v2907_v0, %v2909_v31 }
  0xba   : > { %4546 = vmatprep.subr.bf16.mxu0 %v4838_v8  ;;  %v3093_v2 = vshrl.u32 %v3066_v19, 16  ;;  %v3152_v31 = vshrl.u32 %v5927_v40, 16 }
  0xbb   : > { %4405 = vmatmul.mubr.bf16.gmra.mrb[12].mxu1 %v1922_v33  ;;  %v6252_v33 = vmax.f32 %v5726_v16, 0.0 }
  0xbc   : > { %4421 = vmatpush3.bf16.msra.mxu1 %v4839_v23  ;;  %4906 = vmatprep.mubr.msk.bf16.mxu1 %vm5686_vm14, %v4905_v35  ;;  %v3472_v23 = vld [vmem:[#allocation3 + $0xe0] sm:$0xf0]  ;;  %v4926_v35 = vpack.c.bf16 %v6254_v17, %v6253_v62 }
  0xbd   : > { %4547 = vmatpush3.bf16.msra.mxu0 %v4838_v8  ;;  %4422 = vmatprep.subr.bf16.mxu1 %v4841_v42  ;;  %v3095_v8 = vshll.u32 %v3066_v19, 16  ;;  %v3506_v16 = vrot.slane %v3472_v23, 4 }
  0xbe   : > { %4548 = vmatprep.subr.bf16.mxu0 %v4840_v13 }
  0xbf   : > { %4909 = vmatmul.mubr.msk.bf16.gmra.mrb[12].mxu0 %vm5686_vm14, %v4908_v1  ;;  %v4857_v1 = vld [vmem:[%s6222_s6 + $0x30] sm:$0xff]  }
  0xc0   : > { %4423 = vmatpush3.bf16.msra.mxu1 %v4841_v42  ;;  %4552 = vmatprep.mubr.bf16.mxu0 %v2898_v29  ;;  %v4923_v42 = vpack.c.bf16 %v6252_v33, %v6251_v28  ;;  %v3507_v29 = vrot.slane %v3473_v53, 4 }
  0xc1   : > { %4549 = vmatpush3.bf16.msra.mxu0 %v4840_v13  ;;  %4600 = vmatprep.subr.bf16.mxu1 %v4846_v60  ;;  %v3067_v13 = vld [vmem:[#allocation3 + $0x10] sm:$0xff] }
  0xc2   : > { %4550 = vmatprep.subr.bf16.mxu0 %v4842_v34  ;;  %v3100_v4 = vshll.u32 %v3067_v13, 16  ;;  %v3104_v58 = vshrl.u32 %v3067_v13, 16 }
  0xc3   : > { %4912 = vmatmul.mubr.msk.bf16.vlgmr.msra.gmra.mrb[0].mxu1 %vm5686_vm14, %v4911_v48  ;;  %v4853_v48 = vld [vmem:[%s6217_s1 + $0x230] sm:$0xff]  }
  0xc4   : > { %4915 = vmatprep.mubr.msk.bf16.mxu1 %vm5686_vm14, %v4914_v59  ;;  %4601 = vmatpush3.bf16.msra.mxu1 %v4846_v60  ;;  %v3097_v60 = vrot.slane %v3095_v8, 1  ;;  %v3102_v59 = vrot.slane %v3100_v4, 1 }
  0xc5   : > { %4551 = vmatpush3.bf16.msra.mxu0 %v4842_v34  ;;  %4602 = vmatprep.subr.bf16.mxu1 %v4848_v15  ;;  %v2908_v34 = vsel %vm959_vm4, %v2905_v24, %v2907_v0  ;;  %v3480_v0 = vld [vmem:[#allocation3 + $0x120] sm:$0xf] }
  0xc6   : > { %4568 = vmatprep.subr.bf16.mxu0 %v4843_v10  ;;  %v3098_v32 = vor.u32 %v3097_v60, %v3093_v2 }
  0xc8   : > { %4553 = vmatmul.mubr.bf16.vlgmr.msra.gmra.mrb[0].mxu0 %v2900_v20  ;;  %4603 = vmatpush3.bf16.msra.mxu1 %v4848_v15  ;;  %v4858_v15 = vld [vmem:[%s6222_s6 + $0x38] sm:$0xff]  }
  0xc9   : > { %4569 = vmatpush3.bf16.msra.mxu0 %v4843_v10  ;;  %4556 = vmatprep.mubr.bf16.mxu0 %v2902_v51  ;;  %v3508_v10 = vsel %vm959_vm4, %v3506_v16, %v3507_v29  ;;  %v3475_v20 = vld [vmem:[#allocation3 + $0xf8] sm:$0xff]  ;;  %v6256_v51 = vmax.f32 %v5814_v5, 0.0  ;;  %v3103_v5 = vsel %vm1854_vm13, %v3098_v32, %v3102_v59  ;;  %v6155_v32 = vld [vmem:[%s6221_s5] ss:$0 sm:$0xff] }
  0xca   : > { %4570 = vmatprep.subr.bf16.mxu0 %v4844_v3  ;;  %4604 = vmatprep.subr.bf16.mxu1 %v4850_v21 }
  0xcb   : > { %4918 = vmatmul.mubr.msk.bf16.gmra.mrb[4].mxu1 %vm5686_vm14, %v4917_v39  ;;  %v3513_v39 = vrot.slane %v3476_v6, 4 }
  0xcc   : > { %4921 = vmatprep.mubr.msk.bf16.mxu1 %vm5686_vm14, %v4920_v54  ;;  %4605 = vmatpush3.bf16.msra.mxu1 %v4850_v21  ;;  %v3509_v21 = vrot.slane %v3474_v43, 4 }
  0xcd   : > { %4571 = vmatpush3.bf16.msra.mxu0 %v4844_v3  ;;  %4606 = vmatprep.subr.bf16.mxu1 %v4852_v14  ;;  %v6255_v3 = vmax.f32 %v5805_v25, 0.0  ;;  %v4855_v25 = vld [vmem:[%s6217_s1 + $0x238] sm:$0xff]  }
  0xce   : > { %4572 = vmatprep.subr.bf16.mxu0 %v4845_v41  ;;  %v3510_v63 = vsel %vm959_vm4, %v3507_v29, %v3509_v21 }
  0xcf   : > { %v4929_v18 = vpack.c.bf16 %v6256_v51, %v6255_v3 }
  0xd0   : > { %4557 = vmatmul.mubr.bf16.gmra.mrb[4].mxu0 %v2904_v56  ;;  %4607 = vmatpush3.bf16.msra.mxu1 %v4852_v14  ;;  %v3511_v14 = vrot.slane %v3475_v20, 4  ;;  %v3516_v56 = vsel %vm959_vm4, %v3513_v39, %v3515_v26 }
  0xd1   : > { %4573 = vmatpush3.bf16.msra.mxu0 %v4845_v41  ;;  %4560 = vmatprep.mubr.bf16.mxu0 %v2906_v36  ;;  %v3106_v41 = vor.u32 %v3104_v58, %v3102_v59  ;;  %v3479_v36 = vld [vmem:[#allocation3 + $0x118] sm:$0xff] }
  0xd2   : > { %4574 = vmatprep.subr.bf16.mxu0 %v4847_v44  ;;  %4608 = vmatprep.subr.bf16.mxu1 %v4854_v27  ;;  %v3512_v24 = vsel %vm959_vm4, %v3509_v21, %v3511_v14  ;;  %v3514_v54 = vsel %vm959_vm4, %v3511_v14, %v3513_v39 }
  0xd3   : > { %4924 = vmatmul.mubr.msk.bf16.gmra.mrb[8].mxu1 %vm5686_vm14, %v4923_v42  ;;  %v3111_v38 = vsel %vm1854_vm13, %v3106_v41, %v5887_v45 }
  0xd4   : > { %4927 = vmatprep.mubr.msk.bf16.mxu1 %vm5686_vm14, %v4926_v35  ;;  %4609 = vmatpush3.bf16.msra.mxu1 %v4854_v27  ;;  %v3519_v27 = vrot.slane %v3479_v36, 4 }
  0xd5   : > { %4575 = vmatpush3.bf16.msra.mxu0 %v4847_v44  ;;  %4610 = vmatprep.subr.bf16.mxu1 %v4856_v22  ;;  %v3478_v44 = vld [vmem:[#allocation3 + $0x110] sm:$0xff] }
  0xd6   : > { %4576 = vmatprep.subr.bf16.mxu0 %v4849_v61  ;;  %v3517_v37 = vrot.slane %v3478_v44, 4 }
  0xd8   : > { %4561 = vmatmul.mubr.bf16.gmra.mrb[8].mxu0 %v2908_v34  ;;  %4611 = vmatpush3.bf16.msra.mxu1 %v4856_v22  ;;  %v3518_v45 = vsel %vm959_vm4, %v3515_v26, %v3517_v37  ;;  %v3520_v19 = vsel %vm959_vm4, %v3517_v37, %v3519_v27  ;;  %v3074_v22 = vld [vmem:[#allocation3 + $0x48] sm:$0x1] }
  0xd9   : > { %4577 = vmatpush3.bf16.msra.mxu0 %v4849_v61  ;;  %4564 = vmatprep.mubr.bf16.mxu0 %v2910_v47  ;;  %v3521_v61 = vrot.slane %v3480_v0, 4  ;;  %v3156_v8 = vshll.u32 %v3074_v22, 16 }
  0xda   : > { %4578 = vmatprep.subr.bf16.mxu0 %v4851_v50  ;;  %4612 = vmatprep.subr.bf16.mxu1 %v4857_v1 }
  0xdb   : > { %4930 = vmatmul.mubr.msk.bf16.gmra.mrb[12].mxu1 %vm5686_vm14, %v4929_v18  ;;  %v3158_v53 = vrot.slane %v3156_v8, 1 }
  0xdc   : > { %4613 = vmatpush3.bf16.msra.mxu1 %v4857_v1  ;;  %4616 = vmatprep.mubr.bf16.mxu1 %v3508_v10  ;;  %v6150_v10 = vld [vmem:[%s6220_s4] ss:$0 sm:$0xff] }
  0xdd   : > { %4579 = vmatpush3.bf16.msra.mxu0 %v4851_v50  ;;  %4614 = vmatprep.subr.bf16.mxu1 %v4858_v15 }
  0xde   : > { %4580 = vmatprep.subr.bf16.mxu0 %v4853_v48 }
  0xe0   : > { %4565 = vmatmul.mubr.bf16.gmra.mrb[12].mxu0 %v2912_v57  ;;  %4615 = vmatpush3.bf16.msra.mxu1 %v4858_v15 }
  0xe1   : > { %4581 = vmatpush3.bf16.msra.mxu0 %v4853_v48  ;;  %4584 = vmatprep.mubr.bf16.mxu0 %v3103_v5 }
  0xe2   : > { %4582 = vmatprep.subr.bf16.mxu0 %v4855_v25 }
  0xe3   : > { %4617 = vmatmul.mubr.bf16.vlgmr.msra.gmra.mrb[16].mxu1 %v3510_v63 }
  0xe4   : > { %4620 = vmatprep.mubr.bf16.mxu1 %v3512_v24 }
  0xe5   : > { %4583 = vmatpush3.bf16.msra.mxu0 %v4855_v25 }
  0xe8   : > { %4585 = vmatmul.mubr.bf16.vlgmr.msra.gmra.mrb[0].mxu0 %v3111_v38 }
  0xe9   : > { %4588 = vmatprep.mubr.bf16.mxu0 %v5934_v52  ;;  %v3150_v52 = vrot.slane %v3148_v30, 1 }
  0xeb   : > { %4621 = vmatmul.mubr.bf16.gmra.mrb[20].mxu1 %v3514_v54  ;;  %v3151_v23 = vsel %vm1854_vm13, %v5982_v12, %v3150_v52 }
  0xec   : > { %4624 = vmatprep.mubr.bf16.mxu1 %v3516_v56 }
  0xf0   : > { %4589 = vmatmul.mubr.bf16.gmra.mrb[4].mxu0 %v5945_v46  ;;  %v3522_v46 = vsel %vm959_vm4, %v3519_v27, %v3521_v61 }
  0xf1   : > { %4592 = vmatprep.mubr.bf16.mxu0 %v5965_v49  ;;  %v3154_v49 = vor.u32 %v3152_v31, %v3150_v52 }
  0xf3   : > { %4625 = vmatmul.mubr.bf16.gmra.mrb[24].mxu1 %v3518_v45  ;;  %v3159_v28 = vsel %vm1854_vm13, %v3154_v49, %v3158_v53 }
  0xf4   : > { %4628 = vmatprep.mubr.bf16.mxu1 %v3520_v19 }
  0xf8   : > { %4593 = vmatmul.mubr.bf16.gmra.mrb[8].mxu0 %v5975_v7 }
  0xf9   : > { %4596 = vmatprep.mubr.bf16.mxu0 %v3151_v23 }
  0xfb   : > { %4629 = vmatmul.mubr.bf16.gmra.mrb[28].mxu1 %v3522_v46 }
 0x100   : > { %4597 = vmatmul.mubr.bf16.gmra.mrb[12].mxu0 %v3159_v28 }
 0x196   : > { %v4426_v33 = vpop.f32.mrb[0].mxu1 }
 0x197   : > { %v2183_v42 = vpop.f32.mrb[1].mxu1 }
 0x198   : > { %v4427_v13 = vpop.f32.mrb[2].mxu1 }
 0x199   : > { %v2186_v40 = vpop.f32.mrb[3].mxu1 }
 0x19e   : > { %v4430_v62 = vpop.f32.mrb[4].mxu1 }
 0x19f   : > { %v2197_v17 = vpop.f32.mrb[5].mxu1 }
 0x1a0   : > { %v4431_v12 = vpop.f32.mrb[6].mxu1 }
 0x1a1   : > { %v2200_v35 = vpop.f32.mrb[7].mxu1 }
 0x1a6   : > { %v6137_v7 = vpop.f32.mrb[8].mxu1 }
 0x1a7   : > { %v6139_v34 = vpop.f32.mrb[9].mxu1 }
 0x1a8   : > { %v4435_v50 = vpop.f32.mrb[10].mxu1 }
 0x1a9   : > { %v2214_v16 = vpop.f32.mrb[11].mxu1 }
 0x1ae   : > { %v6141_v29 = vpop.f32.mrb[12].mxu1 }
 0x1af   : > { %v6143_v47 = vpop.f32.mrb[13].mxu1 }
 0x1b0   : > { %v4439_v9 = vpop.f32.mrb[14].mxu1 }
 0x1b1   : > { %v2228_v2 = vpop.f32.mrb[15].mxu1 }
 0x1b6   : > { %v4618_v60 = vpop.f32.mrb[16].mxu1 }
 0x1b7   : > { %3669 = vst [vmem:[%s5035_s19 + $0x8] sm:$0xff] %v4618_v60  ;;  %v3613_v4 = vpop.f32.mrb[17].mxu1 }
 0x1b8   : > { %3668 = vst [vmem:[%s5035_s19] sm:$0xff] %v3613_v4  ;;  %v4619_v1 = vpop.f32.mrb[18].mxu1 }
 0x1b9   : > { %v3616_v11 = vpop.f32.mrb[19].mxu1 }
 0x1bb   : > { %v4586_v15 = vpop.f32.mrb[0].mxu0 }
 0x1bc   : > { %v4632_v43 = vadd.f32 %v4586_v15, %v4426_v33  ;;  %v3250_v48 = vpop.f32.mrb[1].mxu0 }
 0x1bd   : > { %v4633_v59 = vadd.f32 %v3250_v48, %v2183_v42  ;;  %v4587_v20 = vpop.f32.mrb[2].mxu0 }
 0x1be   : > { %v3321_v3 = vmul.f32 %v4632_v43, %v6150_v10  ;;  %v3253_v51 = vpop.f32.mrb[3].mxu0  ;;  %v4622_v18 = vpop.f32.mrb[20].mxu1 }
 0x1bf   : > { %v3320_v21 = vmul.f32 %v4633_v59, %v6150_v10  ;;  %3671 = vst [vmem:[%s5035_s19 + $0x18] sm:$0xff] %v4622_v18  ;;  %v3627_v57 = vpop.f32.mrb[21].mxu1 }
 0x1c0   : > { %v3336_v58 = vadd.f32 %v6155_v32, %v3321_v3  ;;  %3670 = vst [vmem:[%s5035_s19 + $0x10] sm:$0xff] %v3627_v57  ;;  %v4623_v14 = vpop.f32.mrb[22].mxu1 }
 0x1c1   : > { %v3335_v25 = vadd.f32 %v6155_v32, %v3320_v21  ;;  %v3630_v5 = vpop.f32.mrb[23].mxu1 }
 0x1c2   : > { %v3344_v63 = vmax.f32 %v3336_v58, 0.0 }
 0x1c3   : > { %v3343_v41 = vmax.f32 %v3335_v25, 0.0  ;;  %v4590_v24 = vpop.f32.mrb[4].mxu0 }
 0x1c4   : > { %v3360_v6 = vrot.slane %v3344_v63, 7  ;;  %v4634_v55 = vadd.f32 %v4590_v24, %v4430_v62  ;;  %v3264_v39 = vpop.f32.mrb[5].mxu0 }
 0x1c5   : > { %v3359_v38 = vrot.slane %v3343_v41, 7  ;;  %v4635_v26 = vadd.f32 %v3264_v39, %v2197_v17  ;;  %v4591_v54 = vpop.f32.mrb[6].mxu0 }
 0x1c6   : > { %v3377_v56 = vsel %vm3375_vm15, 0.0, %v3360_v6  ;;  %v3385_v44 = vsel %vm3375_vm15, %v3360_v6, 0.0  ;;  %v3323_v36 = vmul.f32 %v4634_v55, %v6150_v10  ;;  %v3267_v37 = vpop.f32.mrb[7].mxu0  ;;  %v4626_v27 = vpop.f32.mrb[24].mxu1 }
 0x1c7   : > { %v4113_v30 = vpack.c.bf16 %v3385_v44, %v3377_v56  ;;  %v3376_v45 = vsel %vm3375_vm15, 0.0, %v3359_v38  ;;  %v3384_v19 = vsel %vm3375_vm15, %v3359_v38, 0.0  ;;  %v3322_v0 = vmul.f32 %v4635_v26, %v6150_v10  ;;  %3673 = vst [vmem:[%s5035_s19 + $0x28] sm:$0xff] %v4626_v27  ;;  %v3641_v52 = vpop.f32.mrb[25].mxu1 }
 0x1c8   : > { %v4108_v22 = vpack.c.bf16 %v3384_v19, %v3376_v45  ;;  %v3338_v61 = vadd.f32 %v6155_v32, %v3323_v36  ;;  %3672 = vst [vmem:[%s5035_s19 + $0x20] sm:$0xff] %v3641_v52  ;;  %v4627_v31 = vpop.f32.mrb[26].mxu1 }
 0x1c9   : > { %4145 = vst [vmem:[%s5030_s16 + $0x8] sm:$0xff] %v4113_v30   ;;  %v3337_v8 = vadd.f32 %v6155_v32, %v3322_v0  ;;  %v3644_v23 = vpop.f32.mrb[27].mxu1 }
 0x1ca   : > { %4109 = vst [vmem:[%s5030_s16] sm:$0xff] %v4108_v22   ;;  %v3346_v46 = vmax.f32 %v3338_v61, 0.0 }
 0x1cb   : > { %v3345_v49 = vmax.f32 %v3337_v8, 0.0  ;;  %v4594_v53 = vpop.f32.mrb[8].mxu0 }
 0x1cc   : > { %v3362_v28 = vrot.slane %v3346_v46, 7  ;;  %v4636_v33 = vadd.f32 %v4594_v53, %v6137_v7  ;;  %v3278_v42 = vpop.f32.mrb[9].mxu0 }
 0x1cd   : > { %v3361_v13 = vrot.slane %v3345_v49, 7  ;;  %v4637_v40 = vadd.f32 %v3278_v42, %v6139_v34  ;;  %v4595_v62 = vpop.f32.mrb[10].mxu0 }
 0x1ce   : > { %v3379_v17 = vsel %vm3375_vm15, 0.0, %v3362_v28  ;;  %v3387_v12 = vsel %vm3375_vm15, %v3362_v28, 0.0  ;;  %v3325_v35 = vmul.f32 %v4636_v33, %v6150_v10  ;;  %v3281_v50 = vpop.f32.mrb[11].mxu0  ;;  %v4630_v16 = vpop.f32.mrb[28].mxu1 }
 0x1cf   : > { %v4123_v9 = vpack.c.bf16 %v3387_v12, %v3379_v17  ;;  %v3378_v2 = vsel %vm3375_vm15, 0.0, %v3361_v13  ;;  %v3386_v7 = vsel %vm3375_vm15, %v3361_v13, 0.0  ;;  %v3324_v60 = vmul.f32 %v4637_v40, %v6150_v10  ;;  %3675 = vst [vmem:[%s5035_s19 + $0x38] sm:$0xff] %v4630_v16  ;;  %v3655_v34 = vpop.f32.mrb[29].mxu1 }
 0x1d0   : > { %v4118_v4 = vpack.c.bf16 %v3386_v7, %v3378_v2  ;;  %v3340_v1 = vadd.f32 %v6155_v32, %v3325_v35  ;;  %3674 = vst [vmem:[%s5035_s19 + $0x30] sm:$0xff] %v3655_v34  ;;  %v4631_v11 = vpop.f32.mrb[30].mxu1 }
 0x1d1   : > { %4147 = vst [vmem:[%s5030_s16 + $0x18] sm:$0xff] %v4123_v9   ;;  %v3339_v15 = vadd.f32 %v6155_v32, %v3324_v60  ;;  %v3658_v43 = vpop.f32.mrb[31].mxu1 }
 0x1d2   : > { %4146 = vst [vmem:[%s5030_s16 + $0x10] sm:$0xff] %v4118_v4   ;;  %v3348_v48 = vmax.f32 %v3340_v1, 0.0 }
 0x1d3   : > { %v3347_v59 = vmax.f32 %v3339_v15, 0.0  ;;  %v4598_v20 = vpop.f32.mrb[12].mxu0 }
 0x1d4   : > { %v3364_v3 = vrot.slane %v3348_v48, 7  ;;  %v4638_v51 = vadd.f32 %v4598_v20, %v6141_v29  ;;  %v3292_v18 = vpop.f32.mrb[13].mxu0 }
 0x1d5   : > { %v3363_v21 = vrot.slane %v3347_v59, 7  ;;  %v4639_v57 = vadd.f32 %v3292_v18, %v6143_v47  ;;  %v4599_v58 = vpop.f32.mrb[14].mxu0 }
 0x1d6   : > { %v3381_v14 = vsel %vm3375_vm15, 0.0, %v3364_v3  ;;  %v3389_v25 = vsel %vm3375_vm15, %v3364_v3, 0.0  ;;  %v3327_v5 = vmul.f32 %v4638_v51, %v6150_v10  ;;  %v3295_v63 = vpop.f32.mrb[15].mxu0 }
 0x1d7   : > { %v4133_v41 = vpack.c.bf16 %v3389_v25, %v3381_v14  ;;  %v3380_v24 = vsel %vm3375_vm15, 0.0, %v3363_v21  ;;  %v3388_v6 = vsel %vm3375_vm15, %v3363_v21, 0.0  ;;  %v3326_v29 = vmul.f32 %v4639_v57, %v6150_v10 }
 0x1d8   : > { %v4128_v55 = vpack.c.bf16 %v3388_v6, %v3380_v24  ;;  %v3342_v47 = vadd.f32 %v6155_v32, %v3327_v5 }
 0x1d9   : > { %4149 = vst [vmem:[%s5030_s16 + $0x28] sm:$0xff] %v4133_v41   ;;  %v3341_v39 = vadd.f32 %v6155_v32, %v3326_v29 }
 0x1da   : > { %4148 = vst [vmem:[%s5030_s16 + $0x20] sm:$0xff] %v4128_v55   ;;  %v3350_v38 = vmax.f32 %v3342_v47, 0.0 }
 0x1db   : > { %v3349_v26 = vmax.f32 %v3341_v39, 0.0 }
 0x1dc   : > { %v3366_v54 = vrot.slane %v3350_v38, 7 }
 0x1dd   : > { %v3365_v56 = vrot.slane %v3349_v26, 7 }
 0x1de   : > { %v3383_v44 = vsel %vm3375_vm15, 0.0, %v3366_v54  ;;  %v3391_v36 = vsel %vm3375_vm15, %v3366_v54, 0.0 }
 0x1df   : > { %v4143_v37 = vpack.c.bf16 %v3391_v36, %v3383_v44  ;;  %v3382_v10 = vsel %vm3375_vm15, 0.0, %v3365_v56  ;;  %v3390_v27 = vsel %vm3375_vm15, %v3365_v56, 0.0 }
 0x1e0   : > { %v4138_v30 = vpack.c.bf16 %v3390_v27, %v3382_v10 }
 0x1e1   : > { %4151 = vst [vmem:[%s5030_s16 + $0x38] sm:$0xff] %v4143_v37  }
 0x1e2   : > { %4150 = vst [vmem:[%s5030_s16 + $0x30] sm:$0xff] %v4138_v30  }
 0x1e3 PF: > { %s19_s29 = sadd.s32 1, %s4955_s29   ;;  %s6257_s27 = smov %s4951_s28 }
 0x1e4   : > { %p16_p5 = scmp.ge.s32.totalorder %s19_s29, 4   ;;  %s6258_s28 = smov %s6260_s30 }
 0x1e6   :  { %18 = sbr.rel (!%p16_p5) target bundleno = 2 (0x2), region = 206 }
 0x1ed   :  { %3731 = vsyncmov [#allocation4] }
 0x1f0   :  { %s3732_s19 = vpop.sfrf %3731 }
 0x1f1   :  { %p4086_p6 = scmp.ne.s32.totalorder %s3732_s19, 0 }
 0x1f3   :  { %3736 = shalt.err (%p4086_p6)  }

</bundles_post_ra>
